<compile_context>
chip_gen: v6e
topology: v6e:2x2x1
jax: 0.10.0
libtpu: 0.0.40
codegen_flags: <defaults>
</compile_context>

<pallas_src>
import jax
import jax.numpy as jnp
from jax.experimental import pallas as pl
from jax.experimental.pallas import tpu as pltpu


def _round_up(x, m):
    return (x + m - 1) // m * m


def _full_spec(shape):
    n = len(shape)
    return pl.BlockSpec(shape, lambda *_: (0,) * n)


# ----------------------------------------------------------------------------
# Parameter prep: pad/transpose/cast ONCE (PyTorch gate order i, f, g, o).
# ----------------------------------------------------------------------------
def _pad_gate_cols(w_t, H, HP):
    # w_t: (Din, 4H) -> (Din, 4*HP); gate g's columns land at [g*HP, g*HP + H).
    din = w_t.shape[0]
    out = jnp.zeros((din, 4 * HP), jnp.float32)
    for g in range(4):
        out = out.at[:, g * HP:g * HP + H].set(w_t[:, g * H:(g + 1) * H])
    return out


def prepare_sentiment_rnn(params):
    lstm = params["lstm"]
    L = len(lstm)
    H = lstm[-1][1].shape[1]
    E = lstm[0][0].shape[1]
    out_dim = params["fc_w"].shape[0]
    HP = _round_up(H, 128)          # each gate padded to a full lane tile
    OUT_P = _round_up(out_dim, 128)  # lane-dense output store

    layer_ws = []
    for li, (w_ih, w_hh, b_ih, b_hh) in enumerate(lstm):
        din = w_ih.shape[1]
        din_p = E if li == 0 else HP
        wih = _pad_gate_cols(jnp.asarray(w_ih, jnp.float32).T, H, HP)    # (din, 4HP)
        wih = jnp.pad(wih, ((0, din_p - din), (0, 0)))                   # (din_p, 4HP)
        whh = _pad_gate_cols(jnp.asarray(w_hh, jnp.float32).T, H, HP)    # (H, 4HP)
        whh = jnp.pad(whh, ((0, HP - H), (0, 0)))                        # (HP, 4HP)
        b = jnp.zeros((1, 4 * HP), jnp.float32)
        bsum = (b_ih + b_hh).astype(jnp.float32)
        for g in range(4):
            b = b.at[0, g * HP:g * HP + H].set(bsum[g * H:(g + 1) * H])
        layer_ws.extend([wih, whh, b])

    fcw = jnp.zeros((HP, OUT_P), jnp.float32)
    fcw = fcw.at[:H, :out_dim].set(jnp.asarray(params["fc_w"], jnp.float32).T)
    fcb = jnp.zeros((1, OUT_P), jnp.float32)
    fcb = fcb.at[0, :out_dim].set(jnp.asarray(params["fc_b"], jnp.float32))

    return dict(L=L, H=H, E=E, HP=HP, OUT_P=OUT_P, out_dim=out_dim,
                layer_ws=layer_ws, fcw=fcw, fcb=fcb)


# ----------------------------------------------------------------------------
# Fused kernel: all LSTM layers + fc + sigmoid, time loop inside.
# ----------------------------------------------------------------------------
def _make_fused_kernel(L, T, BP, HP):
    def kernel(*refs):
        x_ref = refs[0]
        w_refs = refs[1:1 + 3 * L]
        fcw_ref = refs[1 + 3 * L]
        fcb_ref = refs[2 + 3 * L]
        out_ref = refs[3 + 3 * L]
        gx_sc = refs[4 + 3 * L]      # (T*BP, 4*HP) hoisted input-projection gates
        act_sc = refs[5 + 3 * L]     # (T*BP, HP)   intermediate-layer outputs

        cur_in_ref = x_ref
        h = jnp.zeros((BP, HP), jnp.float32)
        for l in range(L):
            wih_ref = w_refs[3 * l]
            whh_ref = w_refs[3 * l + 1]
            b_ref = w_refs[3 * l + 2]

            # Input projection for all T timesteps at once, bias fused (hoisted
            # off the sequential critical path).
            gx_sc[...] = (jnp.dot(cur_in_ref[...], wih_ref[...],
                                  preferred_element_type=jnp.float32)
                          + b_ref[...])

            h = jnp.zeros((BP, HP), jnp.float32)   # init_hidden -> zeros
            c = jnp.zeros((BP, HP), jnp.float32)
            last_layer = (l == L - 1)
            for t in range(T):                     # static unroll (T is small)
                g = gx_sc[t * BP:(t + 1) * BP, :] + jnp.dot(
                    h, whh_ref[...], preferred_element_type=jnp.float32)
                # lane-aligned 128-wide gate slices (i, f, g, o)
                i_g = jax.nn.sigmoid(g[:, 0:HP])
                f_g = jax.nn.sigmoid(g[:, HP:2 * HP])
                g_g = jnp.tanh(g[:, 2 * HP:3 * HP])
                o_g = jax.nn.sigmoid(g[:, 3 * HP:4 * HP])
                c = f_g * c + i_g * g_g
                h = o_g * jnp.tanh(c)
                if not last_layer:
                    act_sc[t * BP:(t + 1) * BP, :] = h   # stays in VMEM
            cur_in_ref = act_sc

        # fc + sigmoid on the last timestep of the last layer only.
        logits = jnp.dot(h, fcw_ref[...],
                         preferred_element_type=jnp.float32) + fcb_ref[...]
        out_ref[...] = jax.nn.sigmoid(logits)

    return kernel


# ----------------------------------------------------------------------------
# Forward: matches SentimentRNN.forward(embeds) with zero initial hidden state.
# ----------------------------------------------------------------------------
def sentiment_rnn_forward(embeds, prepped):
    B, T, E = embeds.shape
    L = prepped["L"]
    HP = prepped["HP"]
    OUT_P = prepped["OUT_P"]
    out_dim = prepped["out_dim"]
    BP = _round_up(B, 8)

    # time-major, batch padded to a full sublane group, flattened to (T*BP, E)
    x = jnp.transpose(embeds.astype(jnp.float32), (1, 0, 2))      # (T, B, E)
    x = jnp.pad(x, ((0, 0), (0, BP - B), (0, 0))).reshape(T * BP, E)

    in_arrays = [x] + list(prepped["layer_ws"]) + [prepped["fcw"], prepped["fcb"]]

    out = pl.pallas_call(
        _make_fused_kernel(L, T, BP, HP),
        out_shape=jax.ShapeDtypeStruct((BP, OUT_P), jnp.float32),
        grid=(),
        in_specs=[_full_spec(a.shape) for a in in_arrays],
        out_specs=_full_spec((BP, OUT_P)),
        scratch_shapes=[pltpu.VMEM((T * BP, 4 * HP), jnp.float32),
                        pltpu.VMEM((T * BP, HP), jnp.float32)],
    )(*in_arrays)

    # sigmoid(fc(lstm_out)).view(B, -1)[:, -1] == sigmoid(fc(h_{T-1}))[:, last unit]
    return out[:B, out_dim - 1]


# ----------------------------------------------------------------------------
# Pure-JAX reference (lax.scan LSTM) for verification.
# ----------------------------------------------------------------------------
def reference_forward(embeds, params):
    x = jnp.transpose(embeds, (1, 0, 2)).astype(jnp.float32)   # (T, B, E)
    B = x.shape[1]
    for (w_ih, w_hh, b_ih, b_hh) in params["lstm"]:
        H = w_hh.shape[1]

        def step(carry, x_t):
            h, c = carry
            g = x_t @ w_ih.T + h @ w_hh.T + b_ih + b_hh
            i = jax.nn.sigmoid(g[:, 0:H])
            f = jax.nn.sigmoid(g[:, H:2 * H])
            gg = jnp.tanh(g[:, 2 * H:3 * H])
            o = jax.nn.sigmoid(g[:, 3 * H:4 * H])
            c = f * c + i * gg
            h = o * jnp.tanh(c)
            return (h, c), h

        init = (jnp.zeros((B, H), jnp.float32), jnp.zeros((B, H), jnp.float32))
        _, x = jax.lax.scan(step, init, x)
    h_last = x[-1]
    out = jax.nn.sigmoid(h_last @ params["fc_w"].T + params["fc_b"])
    return out[:, -1]


# ----------------------------------------------------------------------------
# Deterministic parameter init (same shapes as the nn.Module's __init__).
# ----------------------------------------------------------------------------
def init_params(key, no_layers, embedding_dim, hidden_dim, output_dim=1):
    k = 1.0 / jnp.sqrt(hidden_dim)
    lstm = []
    for layer in range(no_layers):
        d_in = embedding_dim if layer == 0 else hidden_dim
        key, k1, k2, k3, k4 = jax.random.split(key, 5)
        w_ih = jax.random.uniform(k1, (4 * hidden_dim, d_in), jnp.float32, -k, k)
        w_hh = jax.random.uniform(k2, (4 * hidden_dim, hidden_dim), jnp.float32, -k, k)
        b_ih = jax.random.uniform(k3, (4 * hidden_dim,), jnp.float32, -k, k)
        b_hh = jax.random.uniform(k4, (4 * hidden_dim,), jnp.float32, -k, k)
        lstm.append((w_ih, w_hh, b_ih, b_hh))
    key, kf1, kf2 = jax.random.split(key, 3)
    fc_w = jax.random.uniform(kf1, (output_dim, hidden_dim), jnp.float32, -k, k)
    fc_b = jax.random.uniform(kf2, (output_dim,), jnp.float32, -k, k)
    return {"lstm": lstm, "fc_w": fc_w, "fc_b": fc_b}


if __name__ == "__main__":
    # Small shapes implied by the module: batch=2, seq=8, embedding_dim=16,
    # hidden_dim=32, no_layers=2, output_dim=1.
    B, T, E, H, L = 2, 8, 16, 32, 2

    key = jax.random.PRNGKey(0)
    key, pkey, xkey = jax.random.split(key, 3)
    params = init_params(pkey, no_layers=L, embedding_dim=E, hidden_dim=H)
    embeds = jax.random.normal(xkey, (B, T, E), jnp.float32)

    prepped = prepare_sentiment_rnn(params)          # weights padded/transposed once
    out = jax.block_until_ready(sentiment_rnn_forward(embeds, prepped))
    ref = jax.block_until_ready(reference_forward(embeds, params))

    assert out.shape == (B,), out.shape
    assert jnp.allclose(out, ref, atol=1e-5, rtol=1e-5), (out, ref)
    print("KERNEL_OK")
</pallas_src>

<mosaic_0001>
module attributes {stable_mosaic.version = 11 : i64} {
  func.func @kernel(%arg0: memref<64x16xf32, #tpu.memory_space<vmem>>, %arg1: memref<16x512xf32, #tpu.memory_space<vmem>>, %arg2: memref<128x512xf32, #tpu.memory_space<vmem>>, %arg3: memref<1x512xf32, #tpu.memory_space<vmem>>, %arg4: memref<128x512xf32, #tpu.memory_space<vmem>>, %arg5: memref<128x512xf32, #tpu.memory_space<vmem>>, %arg6: memref<1x512xf32, #tpu.memory_space<vmem>>, %arg7: memref<128x128xf32, #tpu.memory_space<vmem>>, %arg8: memref<1x128xf32, #tpu.memory_space<vmem>>, %arg9: memref<8x128xf32, #tpu.memory_space<vmem>>, %arg10: memref<64x512xf32, #tpu.memory_space<vmem>>, %arg11: memref<64x128xf32, #tpu.memory_space<vmem>>) attributes {dimension_semantics = [], scalar_prefetch = 0 : i64, scratch_operands = 2 : i64, tpu.core_type = #tpu.core_type<tc>} {
    %c0 = arith.constant 0 : index
    %c0_0 = arith.constant 0 : index
    %0 = vector.load %arg0[%c0, %c0_0] : memref<64x16xf32, #tpu.memory_space<vmem>>, vector<64x16xf32>
    %c0_1 = arith.constant 0 : index
    %c0_2 = arith.constant 0 : index
    %1 = vector.load %arg1[%c0_1, %c0_2] : memref<16x512xf32, #tpu.memory_space<vmem>>, vector<16x512xf32>
    %cst = arith.constant dense<0.000000e+00> : vector<64x512xf32>
    %2 = tpu.matmul %0, %1, %cst {dimension_numbers = #tpu.dot_dimension_numbers<[1], [0], [0], [1], [0, 0, 1, 1], [], []>} : vector<64x16xf32>, vector<16x512xf32>, vector<64x512xf32> -> vector<64x512xf32>
    %c0_3 = arith.constant 0 : index
    %c0_4 = arith.constant 0 : index
    %3 = vector.load %arg3[%c0_3, %c0_4] : memref<1x512xf32, #tpu.memory_space<vmem>>, vector<1x512xf32>
    %4 = vector.broadcast %3 : vector<1x512xf32> to vector<64x512xf32>
    %5 = arith.addf %2, %4 : vector<64x512xf32>
    %c0_5 = arith.constant 0 : index
    %c0_6 = arith.constant 0 : index
    %6 = vector.load %arg10[%c0_5, %c0_6] : memref<64x512xf32, #tpu.memory_space<vmem>>, vector<64x512xf32>
    tpu.vector_store %arg10[%c0_5, %c0_6], %5 {strides = array<i32>} : memref<64x512xf32, #tpu.memory_space<vmem>>, vector<64x512xf32>,
    %cst_7 = arith.constant 0.000000e+00 : f32
    %7 = vector.broadcast %cst_7 : f32 to vector<8x128xf32>
    %cst_8 = arith.constant 0.000000e+00 : f32
    %8 = vector.broadcast %cst_8 : f32 to vector<8x128xf32>
    %c0_9 = arith.constant 0 : index
    %c0_10 = arith.constant 0 : index
    %9 = vector.load %arg10[%c0_9, %c0_10] : memref<64x512xf32, #tpu.memory_space<vmem>>, vector<8x512xf32>
    %c0_11 = arith.constant 0 : index
    %c0_12 = arith.constant 0 : index
    %10 = vector.load %arg2[%c0_11, %c0_12] : memref<128x512xf32, #tpu.memory_space<vmem>>, vector<128x512xf32>
    %cst_13 = arith.constant dense<0.000000e+00> : vector<8x512xf32>
    %11 = tpu.matmul %7, %10, %cst_13 {dimension_numbers = #tpu.dot_dimension_numbers<[1], [0], [0], [1], [0, 0, 1, 1], [], []>} : vector<8x128xf32>, vector<128x512xf32>, vector<8x512xf32> -> vector<8x512xf32>
    %12 = arith.addf %9, %11 : vector<8x512xf32>
    %13 = vector.extract_strided_slice %12 {offsets = [0, 0], sizes = [8, 128], strides = [1, 1]} : vector<8x512xf32> to vector<8x128xf32>
    %14 = arith.negf %13 : vector<8x128xf32>
    %15 = math.exp %14 : vector<8x128xf32>
    %cst_14 = arith.constant 1.000000e+00 : f32
    %16 = vector.broadcast %cst_14 : f32 to vector<8x128xf32>
    %17 = arith.addf %16, %15 : vector<8x128xf32>
    %18 = arith.divf %16, %17 : vector<8x128xf32>
    %19 = vector.extract_strided_slice %12 {offsets = [0, 128], sizes = [8, 128], strides = [1, 1]} : vector<8x512xf32> to vector<8x128xf32>
    %20 = arith.negf %19 : vector<8x128xf32>
    %21 = math.exp %20 : vector<8x128xf32>
    %cst_15 = arith.constant 1.000000e+00 : f32
    %22 = vector.broadcast %cst_15 : f32 to vector<8x128xf32>
    %23 = arith.addf %22, %21 : vector<8x128xf32>
    %24 = arith.divf %22, %23 : vector<8x128xf32>
    %25 = vector.extract_strided_slice %12 {offsets = [0, 256], sizes = [8, 128], strides = [1, 1]} : vector<8x512xf32> to vector<8x128xf32>
    %26 = math.tanh %25 : vector<8x128xf32>
    %27 = vector.extract_strided_slice %12 {offsets = [0, 384], sizes = [8, 128], strides = [1, 1]} : vector<8x512xf32> to vector<8x128xf32>
    %28 = arith.negf %27 : vector<8x128xf32>
    %29 = math.exp %28 : vector<8x128xf32>
    %cst_16 = arith.constant 1.000000e+00 : f32
    %30 = vector.broadcast %cst_16 : f32 to vector<8x128xf32>
    %31 = arith.addf %30, %29 : vector<8x128xf32>
    %32 = arith.divf %30, %31 : vector<8x128xf32>
    %33 = arith.mulf %24, %8 : vector<8x128xf32>
    %34 = arith.mulf %18, %26 : vector<8x128xf32>
    %35 = arith.addf %33, %34 : vector<8x128xf32>
    %36 = math.tanh %35 : vector<8x128xf32>
    %37 = arith.mulf %32, %36 : vector<8x128xf32>
    %c0_17 = arith.constant 0 : index
    %c0_18 = arith.constant 0 : index
    %38 = vector.load %arg11[%c0_17, %c0_18] : memref<64x128xf32, #tpu.memory_space<vmem>>, vector<8x128xf32>
    tpu.vector_store %arg11[%c0_17, %c0_18], %37 {strides = array<i32>} : memref<64x128xf32, #tpu.memory_space<vmem>>, vector<8x128xf32>,
    %c8 = arith.constant 8 : index
    %c0_19 = arith.constant 0 : index
    %39 = vector.load %arg10[%c8, %c0_19] : memref<64x512xf32, #tpu.memory_space<vmem>>, vector<8x512xf32>
    %c0_20 = arith.constant 0 : index
    %c0_21 = arith.constant 0 : index
    %40 = vector.load %arg2[%c0_20, %c0_21] : memref<128x512xf32, #tpu.memory_space<vmem>>, vector<128x512xf32>
    %cst_22 = arith.constant dense<0.000000e+00> : vector<8x512xf32>
    %41 = tpu.matmul %37, %40, %cst_22 {dimension_numbers = #tpu.dot_dimension_numbers<[1], [0], [0], [1], [0, 0, 1, 1], [], []>} : vector<8x128xf32>, vector<128x512xf32>, vector<8x512xf32> -> vector<8x512xf32>
    %42 = arith.addf %39, %41 : vector<8x512xf32>
    %43 = vector.extract_strided_slice %42 {offsets = [0, 0], sizes = [8, 128], strides = [1, 1]} : vector<8x512xf32> to vector<8x128xf32>
    %44 = arith.negf %43 : vector<8x128xf32>
    %45 = math.exp %44 : vector<8x128xf32>
    %cst_23 = arith.constant 1.000000e+00 : f32
    %46 = vector.broadcast %cst_23 : f32 to vector<8x128xf32>
    %47 = arith.addf %46, %45 : vector<8x128xf32>
    %48 = arith.divf %46, %47 : vector<8x128xf32>
    %49 = vector.extract_strided_slice %42 {offsets = [0, 128], sizes = [8, 128], strides = [1, 1]} : vector<8x512xf32> to vector<8x128xf32>
    %50 = arith.negf %49 : vector<8x128xf32>
    %51 = math.exp %50 : vector<8x128xf32>
    %cst_24 = arith.constant 1.000000e+00 : f32
    %52 = vector.broadcast %cst_24 : f32 to vector<8x128xf32>
    %53 = arith.addf %52, %51 : vector<8x128xf32>
    %54 = arith.divf %52, %53 : vector<8x128xf32>
    %55 = vector.extract_strided_slice %42 {offsets = [0, 256], sizes = [8, 128], strides = [1, 1]} : vector<8x512xf32> to vector<8x128xf32>
    %56 = math.tanh %55 : vector<8x128xf32>
    %57 = vector.extract_strided_slice %42 {offsets = [0, 384], sizes = [8, 128], strides = [1, 1]} : vector<8x512xf32> to vector<8x128xf32>
    %58 = arith.negf %57 : vector<8x128xf32>
    %59 = math.exp %58 : vector<8x128xf32>
    %cst_25 = arith.constant 1.000000e+00 : f32
    %60 = vector.broadcast %cst_25 : f32 to vector<8x128xf32>
    %61 = arith.addf %60, %59 : vector<8x128xf32>
    %62 = arith.divf %60, %61 : vector<8x128xf32>
    %63 = arith.mulf %54, %35 : vector<8x128xf32>
    %64 = arith.mulf %48, %56 : vector<8x128xf32>
    %65 = arith.addf %63, %64 : vector<8x128xf32>
    %66 = math.tanh %65 : vector<8x128xf32>
    %67 = arith.mulf %62, %66 : vector<8x128xf32>
    %c8_26 = arith.constant 8 : index
    %c0_27 = arith.constant 0 : index
    %68 = vector.load %arg11[%c8_26, %c0_27] : memref<64x128xf32, #tpu.memory_space<vmem>>, vector<8x128xf32>
    tpu.vector_store %arg11[%c8_26, %c0_27], %67 {strides = array<i32>} : memref<64x128xf32, #tpu.memory_space<vmem>>, vector<8x128xf32>,
    %c16 = arith.constant 16 : index
    %c0_28 = arith.constant 0 : index
    %69 = vector.load %arg10[%c16, %c0_28] : memref<64x512xf32, #tpu.memory_space<vmem>>, vector<8x512xf32>
    %c0_29 = arith.constant 0 : index
    %c0_30 = arith.constant 0 : index
    %70 = vector.load %arg2[%c0_29, %c0_30] : memref<128x512xf32, #tpu.memory_space<vmem>>, vector<128x512xf32>
    %cst_31 = arith.constant dense<0.000000e+00> : vector<8x512xf32>
    %71 = tpu.matmul %67, %70, %cst_31 {dimension_numbers = #tpu.dot_dimension_numbers<[1], [0], [0], [1], [0, 0, 1, 1], [], []>} : vector<8x128xf32>, vector<128x512xf32>, vector<8x512xf32> -> vector<8x512xf32>
    %72 = arith.addf %69, %71 : vector<8x512xf32>
    %73 = vector.extract_strided_slice %72 {offsets = [0, 0], sizes = [8, 128], strides = [1, 1]} : vector<8x512xf32> to vector<8x128xf32>
    %74 = arith.negf %73 : vector<8x128xf32>
    %75 = math.exp %74 : vector<8x128xf32>
    %cst_32 = arith.constant 1.000000e+00 : f32
    %76 = vector.broadcast %cst_32 : f32 to vector<8x128xf32>
    %77 = arith.addf %76, %75 : vector<8x128xf32>
    %78 = arith.divf %76, %77 : vector<8x128xf32>
    %79 = vector.extract_strided_slice %72 {offsets = [0, 128], sizes = [8, 128], strides = [1, 1]} : vector<8x512xf32> to vector<8x128xf32>
    %80 = arith.negf %79 : vector<8x128xf32>
    %81 = math.exp %80 : vector<8x128xf32>
    %cst_33 = arith.constant 1.000000e+00 : f32
    %82 = vector.broadcast %cst_33 : f32 to vector<8x128xf32>
    %83 = arith.addf %82, %81 : vector<8x128xf32>
    %84 = arith.divf %82, %83 : vector<8x128xf32>
    %85 = vector.extract_strided_slice %72 {offsets = [0, 256], sizes = [8, 128], strides = [1, 1]} : vector<8x512xf32> to vector<8x128xf32>
    %86 = math.tanh %85 : vector<8x128xf32>
    %87 = vector.extract_strided_slice %72 {offsets = [0, 384], sizes = [8, 128], strides = [1, 1]} : vector<8x512xf32> to vector<8x128xf32>
    %88 = arith.negf %87 : vector<8x128xf32>
    %89 = math.exp %88 : vector<8x128xf32>
    %cst_34 = arith.constant 1.000000e+00 : f32
    %90 = vector.broadcast %cst_34 : f32 to vector<8x128xf32>
    %91 = arith.addf %90, %89 : vector<8x128xf32>
    %92 = arith.divf %90, %91 : vector<8x128xf32>
    %93 = arith.mulf %84, %65 : vector<8x128xf32>
    %94 = arith.mulf %78, %86 : vector<8x128xf32>
    %95 = arith.addf %93, %94 : vector<8x128xf32>
    %96 = math.tanh %95 : vector<8x128xf32>
    %97 = arith.mulf %92, %96 : vector<8x128xf32>
    %c16_35 = arith.constant 16 : index
    %c0_36 = arith.constant 0 : index
    %98 = vector.load %arg11[%c16_35, %c0_36] : memref<64x128xf32, #tpu.memory_space<vmem>>, vector<8x128xf32>
    tpu.vector_store %arg11[%c16_35, %c0_36], %97 {strides = array<i32>} : memref<64x128xf32, #tpu.memory_space<vmem>>, vector<8x128xf32>,
    %c24 = arith.constant 24 : index
    %c0_37 = arith.constant 0 : index
    %99 = vector.load %arg10[%c24, %c0_37] : memref<64x512xf32, #tpu.memory_space<vmem>>, vector<8x512xf32>
    %c0_38 = arith.constant 0 : index
    %c0_39 = arith.constant 0 : index
    %100 = vector.load %arg2[%c0_38, %c0_39] : memref<128x512xf32, #tpu.memory_space<vmem>>, vector<128x512xf32>
    %cst_40 = arith.constant dense<0.000000e+00> : vector<8x512xf32>
    %101 = tpu.matmul %97, %100, %cst_40 {dimension_numbers = #tpu.dot_dimension_numbers<[1], [0], [0], [1], [0, 0, 1, 1], [], []>} : vector<8x128xf32>, vector<128x512xf32>, vector<8x512xf32> -> vector<8x512xf32>
    %102 = arith.addf %99, %101 : vector<8x512xf32>
    %103 = vector.extract_strided_slice %102 {offsets = [0, 0], sizes = [8, 128], strides = [1, 1]} : vector<8x512xf32> to vector<8x128xf32>
    %104 = arith.negf %103 : vector<8x128xf32>
    %105 = math.exp %104 : vector<8x128xf32>
    %cst_41 = arith.constant 1.000000e+00 : f32
    %106 = vector.broadcast %cst_41 : f32 to vector<8x128xf32>
    %107 = arith.addf %106, %105 : vector<8x128xf32>
    %108 = arith.divf %106, %107 : vector<8x128xf32>
    %109 = vector.extract_strided_slice %102 {offsets = [0, 128], sizes = [8, 128], strides = [1, 1]} : vector<8x512xf32> to vector<8x128xf32>
    %110 = arith.negf %109 : vector<8x128xf32>
    %111 = math.exp %110 : vector<8x128xf32>
    %cst_42 = arith.constant 1.000000e+00 : f32
    %112 = vector.broadcast %cst_42 : f32 to vector<8x128xf32>
    %113 = arith.addf %112, %111 : vector<8x128xf32>
    %114 = arith.divf %112, %113 : vector<8x128xf32>
    %115 = vector.extract_strided_slice %102 {offsets = [0, 256], sizes = [8, 128], strides = [1, 1]} : vector<8x512xf32> to vector<8x128xf32>
    %116 = math.tanh %115 : vector<8x128xf32>
    %117 = vector.extract_strided_slice %102 {offsets = [0, 384], sizes = [8, 128], strides = [1, 1]} : vector<8x512xf32> to vector<8x128xf32>
    %118 = arith.negf %117 : vector<8x128xf32>
    %119 = math.exp %118 : vector<8x128xf32>
    %cst_43 = arith.constant 1.000000e+00 : f32
    %120 = vector.broadcast %cst_43 : f32 to vector<8x128xf32>
    %121 = arith.addf %120, %119 : vector<8x128xf32>
    %122 = arith.divf %120, %121 : vector<8x128xf32>
    %123 = arith.mulf %114, %95 : vector<8x128xf32>
    %124 = arith.mulf %108, %116 : vector<8x128xf32>
    %125 = arith.addf %123, %124 : vector<8x128xf32>
    %126 = math.tanh %125 : vector<8x128xf32>
    %127 = arith.mulf %122, %126 : vector<8x128xf32>
    %c24_44 = arith.constant 24 : index
    %c0_45 = arith.constant 0 : index
    %128 = vector.load %arg11[%c24_44, %c0_45] : memref<64x128xf32, #tpu.memory_space<vmem>>, vector<8x128xf32>
    tpu.vector_store %arg11[%c24_44, %c0_45], %127 {strides = array<i32>} : memref<64x128xf32, #tpu.memory_space<vmem>>, vector<8x128xf32>,
    %c32 = arith.constant 32 : index
    %c0_46 = arith.constant 0 : index
    %129 = vector.load %arg10[%c32, %c0_46] : memref<64x512xf32, #tpu.memory_space<vmem>>, vector<8x512xf32>
    %c0_47 = arith.constant 0 : index
    %c0_48 = arith.constant 0 : index
    %130 = vector.load %arg2[%c0_47, %c0_48] : memref<128x512xf32, #tpu.memory_space<vmem>>, vector<128x512xf32>
    %cst_49 = arith.constant dense<0.000000e+00> : vector<8x512xf32>
    %131 = tpu.matmul %127, %130, %cst_49 {dimension_numbers = #tpu.dot_dimension_numbers<[1], [0], [0], [1], [0, 0, 1, 1], [], []>} : vector<8x128xf32>, vector<128x512xf32>, vector<8x512xf32> -> vector<8x512xf32>
    %132 = arith.addf %129, %131 : vector<8x512xf32>
    %133 = vector.extract_strided_slice %132 {offsets = [0, 0], sizes = [8, 128], strides = [1, 1]} : vector<8x512xf32> to vector<8x128xf32>
    %134 = arith.negf %133 : vector<8x128xf32>
    %135 = math.exp %134 : vector<8x128xf32>
    %cst_50 = arith.constant 1.000000e+00 : f32
    %136 = vector.broadcast %cst_50 : f32 to vector<8x128xf32>
    %137 = arith.addf %136, %135 : vector<8x128xf32>
    %138 = arith.divf %136, %137 : vector<8x128xf32>
    %139 = vector.extract_strided_slice %132 {offsets = [0, 128], sizes = [8, 128], strides = [1, 1]} : vector<8x512xf32> to vector<8x128xf32>
    %140 = arith.negf %139 : vector<8x128xf32>
    %141 = math.exp %140 : vector<8x128xf32>
    %cst_51 = arith.constant 1.000000e+00 : f32
    %142 = vector.broadcast %cst_51 : f32 to vector<8x128xf32>
    %143 = arith.addf %142, %141 : vector<8x128xf32>
    %144 = arith.divf %142, %143 : vector<8x128xf32>
    %145 = vector.extract_strided_slice %132 {offsets = [0, 256], sizes = [8, 128], strides = [1, 1]} : vector<8x512xf32> to vector<8x128xf32>
    %146 = math.tanh %145 : vector<8x128xf32>
    %147 = vector.extract_strided_slice %132 {offsets = [0, 384], sizes = [8, 128], strides = [1, 1]} : vector<8x512xf32> to vector<8x128xf32>
    %148 = arith.negf %147 : vector<8x128xf32>
    %149 = math.exp %148 : vector<8x128xf32>
    %cst_52 = arith.constant 1.000000e+00 : f32
    %150 = vector.broadcast %cst_52 : f32 to vector<8x128xf32>
    %151 = arith.addf %150, %149 : vector<8x128xf32>
    %152 = arith.divf %150, %151 : vector<8x128xf32>
    %153 = arith.mulf %144, %125 : vector<8x128xf32>
    %154 = arith.mulf %138, %146 : vector<8x128xf32>
    %155 = arith.addf %153, %154 : vector<8x128xf32>
    %156 = math.tanh %155 : vector<8x128xf32>
    %157 = arith.mulf %152, %156 : vector<8x128xf32>
    %c32_53 = arith.constant 32 : index
    %c0_54 = arith.constant 0 : index
    %158 = vector.load %arg11[%c32_53, %c0_54] : memref<64x128xf32, #tpu.memory_space<vmem>>, vector<8x128xf32>
    tpu.vector_store %arg11[%c32_53, %c0_54], %157 {strides = array<i32>} : memref<64x128xf32, #tpu.memory_space<vmem>>, vector<8x128xf32>,
    %c40 = arith.constant 40 : index
    %c0_55 = arith.constant 0 : index
    %159 = vector.load %arg10[%c40, %c0_55] : memref<64x512xf32, #tpu.memory_space<vmem>>, vector<8x512xf32>
    %c0_56 = arith.constant 0 : index
    %c0_57 = arith.constant 0 : index
    %160 = vector.load %arg2[%c0_56, %c0_57] : memref<128x512xf32, #tpu.memory_space<vmem>>, vector<128x512xf32>
    %cst_58 = arith.constant dense<0.000000e+00> : vector<8x512xf32>
    %161 = tpu.matmul %157, %160, %cst_58 {dimension_numbers = #tpu.dot_dimension_numbers<[1], [0], [0], [1], [0, 0, 1, 1], [], []>} : vector<8x128xf32>, vector<128x512xf32>, vector<8x512xf32> -> vector<8x512xf32>
    %162 = arith.addf %159, %161 : vector<8x512xf32>
    %163 = vector.extract_strided_slice %162 {offsets = [0, 0], sizes = [8, 128], strides = [1, 1]} : vector<8x512xf32> to vector<8x128xf32>
    %164 = arith.negf %163 : vector<8x128xf32>
    %165 = math.exp %164 : vector<8x128xf32>
    %cst_59 = arith.constant 1.000000e+00 : f32
    %166 = vector.broadcast %cst_59 : f32 to vector<8x128xf32>
    %167 = arith.addf %166, %165 : vector<8x128xf32>
    %168 = arith.divf %166, %167 : vector<8x128xf32>
    %169 = vector.extract_strided_slice %162 {offsets = [0, 128], sizes = [8, 128], strides = [1, 1]} : vector<8x512xf32> to vector<8x128xf32>
    %170 = arith.negf %169 : vector<8x128xf32>
    %171 = math.exp %170 : vector<8x128xf32>
    %cst_60 = arith.constant 1.000000e+00 : f32
    %172 = vector.broadcast %cst_60 : f32 to vector<8x128xf32>
    %173 = arith.addf %172, %171 : vector<8x128xf32>
    %174 = arith.divf %172, %173 : vector<8x128xf32>
    %175 = vector.extract_strided_slice %162 {offsets = [0, 256], sizes = [8, 128], strides = [1, 1]} : vector<8x512xf32> to vector<8x128xf32>
    %176 = math.tanh %175 : vector<8x128xf32>
    %177 = vector.extract_strided_slice %162 {offsets = [0, 384], sizes = [8, 128], strides = [1, 1]} : vector<8x512xf32> to vector<8x128xf32>
    %178 = arith.negf %177 : vector<8x128xf32>
    %179 = math.exp %178 : vector<8x128xf32>
    %cst_61 = arith.constant 1.000000e+00 : f32
    %180 = vector.broadcast %cst_61 : f32 to vector<8x128xf32>
    %181 = arith.addf %180, %179 : vector<8x128xf32>
    %182 = arith.divf %180, %181 : vector<8x128xf32>
    %183 = arith.mulf %174, %155 : vector<8x128xf32>
    %184 = arith.mulf %168, %176 : vector<8x128xf32>
    %185 = arith.addf %183, %184 : vector<8x128xf32>
    %186 = math.tanh %185 : vector<8x128xf32>
    %187 = arith.mulf %182, %186 : vector<8x128xf32>
    %c40_62 = arith.constant 40 : index
    %c0_63 = arith.constant 0 : index
    %188 = vector.load %arg11[%c40_62, %c0_63] : memref<64x128xf32, #tpu.memory_space<vmem>>, vector<8x128xf32>
    tpu.vector_store %arg11[%c40_62, %c0_63], %187 {strides = array<i32>} : memref<64x128xf32, #tpu.memory_space<vmem>>, vector<8x128xf32>,
    %c48 = arith.constant 48 : index
    %c0_64 = arith.constant 0 : index
    %189 = vector.load %arg10[%c48, %c0_64] : memref<64x512xf32, #tpu.memory_space<vmem>>, vector<8x512xf32>
    %c0_65 = arith.constant 0 : index
    %c0_66 = arith.constant 0 : index
    %190 = vector.load %arg2[%c0_65, %c0_66] : memref<128x512xf32, #tpu.memory_space<vmem>>, vector<128x512xf32>
    %cst_67 = arith.constant dense<0.000000e+00> : vector<8x512xf32>
    %191 = tpu.matmul %187, %190, %cst_67 {dimension_numbers = #tpu.dot_dimension_numbers<[1], [0], [0], [1], [0, 0, 1, 1], [], []>} : vector<8x128xf32>, vector<128x512xf32>, vector<8x512xf32> -> vector<8x512xf32>
    %192 = arith.addf %189, %191 : vector<8x512xf32>
    %193 = vector.extract_strided_slice %192 {offsets = [0, 0], sizes = [8, 128], strides = [1, 1]} : vector<8x512xf32> to vector<8x128xf32>
    %194 = arith.negf %193 : vector<8x128xf32>
    %195 = math.exp %194 : vector<8x128xf32>
    %cst_68 = arith.constant 1.000000e+00 : f32
    %196 = vector.broadcast %cst_68 : f32 to vector<8x128xf32>
    %197 = arith.addf %196, %195 : vector<8x128xf32>
    %198 = arith.divf %196, %197 : vector<8x128xf32>
    %199 = vector.extract_strided_slice %192 {offsets = [0, 128], sizes = [8, 128], strides = [1, 1]} : vector<8x512xf32> to vector<8x128xf32>
    %200 = arith.negf %199 : vector<8x128xf32>
    %201 = math.exp %200 : vector<8x128xf32>
    %cst_69 = arith.constant 1.000000e+00 : f32
    %202 = vector.broadcast %cst_69 : f32 to vector<8x128xf32>
    %203 = arith.addf %202, %201 : vector<8x128xf32>
    %204 = arith.divf %202, %203 : vector<8x128xf32>
    %205 = vector.extract_strided_slice %192 {offsets = [0, 256], sizes = [8, 128], strides = [1, 1]} : vector<8x512xf32> to vector<8x128xf32>
    %206 = math.tanh %205 : vector<8x128xf32>
    %207 = vector.extract_strided_slice %192 {offsets = [0, 384], sizes = [8, 128], strides = [1, 1]} : vector<8x512xf32> to vector<8x128xf32>
    %208 = arith.negf %207 : vector<8x128xf32>
    %209 = math.exp %208 : vector<8x128xf32>
    %cst_70 = arith.constant 1.000000e+00 : f32
    %210 = vector.broadcast %cst_70 : f32 to vector<8x128xf32>
    %211 = arith.addf %210, %209 : vector<8x128xf32>
    %212 = arith.divf %210, %211 : vector<8x128xf32>
    %213 = arith.mulf %204, %185 : vector<8x128xf32>
    %214 = arith.mulf %198, %206 : vector<8x128xf32>
    %215 = arith.addf %213, %214 : vector<8x128xf32>
    %216 = math.tanh %215 : vector<8x128xf32>
    %217 = arith.mulf %212, %216 : vector<8x128xf32>
    %c48_71 = arith.constant 48 : index
    %c0_72 = arith.constant 0 : index
    %218 = vector.load %arg11[%c48_71, %c0_72] : memref<64x128xf32, #tpu.memory_space<vmem>>, vector<8x128xf32>
    tpu.vector_store %arg11[%c48_71, %c0_72], %217 {strides = array<i32>} : memref<64x128xf32, #tpu.memory_space<vmem>>, vector<8x128xf32>,
    %c56 = arith.constant 56 : index
    %c0_73 = arith.constant 0 : index
    %219 = vector.load %arg10[%c56, %c0_73] : memref<64x512xf32, #tpu.memory_space<vmem>>, vector<8x512xf32>
    %c0_74 = arith.constant 0 : index
    %c0_75 = arith.constant 0 : index
    %220 = vector.load %arg2[%c0_74, %c0_75] : memref<128x512xf32, #tpu.memory_space<vmem>>, vector<128x512xf32>
    %cst_76 = arith.constant dense<0.000000e+00> : vector<8x512xf32>
    %221 = tpu.matmul %217, %220, %cst_76 {dimension_numbers = #tpu.dot_dimension_numbers<[1], [0], [0], [1], [0, 0, 1, 1], [], []>} : vector<8x128xf32>, vector<128x512xf32>, vector<8x512xf32> -> vector<8x512xf32>
    %222 = arith.addf %219, %221 : vector<8x512xf32>
    %223 = vector.extract_strided_slice %222 {offsets = [0, 0], sizes = [8, 128], strides = [1, 1]} : vector<8x512xf32> to vector<8x128xf32>
    %224 = arith.negf %223 : vector<8x128xf32>
    %225 = math.exp %224 : vector<8x128xf32>
    %cst_77 = arith.constant 1.000000e+00 : f32
    %226 = vector.broadcast %cst_77 : f32 to vector<8x128xf32>
    %227 = arith.addf %226, %225 : vector<8x128xf32>
    %228 = arith.divf %226, %227 : vector<8x128xf32>
    %229 = vector.extract_strided_slice %222 {offsets = [0, 128], sizes = [8, 128], strides = [1, 1]} : vector<8x512xf32> to vector<8x128xf32>
    %230 = arith.negf %229 : vector<8x128xf32>
    %231 = math.exp %230 : vector<8x128xf32>
    %cst_78 = arith.constant 1.000000e+00 : f32
    %232 = vector.broadcast %cst_78 : f32 to vector<8x128xf32>
    %233 = arith.addf %232, %231 : vector<8x128xf32>
    %234 = arith.divf %232, %233 : vector<8x128xf32>
    %235 = vector.extract_strided_slice %222 {offsets = [0, 256], sizes = [8, 128], strides = [1, 1]} : vector<8x512xf32> to vector<8x128xf32>
    %236 = math.tanh %235 : vector<8x128xf32>
    %237 = vector.extract_strided_slice %222 {offsets = [0, 384], sizes = [8, 128], strides = [1, 1]} : vector<8x512xf32> to vector<8x128xf32>
    %238 = arith.negf %237 : vector<8x128xf32>
    %239 = math.exp %238 : vector<8x128xf32>
    %cst_79 = arith.constant 1.000000e+00 : f32
    %240 = vector.broadcast %cst_79 : f32 to vector<8x128xf32>
    %241 = arith.addf %240, %239 : vector<8x128xf32>
    %242 = arith.divf %240, %241 : vector<8x128xf32>
    %243 = arith.mulf %234, %215 : vector<8x128xf32>
    %244 = arith.mulf %228, %236 : vector<8x128xf32>
    %245 = arith.addf %243, %244 : vector<8x128xf32>
    %246 = math.tanh %245 : vector<8x128xf32>
    %247 = arith.mulf %242, %246 : vector<8x128xf32>
    %c56_80 = arith.constant 56 : index
    %c0_81 = arith.constant 0 : index
    %248 = vector.load %arg11[%c56_80, %c0_81] : memref<64x128xf32, #tpu.memory_space<vmem>>, vector<8x128xf32>
    tpu.vector_store %arg11[%c56_80, %c0_81], %247 {strides = array<i32>} : memref<64x128xf32, #tpu.memory_space<vmem>>, vector<8x128xf32>,
    %c0_82 = arith.constant 0 : index
    %c0_83 = arith.constant 0 : index
    %249 = vector.load %arg11[%c0_82, %c0_83] : memref<64x128xf32, #tpu.memory_space<vmem>>, vector<64x128xf32>
    %c0_84 = arith.constant 0 : index
    %c0_85 = arith.constant 0 : index
    %250 = vector.load %arg4[%c0_84, %c0_85] : memref<128x512xf32, #tpu.memory_space<vmem>>, vector<128x512xf32>
    %cst_86 = arith.constant dense<0.000000e+00> : vector<64x512xf32>
    %251 = tpu.matmul %249, %250, %cst_86 {dimension_numbers = #tpu.dot_dimension_numbers<[1], [0], [0], [1], [0, 0, 1, 1], [], []>} : vector<64x128xf32>, vector<128x512xf32>, vector<64x512xf32> -> vector<64x512xf32>
    %c0_87 = arith.constant 0 : index
    %c0_88 = arith.constant 0 : index
    %252 = vector.load %arg6[%c0_87, %c0_88] : memref<1x512xf32, #tpu.memory_space<vmem>>, vector<1x512xf32>
    %253 = vector.broadcast %252 : vector<1x512xf32> to vector<64x512xf32>
    %254 = arith.addf %251, %253 : vector<64x512xf32>
    %c0_89 = arith.constant 0 : index
    %c0_90 = arith.constant 0 : index
    %255 = vector.load %arg10[%c0_89, %c0_90] : memref<64x512xf32, #tpu.memory_space<vmem>>, vector<64x512xf32>
    tpu.vector_store %arg10[%c0_89, %c0_90], %254 {strides = array<i32>} : memref<64x512xf32, #tpu.memory_space<vmem>>, vector<64x512xf32>,
    %cst_91 = arith.constant 0.000000e+00 : f32
    %256 = vector.broadcast %cst_91 : f32 to vector<8x128xf32>
    %cst_92 = arith.constant 0.000000e+00 : f32
    %257 = vector.broadcast %cst_92 : f32 to vector<8x128xf32>
    %c0_93 = arith.constant 0 : index
    %c0_94 = arith.constant 0 : index
    %258 = vector.load %arg10[%c0_93, %c0_94] : memref<64x512xf32, #tpu.memory_space<vmem>>, vector<8x512xf32>
    %c0_95 = arith.constant 0 : index
    %c0_96 = arith.constant 0 : index
    %259 = vector.load %arg5[%c0_95, %c0_96] : memref<128x512xf32, #tpu.memory_space<vmem>>, vector<128x512xf32>
    %cst_97 = arith.constant dense<0.000000e+00> : vector<8x512xf32>
    %260 = tpu.matmul %256, %259, %cst_97 {dimension_numbers = #tpu.dot_dimension_numbers<[1], [0], [0], [1], [0, 0, 1, 1], [], []>} : vector<8x128xf32>, vector<128x512xf32>, vector<8x512xf32> -> vector<8x512xf32>
    %261 = arith.addf %258, %260 : vector<8x512xf32>
    %262 = vector.extract_strided_slice %261 {offsets = [0, 0], sizes = [8, 128], strides = [1, 1]} : vector<8x512xf32> to vector<8x128xf32>
    %263 = arith.negf %262 : vector<8x128xf32>
    %264 = math.exp %263 : vector<8x128xf32>
    %cst_98 = arith.constant 1.000000e+00 : f32
    %265 = vector.broadcast %cst_98 : f32 to vector<8x128xf32>
    %266 = arith.addf %265, %264 : vector<8x128xf32>
    %267 = arith.divf %265, %266 : vector<8x128xf32>
    %268 = vector.extract_strided_slice %261 {offsets = [0, 128], sizes = [8, 128], strides = [1, 1]} : vector<8x512xf32> to vector<8x128xf32>
    %269 = arith.negf %268 : vector<8x128xf32>
    %270 = math.exp %269 : vector<8x128xf32>
    %cst_99 = arith.constant 1.000000e+00 : f32
    %271 = vector.broadcast %cst_99 : f32 to vector<8x128xf32>
    %272 = arith.addf %271, %270 : vector<8x128xf32>
    %273 = arith.divf %271, %272 : vector<8x128xf32>
    %274 = vector.extract_strided_slice %261 {offsets = [0, 256], sizes = [8, 128], strides = [1, 1]} : vector<8x512xf32> to vector<8x128xf32>
    %275 = math.tanh %274 : vector<8x128xf32>
    %276 = vector.extract_strided_slice %261 {offsets = [0, 384], sizes = [8, 128], strides = [1, 1]} : vector<8x512xf32> to vector<8x128xf32>
    %277 = arith.negf %276 : vector<8x128xf32>
    %278 = math.exp %277 : vector<8x128xf32>
    %cst_100 = arith.constant 1.000000e+00 : f32
    %279 = vector.broadcast %cst_100 : f32 to vector<8x128xf32>
    %280 = arith.addf %279, %278 : vector<8x128xf32>
    %281 = arith.divf %279, %280 : vector<8x128xf32>
    %282 = arith.mulf %273, %257 : vector<8x128xf32>
    %283 = arith.mulf %267, %275 : vector<8x128xf32>
    %284 = arith.addf %282, %283 : vector<8x128xf32>
    %285 = math.tanh %284 : vector<8x128xf32>
    %286 = arith.mulf %281, %285 : vector<8x128xf32>
    %c8_101 = arith.constant 8 : index
    %c0_102 = arith.constant 0 : index
    %287 = vector.load %arg10[%c8_101, %c0_102] : memref<64x512xf32, #tpu.memory_space<vmem>>, vector<8x512xf32>
    %c0_103 = arith.constant 0 : index
    %c0_104 = arith.constant 0 : index
    %288 = vector.load %arg5[%c0_103, %c0_104] : memref<128x512xf32, #tpu.memory_space<vmem>>, vector<128x512xf32>
    %cst_105 = arith.constant dense<0.000000e+00> : vector<8x512xf32>
    %289 = tpu.matmul %286, %288, %cst_105 {dimension_numbers = #tpu.dot_dimension_numbers<[1], [0], [0], [1], [0, 0, 1, 1], [], []>} : vector<8x128xf32>, vector<128x512xf32>, vector<8x512xf32> -> vector<8x512xf32>
    %290 = arith.addf %287, %289 : vector<8x512xf32>
    %291 = vector.extract_strided_slice %290 {offsets = [0, 0], sizes = [8, 128], strides = [1, 1]} : vector<8x512xf32> to vector<8x128xf32>
    %292 = arith.negf %291 : vector<8x128xf32>
    %293 = math.exp %292 : vector<8x128xf32>
    %cst_106 = arith.constant 1.000000e+00 : f32
    %294 = vector.broadcast %cst_106 : f32 to vector<8x128xf32>
    %295 = arith.addf %294, %293 : vector<8x128xf32>
    %296 = arith.divf %294, %295 : vector<8x128xf32>
    %297 = vector.extract_strided_slice %290 {offsets = [0, 128], sizes = [8, 128], strides = [1, 1]} : vector<8x512xf32> to vector<8x128xf32>
    %298 = arith.negf %297 : vector<8x128xf32>
    %299 = math.exp %298 : vector<8x128xf32>
    %cst_107 = arith.constant 1.000000e+00 : f32
    %300 = vector.broadcast %cst_107 : f32 to vector<8x128xf32>
    %301 = arith.addf %300, %299 : vector<8x128xf32>
    %302 = arith.divf %300, %301 : vector<8x128xf32>
    %303 = vector.extract_strided_slice %290 {offsets = [0, 256], sizes = [8, 128], strides = [1, 1]} : vector<8x512xf32> to vector<8x128xf32>
    %304 = math.tanh %303 : vector<8x128xf32>
    %305 = vector.extract_strided_slice %290 {offsets = [0, 384], sizes = [8, 128], strides = [1, 1]} : vector<8x512xf32> to vector<8x128xf32>
    %306 = arith.negf %305 : vector<8x128xf32>
    %307 = math.exp %306 : vector<8x128xf32>
    %cst_108 = arith.constant 1.000000e+00 : f32
    %308 = vector.broadcast %cst_108 : f32 to vector<8x128xf32>
    %309 = arith.addf %308, %307 : vector<8x128xf32>
    %310 = arith.divf %308, %309 : vector<8x128xf32>
    %311 = arith.mulf %302, %284 : vector<8x128xf32>
    %312 = arith.mulf %296, %304 : vector<8x128xf32>
    %313 = arith.addf %311, %312 : vector<8x128xf32>
    %314 = math.tanh %313 : vector<8x128xf32>
    %315 = arith.mulf %310, %314 : vector<8x128xf32>
    %c16_109 = arith.constant 16 : index
    %c0_110 = arith.constant 0 : index
    %316 = vector.load %arg10[%c16_109, %c0_110] : memref<64x512xf32, #tpu.memory_space<vmem>>, vector<8x512xf32>
    %c0_111 = arith.constant 0 : index
    %c0_112 = arith.constant 0 : index
    %317 = vector.load %arg5[%c0_111, %c0_112] : memref<128x512xf32, #tpu.memory_space<vmem>>, vector<128x512xf32>
    %cst_113 = arith.constant dense<0.000000e+00> : vector<8x512xf32>
    %318 = tpu.matmul %315, %317, %cst_113 {dimension_numbers = #tpu.dot_dimension_numbers<[1], [0], [0], [1], [0, 0, 1, 1], [], []>} : vector<8x128xf32>, vector<128x512xf32>, vector<8x512xf32> -> vector<8x512xf32>
    %319 = arith.addf %316, %318 : vector<8x512xf32>
    %320 = vector.extract_strided_slice %319 {offsets = [0, 0], sizes = [8, 128], strides = [1, 1]} : vector<8x512xf32> to vector<8x128xf32>
    %321 = arith.negf %320 : vector<8x128xf32>
    %322 = math.exp %321 : vector<8x128xf32>
    %cst_114 = arith.constant 1.000000e+00 : f32
    %323 = vector.broadcast %cst_114 : f32 to vector<8x128xf32>
    %324 = arith.addf %323, %322 : vector<8x128xf32>
    %325 = arith.divf %323, %324 : vector<8x128xf32>
    %326 = vector.extract_strided_slice %319 {offsets = [0, 128], sizes = [8, 128], strides = [1, 1]} : vector<8x512xf32> to vector<8x128xf32>
    %327 = arith.negf %326 : vector<8x128xf32>
    %328 = math.exp %327 : vector<8x128xf32>
    %cst_115 = arith.constant 1.000000e+00 : f32
    %329 = vector.broadcast %cst_115 : f32 to vector<8x128xf32>
    %330 = arith.addf %329, %328 : vector<8x128xf32>
    %331 = arith.divf %329, %330 : vector<8x128xf32>
    %332 = vector.extract_strided_slice %319 {offsets = [0, 256], sizes = [8, 128], strides = [1, 1]} : vector<8x512xf32> to vector<8x128xf32>
    %333 = math.tanh %332 : vector<8x128xf32>
    %334 = vector.extract_strided_slice %319 {offsets = [0, 384], sizes = [8, 128], strides = [1, 1]} : vector<8x512xf32> to vector<8x128xf32>
    %335 = arith.negf %334 : vector<8x128xf32>
    %336 = math.exp %335 : vector<8x128xf32>
    %cst_116 = arith.constant 1.000000e+00 : f32
    %337 = vector.broadcast %cst_116 : f32 to vector<8x128xf32>
    %338 = arith.addf %337, %336 : vector<8x128xf32>
    %339 = arith.divf %337, %338 : vector<8x128xf32>
    %340 = arith.mulf %331, %313 : vector<8x128xf32>
    %341 = arith.mulf %325, %333 : vector<8x128xf32>
    %342 = arith.addf %340, %341 : vector<8x128xf32>
    %343 = math.tanh %342 : vector<8x128xf32>
    %344 = arith.mulf %339, %343 : vector<8x128xf32>
    %c24_117 = arith.constant 24 : index
    %c0_118 = arith.constant 0 : index
    %345 = vector.load %arg10[%c24_117, %c0_118] : memref<64x512xf32, #tpu.memory_space<vmem>>, vector<8x512xf32>
    %c0_119 = arith.constant 0 : index
    %c0_120 = arith.constant 0 : index
    %346 = vector.load %arg5[%c0_119, %c0_120] : memref<128x512xf32, #tpu.memory_space<vmem>>, vector<128x512xf32>
    %cst_121 = arith.constant dense<0.000000e+00> : vector<8x512xf32>
    %347 = tpu.matmul %344, %346, %cst_121 {dimension_numbers = #tpu.dot_dimension_numbers<[1], [0], [0], [1], [0, 0, 1, 1], [], []>} : vector<8x128xf32>, vector<128x512xf32>, vector<8x512xf32> -> vector<8x512xf32>
    %348 = arith.addf %345, %347 : vector<8x512xf32>
    %349 = vector.extract_strided_slice %348 {offsets = [0, 0], sizes = [8, 128], strides = [1, 1]} : vector<8x512xf32> to vector<8x128xf32>
    %350 = arith.negf %349 : vector<8x128xf32>
    %351 = math.exp %350 : vector<8x128xf32>
    %cst_122 = arith.constant 1.000000e+00 : f32
    %352 = vector.broadcast %cst_122 : f32 to vector<8x128xf32>
    %353 = arith.addf %352, %351 : vector<8x128xf32>
    %354 = arith.divf %352, %353 : vector<8x128xf32>
    %355 = vector.extract_strided_slice %348 {offsets = [0, 128], sizes = [8, 128], strides = [1, 1]} : vector<8x512xf32> to vector<8x128xf32>
    %356 = arith.negf %355 : vector<8x128xf32>
    %357 = math.exp %356 : vector<8x128xf32>
    %cst_123 = arith.constant 1.000000e+00 : f32
    %358 = vector.broadcast %cst_123 : f32 to vector<8x128xf32>
    %359 = arith.addf %358, %357 : vector<8x128xf32>
    %360 = arith.divf %358, %359 : vector<8x128xf32>
    %361 = vector.extract_strided_slice %348 {offsets = [0, 256], sizes = [8, 128], strides = [1, 1]} : vector<8x512xf32> to vector<8x128xf32>
    %362 = math.tanh %361 : vector<8x128xf32>
    %363 = vector.extract_strided_slice %348 {offsets = [0, 384], sizes = [8, 128], strides = [1, 1]} : vector<8x512xf32> to vector<8x128xf32>
    %364 = arith.negf %363 : vector<8x128xf32>
    %365 = math.exp %364 : vector<8x128xf32>
    %cst_124 = arith.constant 1.000000e+00 : f32
    %366 = vector.broadcast %cst_124 : f32 to vector<8x128xf32>
    %367 = arith.addf %366, %365 : vector<8x128xf32>
    %368 = arith.divf %366, %367 : vector<8x128xf32>
    %369 = arith.mulf %360, %342 : vector<8x128xf32>
    %370 = arith.mulf %354, %362 : vector<8x128xf32>
    %371 = arith.addf %369, %370 : vector<8x128xf32>
    %372 = math.tanh %371 : vector<8x128xf32>
    %373 = arith.mulf %368, %372 : vector<8x128xf32>
    %c32_125 = arith.constant 32 : index
    %c0_126 = arith.constant 0 : index
    %374 = vector.load %arg10[%c32_125, %c0_126] : memref<64x512xf32, #tpu.memory_space<vmem>>, vector<8x512xf32>
    %c0_127 = arith.constant 0 : index
    %c0_128 = arith.constant 0 : index
    %375 = vector.load %arg5[%c0_127, %c0_128] : memref<128x512xf32, #tpu.memory_space<vmem>>, vector<128x512xf32>
    %cst_129 = arith.constant dense<0.000000e+00> : vector<8x512xf32>
    %376 = tpu.matmul %373, %375, %cst_129 {dimension_numbers = #tpu.dot_dimension_numbers<[1], [0], [0], [1], [0, 0, 1, 1], [], []>} : vector<8x128xf32>, vector<128x512xf32>, vector<8x512xf32> -> vector<8x512xf32>
    %377 = arith.addf %374, %376 : vector<8x512xf32>
    %378 = vector.extract_strided_slice %377 {offsets = [0, 0], sizes = [8, 128], strides = [1, 1]} : vector<8x512xf32> to vector<8x128xf32>
    %379 = arith.negf %378 : vector<8x128xf32>
    %380 = math.exp %379 : vector<8x128xf32>
    %cst_130 = arith.constant 1.000000e+00 : f32
    %381 = vector.broadcast %cst_130 : f32 to vector<8x128xf32>
    %382 = arith.addf %381, %380 : vector<8x128xf32>
    %383 = arith.divf %381, %382 : vector<8x128xf32>
    %384 = vector.extract_strided_slice %377 {offsets = [0, 128], sizes = [8, 128], strides = [1, 1]} : vector<8x512xf32> to vector<8x128xf32>
    %385 = arith.negf %384 : vector<8x128xf32>
    %386 = math.exp %385 : vector<8x128xf32>
    %cst_131 = arith.constant 1.000000e+00 : f32
    %387 = vector.broadcast %cst_131 : f32 to vector<8x128xf32>
    %388 = arith.addf %387, %386 : vector<8x128xf32>
    %389 = arith.divf %387, %388 : vector<8x128xf32>
    %390 = vector.extract_strided_slice %377 {offsets = [0, 256], sizes = [8, 128], strides = [1, 1]} : vector<8x512xf32> to vector<8x128xf32>
    %391 = math.tanh %390 : vector<8x128xf32>
    %392 = vector.extract_strided_slice %377 {offsets = [0, 384], sizes = [8, 128], strides = [1, 1]} : vector<8x512xf32> to vector<8x128xf32>
    %393 = arith.negf %392 : vector<8x128xf32>
    %394 = math.exp %393 : vector<8x128xf32>
    %cst_132 = arith.constant 1.000000e+00 : f32
    %395 = vector.broadcast %cst_132 : f32 to vector<8x128xf32>
    %396 = arith.addf %395, %394 : vector<8x128xf32>
    %397 = arith.divf %395, %396 : vector<8x128xf32>
    %398 = arith.mulf %389, %371 : vector<8x128xf32>
    %399 = arith.mulf %383, %391 : vector<8x128xf32>
    %400 = arith.addf %398, %399 : vector<8x128xf32>
    %401 = math.tanh %400 : vector<8x128xf32>
    %402 = arith.mulf %397, %401 : vector<8x128xf32>
    %c40_133 = arith.constant 40 : index
    %c0_134 = arith.constant 0 : index
    %403 = vector.load %arg10[%c40_133, %c0_134] : memref<64x512xf32, #tpu.memory_space<vmem>>, vector<8x512xf32>
    %c0_135 = arith.constant 0 : index
    %c0_136 = arith.constant 0 : index
    %404 = vector.load %arg5[%c0_135, %c0_136] : memref<128x512xf32, #tpu.memory_space<vmem>>, vector<128x512xf32>
    %cst_137 = arith.constant dense<0.000000e+00> : vector<8x512xf32>
    %405 = tpu.matmul %402, %404, %cst_137 {dimension_numbers = #tpu.dot_dimension_numbers<[1], [0], [0], [1], [0, 0, 1, 1], [], []>} : vector<8x128xf32>, vector<128x512xf32>, vector<8x512xf32> -> vector<8x512xf32>
    %406 = arith.addf %403, %405 : vector<8x512xf32>
    %407 = vector.extract_strided_slice %406 {offsets = [0, 0], sizes = [8, 128], strides = [1, 1]} : vector<8x512xf32> to vector<8x128xf32>
    %408 = arith.negf %407 : vector<8x128xf32>
    %409 = math.exp %408 : vector<8x128xf32>
    %cst_138 = arith.constant 1.000000e+00 : f32
    %410 = vector.broadcast %cst_138 : f32 to vector<8x128xf32>
    %411 = arith.addf %410, %409 : vector<8x128xf32>
    %412 = arith.divf %410, %411 : vector<8x128xf32>
    %413 = vector.extract_strided_slice %406 {offsets = [0, 128], sizes = [8, 128], strides = [1, 1]} : vector<8x512xf32> to vector<8x128xf32>
    %414 = arith.negf %413 : vector<8x128xf32>
    %415 = math.exp %414 : vector<8x128xf32>
    %cst_139 = arith.constant 1.000000e+00 : f32
    %416 = vector.broadcast %cst_139 : f32 to vector<8x128xf32>
    %417 = arith.addf %416, %415 : vector<8x128xf32>
    %418 = arith.divf %416, %417 : vector<8x128xf32>
    %419 = vector.extract_strided_slice %406 {offsets = [0, 256], sizes = [8, 128], strides = [1, 1]} : vector<8x512xf32> to vector<8x128xf32>
    %420 = math.tanh %419 : vector<8x128xf32>
    %421 = vector.extract_strided_slice %406 {offsets = [0, 384], sizes = [8, 128], strides = [1, 1]} : vector<8x512xf32> to vector<8x128xf32>
    %422 = arith.negf %421 : vector<8x128xf32>
    %423 = math.exp %422 : vector<8x128xf32>
    %cst_140 = arith.constant 1.000000e+00 : f32
    %424 = vector.broadcast %cst_140 : f32 to vector<8x128xf32>
    %425 = arith.addf %424, %423 : vector<8x128xf32>
    %426 = arith.divf %424, %425 : vector<8x128xf32>
    %427 = arith.mulf %418, %400 : vector<8x128xf32>
    %428 = arith.mulf %412, %420 : vector<8x128xf32>
    %429 = arith.addf %427, %428 : vector<8x128xf32>
    %430 = math.tanh %429 : vector<8x128xf32>
    %431 = arith.mulf %426, %430 : vector<8x128xf32>
    %c48_141 = arith.constant 48 : index
    %c0_142 = arith.constant 0 : index
    %432 = vector.load %arg10[%c48_141, %c0_142] : memref<64x512xf32, #tpu.memory_space<vmem>>, vector<8x512xf32>
    %c0_143 = arith.constant 0 : index
    %c0_144 = arith.constant 0 : index
    %433 = vector.load %arg5[%c0_143, %c0_144] : memref<128x512xf32, #tpu.memory_space<vmem>>, vector<128x512xf32>
    %cst_145 = arith.constant dense<0.000000e+00> : vector<8x512xf32>
    %434 = tpu.matmul %431, %433, %cst_145 {dimension_numbers = #tpu.dot_dimension_numbers<[1], [0], [0], [1], [0, 0, 1, 1], [], []>} : vector<8x128xf32>, vector<128x512xf32>, vector<8x512xf32> -> vector<8x512xf32>
    %435 = arith.addf %432, %434 : vector<8x512xf32>
    %436 = vector.extract_strided_slice %435 {offsets = [0, 0], sizes = [8, 128], strides = [1, 1]} : vector<8x512xf32> to vector<8x128xf32>
    %437 = arith.negf %436 : vector<8x128xf32>
    %438 = math.exp %437 : vector<8x128xf32>
    %cst_146 = arith.constant 1.000000e+00 : f32
    %439 = vector.broadcast %cst_146 : f32 to vector<8x128xf32>
    %440 = arith.addf %439, %438 : vector<8x128xf32>
    %441 = arith.divf %439, %440 : vector<8x128xf32>
    %442 = vector.extract_strided_slice %435 {offsets = [0, 128], sizes = [8, 128], strides = [1, 1]} : vector<8x512xf32> to vector<8x128xf32>
    %443 = arith.negf %442 : vector<8x128xf32>
    %444 = math.exp %443 : vector<8x128xf32>
    %cst_147 = arith.constant 1.000000e+00 : f32
    %445 = vector.broadcast %cst_147 : f32 to vector<8x128xf32>
    %446 = arith.addf %445, %444 : vector<8x128xf32>
    %447 = arith.divf %445, %446 : vector<8x128xf32>
    %448 = vector.extract_strided_slice %435 {offsets = [0, 256], sizes = [8, 128], strides = [1, 1]} : vector<8x512xf32> to vector<8x128xf32>
    %449 = math.tanh %448 : vector<8x128xf32>
    %450 = vector.extract_strided_slice %435 {offsets = [0, 384], sizes = [8, 128], strides = [1, 1]} : vector<8x512xf32> to vector<8x128xf32>
    %451 = arith.negf %450 : vector<8x128xf32>
    %452 = math.exp %451 : vector<8x128xf32>
    %cst_148 = arith.constant 1.000000e+00 : f32
    %453 = vector.broadcast %cst_148 : f32 to vector<8x128xf32>
    %454 = arith.addf %453, %452 : vector<8x128xf32>
    %455 = arith.divf %453, %454 : vector<8x128xf32>
    %456 = arith.mulf %447, %429 : vector<8x128xf32>
    %457 = arith.mulf %441, %449 : vector<8x128xf32>
    %458 = arith.addf %456, %457 : vector<8x128xf32>
    %459 = math.tanh %458 : vector<8x128xf32>
    %460 = arith.mulf %455, %459 : vector<8x128xf32>
    %c56_149 = arith.constant 56 : index
    %c0_150 = arith.constant 0 : index
    %461 = vector.load %arg10[%c56_149, %c0_150] : memref<64x512xf32, #tpu.memory_space<vmem>>, vector<8x512xf32>
    %c0_151 = arith.constant 0 : index
    %c0_152 = arith.constant 0 : index
    %462 = vector.load %arg5[%c0_151, %c0_152] : memref<128x512xf32, #tpu.memory_space<vmem>>, vector<128x512xf32>
    %cst_153 = arith.constant dense<0.000000e+00> : vector<8x512xf32>
    %463 = tpu.matmul %460, %462, %cst_153 {dimension_numbers = #tpu.dot_dimension_numbers<[1], [0], [0], [1], [0, 0, 1, 1], [], []>} : vector<8x128xf32>, vector<128x512xf32>, vector<8x512xf32> -> vector<8x512xf32>
    %464 = arith.addf %461, %463 : vector<8x512xf32>
    %465 = vector.extract_strided_slice %464 {offsets = [0, 0], sizes = [8, 128], strides = [1, 1]} : vector<8x512xf32> to vector<8x128xf32>
    %466 = arith.negf %465 : vector<8x128xf32>
    %467 = math.exp %466 : vector<8x128xf32>
    %cst_154 = arith.constant 1.000000e+00 : f32
    %468 = vector.broadcast %cst_154 : f32 to vector<8x128xf32>
    %469 = arith.addf %468, %467 : vector<8x128xf32>
    %470 = arith.divf %468, %469 : vector<8x128xf32>
    %471 = vector.extract_strided_slice %464 {offsets = [0, 128], sizes = [8, 128], strides = [1, 1]} : vector<8x512xf32> to vector<8x128xf32>
    %472 = arith.negf %471 : vector<8x128xf32>
    %473 = math.exp %472 : vector<8x128xf32>
    %cst_155 = arith.constant 1.000000e+00 : f32
    %474 = vector.broadcast %cst_155 : f32 to vector<8x128xf32>
    %475 = arith.addf %474, %473 : vector<8x128xf32>
    %476 = arith.divf %474, %475 : vector<8x128xf32>
    %477 = vector.extract_strided_slice %464 {offsets = [0, 256], sizes = [8, 128], strides = [1, 1]} : vector<8x512xf32> to vector<8x128xf32>
    %478 = math.tanh %477 : vector<8x128xf32>
    %479 = vector.extract_strided_slice %464 {offsets = [0, 384], sizes = [8, 128], strides = [1, 1]} : vector<8x512xf32> to vector<8x128xf32>
    %480 = arith.negf %479 : vector<8x128xf32>
    %481 = math.exp %480 : vector<8x128xf32>
    %cst_156 = arith.constant 1.000000e+00 : f32
    %482 = vector.broadcast %cst_156 : f32 to vector<8x128xf32>
    %483 = arith.addf %482, %481 : vector<8x128xf32>
    %484 = arith.divf %482, %483 : vector<8x128xf32>
    %485 = arith.mulf %476, %458 : vector<8x128xf32>
    %486 = arith.mulf %470, %478 : vector<8x128xf32>
    %487 = arith.addf %485, %486 : vector<8x128xf32>
    %488 = math.tanh %487 : vector<8x128xf32>
    %489 = arith.mulf %484, %488 : vector<8x128xf32>
    %c0_157 = arith.constant 0 : index
    %c0_158 = arith.constant 0 : index
    %490 = vector.load %arg7[%c0_157, %c0_158] : memref<128x128xf32, #tpu.memory_space<vmem>>, vector<128x128xf32>
    %cst_159 = arith.constant dense<0.000000e+00> : vector<8x128xf32>
    %491 = tpu.matmul %489, %490, %cst_159 {dimension_numbers = #tpu.dot_dimension_numbers<[1], [0], [0], [1], [0, 0, 1, 1], [], []>} : vector<8x128xf32>, vector<128x128xf32>, vector<8x128xf32> -> vector<8x128xf32>
    %c0_160 = arith.constant 0 : index
    %c0_161 = arith.constant 0 : index
    %492 = vector.load %arg8[%c0_160, %c0_161] : memref<1x128xf32, #tpu.memory_space<vmem>>, vector<1x128xf32>
    %493 = vector.broadcast %492 : vector<1x128xf32> to vector<8x128xf32>
    %494 = arith.addf %491, %493 : vector<8x128xf32>
    %495 = arith.negf %494 : vector<8x128xf32>
    %496 = math.exp %495 : vector<8x128xf32>
    %cst_162 = arith.constant 1.000000e+00 : f32
    %497 = vector.broadcast %cst_162 : f32 to vector<8x128xf32>
    %498 = arith.addf %497, %496 : vector<8x128xf32>
    %499 = arith.divf %497, %498 : vector<8x128xf32>
    %c0_163 = arith.constant 0 : index
    %c0_164 = arith.constant 0 : index
    %500 = vector.load %arg9[%c0_163, %c0_164] : memref<8x128xf32, #tpu.memory_space<vmem>>, vector<8x128xf32>
    tpu.vector_store %arg9[%c0_163, %c0_164], %499 {strides = array<i32>} : memref<8x128xf32, #tpu.memory_space<vmem>>, vector<8x128xf32>,
    return
  }
}

</mosaic_0001>

<bundles_post_ra>
// kernel: tpu_custom_call.1
= control target key start
LH: loop header
LB: loop body
LE: loop exit
PB: predicated region body
PF: predicated region fallthrough
CT: control target
= control target key end

     0   :  { %14 = vsyncpa [#allocation5], 0  ;;  %s6873_s0 = inlined_call_operand.vmem [shape: f32[64,16], index: 0, kind: input, shape index: {}]   ;;  %s6874_s1 = inlined_call_operand.vmem [shape: f32[16,512], index: 1, kind: input, shape index: {}]   ;;  %s6875_s2 = inlined_call_operand.hbm [shape: f32[128,512], index: 2, kind: input, shape index: {}]   ;;  %s6876_s3 = inlined_call_operand.vmem [shape: f32[1,512], index: 3, kind: input, shape index: {}]   ;;  %s6877_s4 = inlined_call_operand.hbm [shape: f32[128,512], index: 4, kind: input, shape index: {}]   ;;  %s6878_s5 = inlined_call_operand.hbm [shape: f32[128,512], index: 5, kind: input, shape index: {}]   ;;  %s6879_s6 = inlined_call_operand.vmem [shape: f32[1,512], index: 6, kind: input, shape index: {}]   ;;  %s6880_s7 = inlined_call_operand.hbm [shape: f32[128,128], index: 7, kind: input, shape index: {}]   ;;  %s6881_s8 = inlined_call_operand.vmem [shape: f32[1,128], index: 8, kind: input, shape index: {}]   ;;  %s6882_s9 = inlined_call_operand.hbm [shape: f32[8,128], index: 9, kind: output, shape index: {}]  }
   0x1   :  { %15 = vsyncpa [#allocation8], 0 }
   0x2   :  { %16 = vsyncpa [#allocation11], 0 }
   0x3   :  { %17 = vsyncpa [#allocation6], 0  ;;  %s4807_s30 = smov [#allocation7]   ;;  %s4808_s11 = smov [#allocation4]  }
   0x4   :  { %s41_s10 = sshll.u32 %s4807_s30, 4  ;;  %s27_s12 = sshll.u32 %s4808_s11, 4  ;;  %s42_s10 = int_to_ptr.vmem [resolvable:$true] %s41_s10  ;;  %s28_s12 = int_to_ptr.vmem [resolvable:$true] %s27_s12 }
   0x5   :  { %s4707_s13 = scalar_lea.vmem %s42_s10, 8192  ;;  %p4712_p1 = scmp.lt.s32.totalorder %s42_s10, %s42_s10 }
   0x6   :  { %p4708_p0 = scmp.ne.s32.totalorder %s42_s10, %s4707_s13  ;;  %p4713_p2 = scmp.lt.s32.totalorder %s4707_s13, %s4707_s13 }
   0x8   :  { %p4714_p3 = por %p4713_p2, %p4712_p1 }
   0xa   :  { %p4715_p4 = pnand %p4714_p3, %p4708_p0 }
   0xc   :  { %4718 = shalt.err (!%p4715_p4)
}
   0xd   :  { %s4809_s14 = smov 512   ;;  %s4810_s15 = smov 32  }
   0xe   :  { %47 = dma.hbm_to_vmem [thread:$0]  %s6877_s4, 8192, %s42_s10, [#allocation8], %s4809_s14, %s4809_s14, %s4810_s15  }
   0xf   :  { %s4727_s18 = scalar_lea.vmem %s28_s12, 8192  ;;  %p4732_p6 = scmp.lt.s32.totalorder %s28_s12, %s28_s12 }
  0x10   :  { %p4728_p5 = scmp.ne.s32.totalorder %s28_s12, %s4727_s18  ;;  %p4733_p7 = scmp.lt.s32.totalorder %s4727_s18, %s4727_s18 }
  0x12   :  { %p4734_p8 = por %p4733_p7, %p4732_p6 }
  0x14   :  { %p4735_p9 = pnand %p4734_p8, %p4728_p5 }
  0x16   :  { %4738 = shalt.err (!%p4735_p9)
}
  0x17   :  { %33 = dma.hbm_to_vmem [thread:$0]  %s6875_s2, 8192, %s28_s12, [#allocation5], %s4809_s14, %s4809_s14, %s4810_s15  }
  0x18   :  { %s4811_s21 = smov [#allocation9]   ;;  %s4812_s23 = smov [#allocation10]  }
  0x19   :  { %s53_s22 = sshll.u32 %s4811_s21, 4  ;;  %s67_s24 = sshll.u32 %s4812_s23, 4  ;;  %s54_s22 = int_to_ptr.vmem [resolvable:$true] %s53_s22  ;;  %s68_s24 = int_to_ptr.vmem [resolvable:$true] %s67_s24 }
  0x1a   :  { %s4747_s25 = scalar_lea.vmem %s54_s22, 8192  ;;  %p4752_p11 = scmp.lt.s32.totalorder %s54_s22, %s54_s22 }
  0x1b   :  { %p4748_p10 = scmp.ne.s32.totalorder %s54_s22, %s4747_s25  ;;  %p4753_p12 = scmp.lt.s32.totalorder %s4747_s25, %s4747_s25 }
  0x1d   :  { %p4754_p13 = por %p4753_p12, %p4752_p11 }
  0x1f   :  { %p4755_p0 = pnand %p4754_p13, %p4748_p10 }
  0x21   :  { %4758 = shalt.err (!%p4755_p0)
}
  0x22   :  { %59 = dma.hbm_to_vmem [thread:$0]  %s6878_s5, 8192, %s54_s22, [#allocation8], %s4809_s14, %s4809_s14, %s4810_s15  }
  0x23   :  { %s4767_s27 = scalar_lea.vmem %s68_s24, 2048  ;;  %p4772_p2 = scmp.lt.s32.totalorder %s68_s24, %s68_s24 }
  0x24   :  { %p4768_p1 = scmp.ne.s32.totalorder %s68_s24, %s4767_s27  ;;  %p4773_p3 = scmp.lt.s32.totalorder %s4767_s27, %s4767_s27 }
  0x26   :  { %p4774_p4 = por %p4773_p3, %p4772_p2 }
  0x28   :  { %p4775_p5 = pnand %p4774_p4, %p4768_p1 }
  0x2a   :  { %4778 = shalt.err (!%p4775_p5)
}
  0x2b   :  { %s4813_s2 = smov 128   ;;  %s4814_s28 = smov 8  }
  0x2c   :  { %73 = dma.hbm_to_vmem [thread:$0]  %s6880_s7, 2048, %s68_s24, [#allocation11], %s4813_s2, %s4813_s2, %s4814_s28  }
  0x2d   :  { %4799 = dma.done.wait [#allocation5], 8192  }
  0x2e   :  { %4800 = vsyncadd [#allocation5], 4294959104 }
  0x2f   :  { %4801 = dma.done.wait [#allocation8], 16384  }
  0x30   :  { %4802 = vsyncadd [#allocation8], 4294950912 }
  0x31   :  { %4803 = dma.done.wait [#allocation11], 2048  }
  0x32   :  { %4804 = vsyncadd [#allocation11], 4294965248  ;;  %v6883_v0 = vmov 0.0   ;;  %v101_v1 = vld [vmem:[%s6874_s1 + $0x28] sm:$0xff]  ;;  %v103_v2 = vld [vmem:[%s6874_s1 + $0x38] sm:$0xff]  ;;  %vm126_vm0 = vcmask 130048  }
  0x33   :  { %215 = vmatprep.mubr.f32.mxu0 %v6883_v0  ;;  %328 = vmatprep.mubr.f32.mxu1 %v6883_v0  ;;  %v100_v3 = vld [vmem:[%s6874_s1 + $0x20] sm:$0xff]  ;;  %v102_v4 = vld [vmem:[%s6874_s1 + $0x30] sm:$0xff]  ;;  %v97_v5 = vld [vmem:[%s6874_s1 + $0x8] sm:$0xff]  ;;  %vm4816_vm1 = vmmov 0   ;;  %s4817_s17 = smov [#allocation12]  }
  0x34   :  { %179 = vmatprep.subr.mxu0 %v101_v1  ;;  %292 = vmatprep.subr.mxu1 %v103_v2  ;;  %v99_v6 = vld [vmem:[%s6874_s1 + $0x18] sm:$0xff]  ;;  %v96_v7 = vld [vmem:[%s6874_s1] sm:$0xff]  ;;  %v98_v8 = vld [vmem:[%s6874_s1 + $0x10] sm:$0xff]  ;;  %s4235_s18 = sshll.u32 %s4817_s17, 4  ;;  %s4236_s18 = int_to_ptr.vmem [resolvable:$true] %s4235_s18 }
  0x35   :  { %180 = vmatpush1.msra.mxu0 %v100_v3  ;;  %293 = vmatpush1.msra.mxu1 %v102_v4  ;;  %v88_v9 = vld [vmem:[%s6873_s0] sm:$0xff]  ;;  %v4909_v10 = vld [vmem:[#allocation4 + $0x1e8] sm:$0xff]  ;;  %v4911_v11 = vld [vmem:[#allocation4 + $0x1f8] sm:$0xff]  ;;  %s4779_s19 = scalar_lea.vmem %s4236_s18, 128  ;;  %p4784_p7 = scmp.lt.s32.totalorder %s4236_s18, %s4236_s18 }
  0x36   :  { %181 = vmatprep.subr.mxu0 %v97_v5  ;;  %294 = vmatprep.subr.mxu1 %v99_v6  ;;  %v4913_v12 = vld [vmem:[#allocation4 + $0x1e0] sm:$0xff]  ;;  %v4915_v13 = vld [vmem:[#allocation4 + $0x1f0] sm:$0xff]  ;;  %v4919_v14 = vld [vmem:[#allocation4 + $0x1c8] sm:$0xff]  ;;  %p4780_p6 = scmp.ne.s32.totalorder %s4236_s18, %s4779_s19  ;;  %p4785_p8 = scmp.lt.s32.totalorder %s4779_s19, %s4779_s19 }
  0x37   :  { %182 = vmatpush1.msra.mxu0 %v96_v7  ;;  %295 = vmatpush1.msra.mxu1 %v98_v8  ;;  %v4921_v15 = vld [vmem:[#allocation4 + $0x1d8] sm:$0xff]  ;;  %v4927_v16 = vld [vmem:[#allocation4 + $0x1c0] sm:$0xff]  ;;  %v4929_v17 = vld [vmem:[#allocation4 + $0x1d0] sm:$0xff] }
  0x38   :  { %4246 = vmatmul.mubr.msk.f32.vlgmr.msra.gmra.mxu0 %vm126_vm0, %v88_v9  ;;  %4254 = vmatmul.mubr.msk.f32.vlgmr.msra.gmra.mxu1 %vm126_vm0, %v88_v9  ;;  %v89_v18 = vld [vmem:[%s6873_s0 + $0x8] sm:$0xff]  ;;  %v4940_v20 = vld [vmem:[#allocation4 + $0x1b8] sm:$0xff]  ;;  %v4944_v21 = vld [vmem:[#allocation4 + $0x1a0] sm:$0xff]  ;;  %p4786_p9 = por %p4785_p8, %p4784_p7 }
  0x39   :  { %477 = vmatprep.subr.mxu0 %v4909_v10  ;;  %548 = vmatprep.subr.mxu1 %v4911_v11  ;;  %v4938_v19 = vld [vmem:[#allocation4 + $0x1a8] sm:$0xff]  ;;  %v4946_v22 = vld [vmem:[#allocation4 + $0x1b0] sm:$0xff]  ;;  %v4952_v24 = vld [vmem:[#allocation4 + $0x198] sm:$0xff] }
  0x3a   :  { %478 = vmatpush1.msra.mxu0 %v4913_v12  ;;  %549 = vmatpush1.msra.mxu1 %v4915_v13  ;;  %v4950_v23 = vld [vmem:[#allocation4 + $0x188] sm:$0xff]  ;;  %v4958_v25 = vld [vmem:[#allocation4 + $0x180] sm:$0xff]  ;;  %v4960_v26 = vld [vmem:[#allocation4 + $0x190] sm:$0xff]  ;;  %p4787_p10 = pnand %p4786_p9, %p4780_p6 }
  0x3b   :  { %479 = vmatprep.subr.mxu0 %v4919_v14  ;;  %550 = vmatprep.subr.mxu1 %v4921_v15  ;;  %v90_v27 = vld [vmem:[%s6873_s0 + $0x10] sm:$0xff]  ;;  %v4969_v28 = vld [vmem:[#allocation4 + $0x168] sm:$0xff]  ;;  %v4971_v29 = vld [vmem:[#allocation4 + $0x178] sm:$0xff] }
  0x3c   :  { %221 = vmatprep.mubr.f32.mxu0 %v6883_v0  ;;  %334 = vmatprep.mubr.f32.mxu1 %v6883_v0  ;;  %v4975_v30 = vld [vmem:[#allocation4 + $0x160] sm:$0xff]  ;;  %v4977_v31 = vld [vmem:[#allocation4 + $0x170] sm:$0xff]  ;;  %v4981_v32 = vld [vmem:[#allocation4 + $0x148] sm:$0xff] }
  0x3d   :  { %480 = vmatpush1.msra.mxu0 %v4927_v16  ;;  %551 = vmatpush1.msra.mxu1 %v4929_v17  ;;  %v4983_v33 = vld [vmem:[#allocation4 + $0x158] sm:$0xff]  ;;  %v4989_v34 = vld [vmem:[#allocation4 + $0x140] sm:$0xff]  ;;  %v4991_v35 = vld [vmem:[#allocation4 + $0x150] sm:$0xff] }
  0x3e   :  { %4247 = vmatmul.mubr.msk.f32.gmra.mxu0 %vm126_vm0, %v89_v18  ;;  %4255 = vmatmul.mubr.msk.f32.gmra.mxu1 %vm126_vm0, %v89_v18  ;;  %v91_v36 = vld [vmem:[%s6873_s0 + $0x18] sm:$0xff]  ;;  %v5000_v37 = vld [vmem:[#allocation4 + $0x128] sm:$0xff]  ;;  %v5006_v39 = vld [vmem:[#allocation4 + $0x120] sm:$0xff] }
  0x3f   :  { %481 = vmatprep.subr.mxu0 %v4938_v19  ;;  %552 = vmatprep.subr.mxu1 %v4940_v20  ;;  %v5002_v38 = vld [vmem:[#allocation4 + $0x138] sm:$0xff]  ;;  %v5008_v40 = vld [vmem:[#allocation4 + $0x130] sm:$0xff]  ;;  %v5012_v41 = vld [vmem:[#allocation4 + $0x108] sm:$0xff] }
  0x40   :  { %482 = vmatpush1.msra.mxu0 %v4944_v21  ;;  %553 = vmatpush1.msra.mxu1 %v4946_v22  ;;  %v5014_v42 = vld [vmem:[#allocation4 + $0x118] sm:$0xff]  ;;  %v5020_v43 = vld [vmem:[#allocation4 + $0x100] sm:$0xff]  ;;  %v5022_v44 = vld [vmem:[#allocation4 + $0x110] sm:$0xff] }
  0x41   :  { %483 = vmatprep.subr.mxu0 %v4950_v23  ;;  %554 = vmatprep.subr.mxu1 %v4952_v24  ;;  %v92_v45 = vld [vmem:[%s6873_s0 + $0x20] sm:$0xff]  ;;  %v5031_v46 = vld [vmem:[#allocation4 + $0xe8] sm:$0xff]  ;;  %v5033_v47 = vld [vmem:[#allocation4 + $0xf8] sm:$0xff] }
  0x42   :  { %227 = vmatprep.mubr.f32.mxu0 %v6883_v0  ;;  %340 = vmatprep.mubr.f32.mxu1 %v6883_v0  ;;  %v5037_v48 = vld [vmem:[#allocation4 + $0xe0] sm:$0xff]  ;;  %v5039_v49 = vld [vmem:[#allocation4 + $0xf0] sm:$0xff]  ;;  %v5043_v50 = vld [vmem:[#allocation4 + $0xc8] sm:$0xff] }
  0x43   :  { %484 = vmatpush1.msra.mxu0 %v4958_v25  ;;  %555 = vmatpush1.msra.mxu1 %v4960_v26  ;;  %v5045_v51 = vld [vmem:[#allocation4 + $0xd8] sm:$0xff]  ;;  %v5051_v52 = vld [vmem:[#allocation4 + $0xc0] sm:$0xff]  ;;  %v5053_v53 = vld [vmem:[#allocation4 + $0xd0] sm:$0xff] }
  0x44   :  { %4248 = vmatmul.mubr.msk.f32.gmra.mxu0 %vm126_vm0, %v90_v27  ;;  %4256 = vmatmul.mubr.msk.f32.gmra.mxu1 %vm126_vm0, %v90_v27  ;;  %v93_v54 = vld [vmem:[%s6873_s0 + $0x28] sm:$0xff]  ;;  %v5064_v56 = vld [vmem:[#allocation4 + $0xb8] sm:$0xff]  ;;  %v5068_v57 = vld [vmem:[#allocation4 + $0xa0] sm:$0xff] }
  0x45   :  { %485 = vmatprep.subr.mxu0 %v4969_v28  ;;  %556 = vmatprep.subr.mxu1 %v4971_v29  ;;  %v5062_v55 = vld [vmem:[#allocation4 + $0xa8] sm:$0xff]  ;;  %v5070_v58 = vld [vmem:[#allocation4 + $0xb0] sm:$0xff]  ;;  %v5076_v60 = vld [vmem:[#allocation4 + $0x98] sm:$0xff] }
  0x46   :  { %486 = vmatpush1.msra.mxu0 %v4975_v30  ;;  %557 = vmatpush1.msra.mxu1 %v4977_v31  ;;  %7063 = vst [vmem:[#allocation17_spill] sm:$0xff] %v5070_v58  ;;  %v5074_v59 = vld [vmem:[#allocation4 + $0x88] sm:$0xff]  ;;  %7065 = vst [vmem:[#allocation19_spill] sm:$0xff] %v5076_v60  ;;  %v5082_v61 = vld [vmem:[#allocation4 + $0x80] sm:$0xff] }
  0x47   :  { %487 = vmatprep.subr.mxu0 %v4981_v32  ;;  %558 = vmatprep.subr.mxu1 %v4983_v33  ;;  %7064 = vst [vmem:[#allocation18_spill] sm:$0xff] %v5074_v59  ;;  %7066 = vst [vmem:[#allocation20_spill] sm:$0xff] %v5082_v61  ;;  %v5084_v62 = vld [vmem:[#allocation4 + $0x90] sm:$0xff]  ;;  %v5093_v1 = vld [vmem:[#allocation4 + $0x68] sm:$0xff] }
  0x48   :  { %233 = vmatprep.mubr.f32.mxu0 %v6883_v0  ;;  %346 = vmatprep.mubr.f32.mxu1 %v6883_v0  ;;  %7067 = vst [vmem:[#allocation21_spill] sm:$0xff] %v5084_v62  ;;  %v94_v63 = vld [vmem:[%s6873_s0 + $0x30] sm:$0xff]  ;;  %7068 = vst [vmem:[#allocation22_spill] sm:$0xff] %v5093_v1  ;;  %v5095_v2 = vld [vmem:[#allocation4 + $0x78] sm:$0xff] }
  0x49   :  { %488 = vmatpush1.msra.mxu0 %v4989_v34  ;;  %559 = vmatpush1.msra.mxu1 %v4991_v35  ;;  %7069 = vst [vmem:[#allocation23_spill] sm:$0xff] %v5095_v2  ;;  %v5099_v3 = vld [vmem:[#allocation4 + $0x60] sm:$0xff]  ;;  %v5101_v4 = vld [vmem:[#allocation4 + $0x70] sm:$0xff]  ;;  %v5105_v5 = vld [vmem:[#allocation4 + $0x48] sm:$0xff] }
  0x4a   :  { %4249 = vmatmul.mubr.msk.f32.gmra.mxu0 %vm126_vm0, %v91_v36  ;;  %4257 = vmatmul.mubr.msk.f32.gmra.mxu1 %vm126_vm0, %v91_v36  ;;  %7070 = vst [vmem:[#allocation24_spill] sm:$0xff] %v5099_v3  ;;  %7071 = vst [vmem:[#allocation25_spill] sm:$0xff] %v5101_v4  ;;  %v5107_v6 = vld [vmem:[#allocation4 + $0x58] sm:$0xff]  ;;  %v5113_v7 = vld [vmem:[#allocation4 + $0x40] sm:$0xff] }
  0x4b   :  { %489 = vmatprep.subr.mxu0 %v5000_v37  ;;  %560 = vmatprep.subr.mxu1 %v5002_v38  ;;  %7072 = vst [vmem:[#allocation26_spill] sm:$0xff] %v5105_v5  ;;  %7073 = vst [vmem:[#allocation27_spill] sm:$0xff] %v5107_v6  ;;  %v5115_v8 = vld [vmem:[#allocation4 + $0x50] sm:$0xff]  ;;  %v95_v9 = vld [vmem:[%s6873_s0 + $0x38] sm:$0xff] }
  0x4c   :  { %490 = vmatpush1.msra.mxu0 %v5006_v39  ;;  %561 = vmatpush1.msra.mxu1 %v5008_v40  ;;  %7074 = vst [vmem:[#allocation28_spill] sm:$0xff] %v5113_v7  ;;  %7075 = vst [vmem:[#allocation29_spill] sm:$0xff] %v5115_v8  ;;  %v5124_v18 = vld [vmem:[#allocation4 + $0x28] sm:$0xff]  ;;  %v5126_v27 = vld [vmem:[#allocation4 + $0x38] sm:$0xff] }
  0x4d   :  { %491 = vmatprep.subr.mxu0 %v5012_v41  ;;  %562 = vmatprep.subr.mxu1 %v5014_v42  ;;  %7076 = vst [vmem:[#allocation30_spill] sm:$0xff] %v5124_v18  ;;  %7077 = vst [vmem:[#allocation31_spill] sm:$0xff] %v5126_v27  ;;  %v5130_v36 = vld [vmem:[#allocation4 + $0x20] sm:$0xff] }
  0x4e   :  { %239 = vmatprep.mubr.f32.mxu0 %v6883_v0  ;;  %352 = vmatprep.mubr.f32.mxu1 %v6883_v0  ;;  %7078 = vst [vmem:[#allocation32_spill] sm:$0xff] %v5130_v36 }
  0x4f   :  { %492 = vmatpush1.msra.mxu0 %v5020_v43  ;;  %563 = vmatpush1.msra.mxu1 %v5022_v44 }
  0x50   :  { %4250 = vmatmul.mubr.msk.f32.gmra.mxu0 %vm126_vm0, %v92_v45  ;;  %4258 = vmatmul.mubr.msk.f32.gmra.mxu1 %vm126_vm0, %v92_v45  ;;  %v5132_v45 = vld [vmem:[#allocation4 + $0x30] sm:$0xff] }
  0x51   :  { %493 = vmatprep.subr.mxu0 %v5031_v46  ;;  %564 = vmatprep.subr.mxu1 %v5033_v47  ;;  %7079 = vst [vmem:[#allocation33_spill] sm:$0xff] %v5132_v45 }
  0x52   :  { %494 = vmatpush1.msra.mxu0 %v5037_v48  ;;  %565 = vmatpush1.msra.mxu1 %v5039_v49 }
  0x53   :  { %495 = vmatprep.subr.mxu0 %v5043_v50  ;;  %566 = vmatprep.subr.mxu1 %v5045_v51 }
  0x54   :  { %245 = vmatprep.mubr.f32.mxu0 %v6883_v0  ;;  %358 = vmatprep.mubr.f32.mxu1 %v6883_v0 }
  0x55   :  { %496 = vmatpush1.msra.mxu0 %v5051_v52  ;;  %567 = vmatpush1.msra.mxu1 %v5053_v53 }
  0x56   :  { %4251 = vmatmul.mubr.msk.f32.gmra.mxu0 %vm126_vm0, %v93_v54  ;;  %4259 = vmatmul.mubr.msk.f32.gmra.mxu1 %vm126_vm0, %v93_v54  ;;  %v5136_v54 = vld [vmem:[#allocation4 + $0x8] sm:$0xff] }
  0x57   :  { %497 = vmatprep.subr.mxu0 %v5062_v55  ;;  %568 = vmatprep.subr.mxu1 %v5064_v56  ;;  %7080 = vst [vmem:[#allocation34_spill] sm:$0xff] %v5136_v54 }
  0x58   :  { %498 = vmatpush1.msra.mxu0 %v5068_v57  ;;  %569 = vmatpush1.msra.mxu1 %v5070_v58 }
  0x59   :  { %499 = vmatprep.subr.mxu0 %v5074_v59  ;;  %570 = vmatprep.subr.mxu1 %v5076_v60 }
  0x5a   :  { %251 = vmatprep.mubr.f32.mxu0 %v6883_v0  ;;  %364 = vmatprep.mubr.f32.mxu1 %v6883_v0 }
  0x5b   :  { %500 = vmatpush1.msra.mxu0 %v5082_v61  ;;  %571 = vmatpush1.msra.mxu1 %v5084_v62 }
  0x5c   :  { %4252 = vmatmul.mubr.msk.f32.gmra.mxu0 %vm126_vm0, %v94_v63  ;;  %4260 = vmatmul.mubr.msk.f32.gmra.mxu1 %vm126_vm0, %v94_v63  ;;  %v5138_v63 = vld [vmem:[#allocation4 + $0x18] sm:$0xff] }
  0x5d   :  { %501 = vmatprep.subr.mxu0 %v5093_v1  ;;  %572 = vmatprep.subr.mxu1 %v5095_v2  ;;  %7081 = vst [vmem:[#allocation35_spill] sm:$0xff] %v5138_v63 }
  0x5e   :  { %502 = vmatpush1.msra.mxu0 %v5099_v3  ;;  %573 = vmatpush1.msra.mxu1 %v5101_v4 }
  0x5f   :  { %503 = vmatprep.subr.mxu0 %v5105_v5  ;;  %574 = vmatprep.subr.mxu1 %v5107_v6 }
  0x60   :  { %257 = vmatprep.mubr.f32.mxu0 %v6883_v0  ;;  %370 = vmatprep.mubr.f32.mxu1 %v6883_v0  ;;  %v5142_v0 = vld [vmem:[#allocation4] sm:$0xff] }
  0x61   :  { %504 = vmatpush1.msra.mxu0 %v5113_v7  ;;  %575 = vmatpush1.msra.mxu1 %v5115_v8  ;;  %7082 = vst [vmem:[#allocation36_spill] sm:$0xff] %v5142_v0  ;;  %v5146_v8 = vld [vmem:[#allocation4 + $0x10] sm:$0xff] }
  0x62   :  { %4253 = vmatmul.mubr.msk.f32.gmra.mxu0 %vm126_vm0, %v95_v9  ;;  %4261 = vmatmul.mubr.msk.f32.gmra.mxu1 %vm126_vm0, %v95_v9  ;;  %7083 = vst [vmem:[#allocation37_spill] sm:$0xff] %v5146_v8  ;;  %v7084_v9 = vmov 0.0  }
  0x63   :  { %505 = vmatprep.subr.mxu0 %v5124_v18  ;;  %576 = vmatprep.subr.mxu1 %v5126_v27 }
  0x64   :  { %506 = vmatpush1.msra.mxu0 %v5130_v36  ;;  %577 = vmatpush1.msra.mxu1 %v5132_v45 }
  0x65   :  { %507 = vmatprep.subr.mxu0 %v5136_v54  ;;  %578 = vmatprep.subr.mxu1 %v5138_v63 }
  0x66   :  { %508 = vmatpush1.msra.mxu0 %v5142_v0  ;;  %541 = vmatprep.mubr.f32.mxu0 %v7084_v9 }
  0x67   :  { %579 = vmatpush1.msra.mxu1 %v5146_v8  ;;  %612 = vmatprep.mubr.f32.mxu1 %v7084_v9 }
  0x68   :  { %542 = vmatmul.mubr.f32.vlgmr.msra.gmra.mxu0 %v7084_v9  ;;  %613 = vmatmul.mubr.f32.vlgmr.msra.gmra.mxu1 %v7084_v9 }
  0x69   :  { %716 = vmatprep.subr.mxu0 %v4909_v10  ;;  %787 = vmatprep.subr.mxu1 %v4911_v11 }
  0x6a   :  { %717 = vmatpush1.msra.mxu0 %v4913_v12  ;;  %788 = vmatpush1.msra.mxu1 %v4915_v13 }
  0x6b   :  { %718 = vmatprep.subr.mxu0 %v4919_v14  ;;  %789 = vmatprep.subr.mxu1 %v4921_v15 }
  0x6c   :  { %719 = vmatpush1.msra.mxu0 %v4927_v16  ;;  %790 = vmatpush1.msra.mxu1 %v4929_v17 }
  0x6d   :  { %720 = vmatprep.subr.mxu0 %v4938_v19  ;;  %791 = vmatprep.subr.mxu1 %v4940_v20 }
  0x6e   :  { %721 = vmatpush1.msra.mxu0 %v4944_v21  ;;  %792 = vmatpush1.msra.mxu1 %v4946_v22 }
  0x6f   :  { %722 = vmatprep.subr.mxu0 %v4950_v23  ;;  %793 = vmatprep.subr.mxu1 %v4952_v24 }
  0x70   :  { %723 = vmatpush1.msra.mxu0 %v4958_v25  ;;  %794 = vmatpush1.msra.mxu1 %v4960_v26 }
  0x71   :  { %724 = vmatprep.subr.mxu0 %v4969_v28  ;;  %795 = vmatprep.subr.mxu1 %v4971_v29 }
  0x72   :  { %725 = vmatpush1.msra.mxu0 %v4975_v30  ;;  %796 = vmatpush1.msra.mxu1 %v4977_v31 }
  0x73   :  { %726 = vmatprep.subr.mxu0 %v4981_v32  ;;  %797 = vmatprep.subr.mxu1 %v4983_v33 }
  0x74   :  { %727 = vmatpush1.msra.mxu0 %v4989_v34  ;;  %798 = vmatpush1.msra.mxu1 %v4991_v35 }
  0x75   :  { %728 = vmatprep.subr.mxu0 %v5000_v37  ;;  %799 = vmatprep.subr.mxu1 %v5002_v38 }
  0x76   :  { %729 = vmatpush1.msra.mxu0 %v5006_v39  ;;  %800 = vmatpush1.msra.mxu1 %v5008_v40 }
  0x77   :  { %730 = vmatprep.subr.mxu0 %v5012_v41  ;;  %801 = vmatprep.subr.mxu1 %v5014_v42 }
  0x78   :  { %731 = vmatpush1.msra.mxu0 %v5020_v43  ;;  %802 = vmatpush1.msra.mxu1 %v5022_v44 }
  0x79   :  { %732 = vmatprep.subr.mxu0 %v5031_v46  ;;  %803 = vmatprep.subr.mxu1 %v5033_v47 }
  0x7a   :  { %733 = vmatpush1.msra.mxu0 %v5037_v48  ;;  %804 = vmatpush1.msra.mxu1 %v5039_v49 }
  0x7b   :  { %734 = vmatprep.subr.mxu0 %v5043_v50  ;;  %805 = vmatprep.subr.mxu1 %v5045_v51 }
  0x7c   :  { %735 = vmatpush1.msra.mxu0 %v5051_v52  ;;  %806 = vmatpush1.msra.mxu1 %v5053_v53 }
  0x7d   :  { %736 = vmatprep.subr.mxu0 %v5062_v55  ;;  %807 = vmatprep.subr.mxu1 %v5064_v56 }
  0x7e   :  { %737 = vmatpush1.msra.mxu0 %v5068_v57  ;;  %808 = vmatpush1.msra.mxu1 %v5070_v58 }
  0x7f   :  { %738 = vmatprep.subr.mxu0 %v5074_v59  ;;  %809 = vmatprep.subr.mxu1 %v5076_v60  ;;  %v7085_v59 = vld [vmem:[#allocation29_spill] sm:$0xff] }
  0x80   :  { %739 = vmatpush1.msra.mxu0 %v5082_v61  ;;  %810 = vmatpush1.msra.mxu1 %v5084_v62 }
  0x81   :  { %740 = vmatprep.subr.mxu0 %v5093_v1  ;;  %811 = vmatprep.subr.mxu1 %v5095_v2 }
  0x82   :  { %741 = vmatpush1.msra.mxu0 %v5099_v3  ;;  %812 = vmatpush1.msra.mxu1 %v5101_v4 }
  0x83   :  { %742 = vmatprep.subr.mxu0 %v5105_v5  ;;  %813 = vmatprep.subr.mxu1 %v5107_v6 }
  0x84   :  { %743 = vmatpush1.msra.mxu0 %v5113_v7  ;;  %814 = vmatpush1.msra.mxu1 %v7085_v59 }
  0x85   :  { %744 = vmatprep.subr.mxu0 %v5124_v18  ;;  %815 = vmatprep.subr.mxu1 %v5126_v27  ;;  %v106_v27 = vlaneseq }
  0x86   :  { %745 = vmatpush1.msra.mxu0 %v5130_v36  ;;  %816 = vmatpush1.msra.mxu1 %v5132_v45 }
  0x87   :  { %746 = vmatprep.subr.mxu0 %v5136_v54  ;;  %817 = vmatprep.subr.mxu1 %v5138_v63  ;;  %v5224_v36 = vshrl.u32 %v106_v27, 7 }
  0x88   :  { %747 = vmatpush1.msra.mxu0 %v5142_v0  ;;  %780 = vmatprep.mubr.f32.mxu0 %v7084_v9 }
  0x89   :  { %818 = vmatpush1.msra.mxu1 %v5146_v8  ;;  %851 = vmatprep.mubr.f32.mxu1 %v7084_v9  ;;  %7086 = vst [vmem:[#allocation38_spill] sm:$0xff] %v5224_v36  ;;  %v6904_v63 = vsub.s32 0, %v5224_v36  ;;  %v6906_v0 = vsub.s32 2, %v5224_v36  ;;  %v104_v8 = vld [vmem:[%s6876_s3] sm:$0xf]  ;;  %v6911_v27 = vsub.s32 3, %v5224_v36 }
  0x8a   :  { %955 = vmatprep.subr.mxu0 %v4909_v10  ;;  %1026 = vmatprep.subr.mxu1 %v4911_v11  ;;  %v6910_v11 = vsub.s32 1, %v5224_v36 }
  0x8b   :  { %v109_v18 = vrot.slane %v104_v8, %v6904_v63  ;;  %v5245_v59 = vrot.slane %v104_v8, %v6906_v0  ;;  %v5251_v4 = vrot.slane %v104_v8, %v6911_v27 }
  0x8c   :  { %v113_v5 = vrot.slane %v104_v8, %v6910_v11 }
  0xf8   :  { %v5226_v45 = vpop.f32.mrf.mxu0  ;;  %v5228_v54 = vpop.f32.mrf.mxu1 }
  0xfa   :  { %v5235_v9 = vpop.f32.mrf.mxu0  ;;  %v5237_v10 = vpop.f32.mrf.mxu1 }
  0xfe   :  { %v223_v7 = vpop.f32.mrf.mxu0  ;;  %v336_v6 = vpop.f32.mrf.mxu1 }
  0xff   :  { %v5253_v3 = vadd.f32 %v223_v7, %v109_v18  ;;  %v5256_v2 = vadd.f32 %v336_v6, %v5245_v59 }
 0x100   :  { %v225_v1 = vpop.f32.mrf.mxu0  ;;  %v338_v63 = vpop.f32.mrf.mxu1 }
 0x101   :  { %7087 = vst [vmem:[#allocation39_spill] sm:$0xff] %v5256_v2  ;;  %v5258_v62 = vadd.f32 %v225_v1, %v113_v5  ;;  %v5261_v0 = vadd.f32 %v338_v63, %v5251_v4 }
 0x103   :  { %7088 = vst [vmem:[#allocation40_spill] sm:$0xff] %v5258_v62  ;;  %7089 = vst [vmem:[#allocation41_spill] sm:$0xff] %v5261_v0 }
 0x104   :  { %v229_v61 = vpop.f32.mrf.mxu0  ;;  %v342_v60 = vpop.f32.mrf.mxu1 }
 0x105   :  { %v5263_v58 = vadd.f32 %v229_v61, %v109_v18  ;;  %v5266_v11 = vadd.f32 %v342_v60, %v5245_v59 }
 0x106   :  { %v231_v8 = vpop.f32.mrf.mxu0  ;;  %v344_v7 = vpop.f32.mrf.mxu1 }
 0x107   :  { %7090 = vst [vmem:[#allocation42_spill] sm:$0xff] %v5263_v58  ;;  %7091 = vst [vmem:[#allocation43_spill] sm:$0xff] %v5266_v11  ;;  %v5268_v27 = vadd.f32 %v231_v8, %v113_v5  ;;  %v5271_v6 = vadd.f32 %v344_v7, %v5251_v4 }
 0x109   :  { %7092 = vst [vmem:[#allocation44_spill] sm:$0xff] %v5268_v27  ;;  %7093 = vst [vmem:[#allocation45_spill] sm:$0xff] %v5271_v6 }
 0x10a   :  { %v235_v36 = vpop.f32.mrf.mxu0  ;;  %v348_v1 = vpop.f32.mrf.mxu1 }
 0x10b   :  { %v5273_v2 = vadd.f32 %v235_v36, %v109_v18  ;;  %v5276_v63 = vadd.f32 %v348_v1, %v5245_v59 }
 0x10c   :  { %v237_v0 = vpop.f32.mrf.mxu0  ;;  %v350_v61 = vpop.f32.mrf.mxu1 }
 0x10d   :  { %7094 = vst [vmem:[#allocation46_spill] sm:$0xff] %v5273_v2  ;;  %7095 = vst [vmem:[#allocation47_spill] sm:$0xff] %v5276_v63  ;;  %v5278_v58 = vadd.f32 %v237_v0, %v113_v5  ;;  %v5281_v60 = vadd.f32 %v350_v61, %v5251_v4 }
 0x10f   :  { %7096 = vst [vmem:[#allocation48_spill] sm:$0xff] %v5278_v58  ;;  %7097 = vst [vmem:[#allocation49_spill] sm:$0xff] %v5281_v60 }
 0x110   :  { %v241_v11 = vpop.f32.mrf.mxu0  ;;  %v354_v8 = vpop.f32.mrf.mxu1 }
 0x111   :  { %v5283_v27 = vadd.f32 %v241_v11, %v109_v18  ;;  %v5286_v7 = vadd.f32 %v354_v8, %v5245_v59 }
 0x112   :  { %v243_v6 = vpop.f32.mrf.mxu0  ;;  %v356_v36 = vpop.f32.mrf.mxu1 }
 0x113   :  { %7098 = vst [vmem:[#allocation50_spill] sm:$0xff] %v5283_v27  ;;  %7099 = vst [vmem:[#allocation51_spill] sm:$0xff] %v5286_v7  ;;  %v5288_v2 = vadd.f32 %v243_v6, %v113_v5  ;;  %v5291_v1 = vadd.f32 %v356_v36, %v5251_v4 }
 0x115   :  { %7100 = vst [vmem:[#allocation52_spill] sm:$0xff] %v5288_v2  ;;  %7101 = vst [vmem:[#allocation53_spill] sm:$0xff] %v5291_v1 }
 0x116   :  { %v247_v63 = vpop.f32.mrf.mxu0  ;;  %v360_v0 = vpop.f32.mrf.mxu1 }
 0x117   :  { %v5293_v58 = vadd.f32 %v247_v63, %v109_v18  ;;  %v5296_v61 = vadd.f32 %v360_v0, %v5245_v59 }
 0x118   :  { %v249_v60 = vpop.f32.mrf.mxu0  ;;  %v362_v11 = vpop.f32.mrf.mxu1 }
 0x119   :  { %7102 = vst [vmem:[#allocation54_spill] sm:$0xff] %v5293_v58  ;;  %7103 = vst [vmem:[#allocation55_spill] sm:$0xff] %v5296_v61  ;;  %v5298_v27 = vadd.f32 %v249_v60, %v113_v5  ;;  %v5301_v8 = vadd.f32 %v362_v11, %v5251_v4 }
 0x11b   :  { %7104 = vst [vmem:[#allocation56_spill] sm:$0xff] %v5298_v27  ;;  %7105 = vst [vmem:[#allocation57_spill] sm:$0xff] %v5301_v8 }
 0x11c   :  { %v253_v7 = vpop.f32.mrf.mxu0  ;;  %v366_v6 = vpop.f32.mrf.mxu1 }
 0x11d   :  { %v5303_v2 = vadd.f32 %v253_v7, %v109_v18  ;;  %v5306_v36 = vadd.f32 %v366_v6, %v5245_v59 }
 0x11e   :  { %v255_v1 = vpop.f32.mrf.mxu0  ;;  %v368_v63 = vpop.f32.mrf.mxu1 }
 0x11f   :  { %7106 = vst [vmem:[#allocation58_spill] sm:$0xff] %v5303_v2  ;;  %7107 = vst [vmem:[#allocation59_spill] sm:$0xff] %v5306_v36  ;;  %v5308_v58 = vadd.f32 %v255_v1, %v113_v5  ;;  %v5311_v0 = vadd.f32 %v368_v63, %v5251_v4  ;;  %v218_v1 = vadd.f32 %v5226_v45, %v109_v18 }
 0x120   :  { %v220_v63 = vadd.f32 %v5235_v9, %v113_v5 }
 0x121   :  { %7108 = vst [vmem:[#allocation60_spill] sm:$0xff] %v5308_v58  ;;  %7109 = vst [vmem:[#allocation61_spill] sm:$0xff] %v5311_v0 }
 0x122   :  { %v259_v61 = vpop.f32.mrf.mxu0  ;;  %v372_v60 = vpop.f32.mrf.mxu1 }
 0x123   :  { %v5313_v27 = vadd.f32 %v259_v61, %v109_v18  ;;  %v5316_v11 = vadd.f32 %v372_v60, %v5245_v59 }
 0x124   :  { %v261_v8 = vpop.f32.mrf.mxu0  ;;  %v374_v7 = vpop.f32.mrf.mxu1 }
 0x125   :  { %7110 = vst [vmem:[#allocation62_spill] sm:$0xff] %v5313_v27  ;;  %7111 = vst [vmem:[#allocation63_spill] sm:$0xff] %v5316_v11  ;;  %v5318_v2 = vadd.f32 %v261_v8, %v113_v5  ;;  %v5321_v6 = vadd.f32 %v374_v7, %v5251_v4  ;;  %v333_v8 = vadd.f32 %v5237_v10, %v5251_v4 }
 0x126   :  { %v331_v7 = vadd.f32 %v5228_v54, %v5245_v59 }
 0x127   :  { %7112 = vst [vmem:[#allocation64_spill] sm:$0xff] %v5318_v2  ;;  %7113 = vst [vmem:[#allocation65_spill] sm:$0xff] %v5321_v6 }
 0x128   :  { %v543_v36 = vpop.f32.mrf.mxu0  ;;  %v614_v27 = vpop.f32.mrf.mxu1 }
 0x129   :  { %v619_v0 = vadd.f32 %v543_v36, %v218_v1  ;;  %v621_v6 = vadd.f32 %v614_v27, %v331_v7 }
 0x12a   :  { %v545_v58 = vpop.f32.mrf.mxu0  ;;  %v616_v11 = vpop.f32.mrf.mxu1 }
 0x12b   :  { %v4262_v62 = vmul.f32 -1.442695, %v619_v0  ;;  %v620_v61 = vadd.f32 %v545_v58, %v220_v63  ;;  %v622_v2 = vadd.f32 %v616_v11, %v333_v8 }
 0x12d   :  { %4375 = vpow2.f32 %v4262_v62  ;;  %v4263_v60 = vmul.f32 -1.442695, %v620_v61  ;;  %v4264_v18 = vmul.f32 -1.442695, %v622_v2 }
 0x12f   :  { %4377 = vpow2.f32 %v4263_v60 }
 0x130   :  { %4379 = vpow2.f32 %v4264_v18 }
 0x13a   :  { %v4376_v45 = vpop.eup %4375 }
 0x13b   :  { %v626_v5 = vadd.f32 1.0, %v4376_v45 }
 0x13c   :  { %v4378_v9 = vpop.eup %4377 }
 0x13d   :  { %4381 = vrcp.f32 %v626_v5  ;;  %v632_v58 = vadd.f32 1.0, %v4378_v9  ;;  %v4380_v62 = vpop.eup %4379  ;;  %v5414_v9 = vld [vmem:[#allocation4 + $0x1e8] sm:$0xff] }
 0x13e   :  { %4383 = vtanh.f32 %v621_v6  ;;  %v639_v63 = vadd.f32 1.0, %v4380_v62  ;;  %v5420_v62 = vld [vmem:[#allocation4 + $0x1e0] sm:$0xff] }
 0x13f   :  { %4385 = vrcp.f32 %v632_v58  ;;  %v5416_v58 = vld [vmem:[#allocation4 + $0x1f8] sm:$0xff] }
 0x140   :  { %4387 = vrcp.f32 %v639_v63  ;;  %v5432_v63 = vld [vmem:[#allocation4 + $0x1c0] sm:$0xff] }
 0x14a   :  { %v4382_v36 = vpop.eup %4381 }
 0x14b   :  { %v4384_v0 = vpop.eup %4383 }
 0x14c   :  { %v4386_v1 = vpop.eup %4385  ;;  %v643_v10 = vmul.f32 %v4384_v0, %v4382_v36  ;;  %v5422_v36 = vld [vmem:[#allocation4 + $0x1f0] sm:$0xff]  ;;  %v5426_v0 = vld [vmem:[#allocation4 + $0x1c8] sm:$0xff] }
 0x14d   :  { %v642_v4 = vmul.f32 0.0, %v4386_v1  ;;  %v4388_v59 = vpop.eup %4387  ;;  %v5428_v1 = vld [vmem:[#allocation4 + $0x1d8] sm:$0xff] }
 0x14f   :  { %v5329_v11 = vadd.f32 %v643_v10, %v642_v4  ;;  %v5434_v4 = vld [vmem:[#allocation4 + $0x1d0] sm:$0xff]  ;;  %v5438_v10 = vld [vmem:[#allocation4 + $0x1a8] sm:$0xff] }
 0x151   :  { %4389 = vtanh.f32 %v5329_v11 }
 0x15e   :  { %v4390_v2 = vpop.eup %4389 }
 0x15f   :  { %v5332_v54 = vmul.f32 %v4390_v2, %v4388_v59  ;;  %v5444_v59 = vld [vmem:[#allocation4 + $0x1a0] sm:$0xff]  ;;  %v5446_v2 = vld [vmem:[#allocation4 + $0x1b0] sm:$0xff] }
 0x161   :  { %7114 = vst [vmem:[#allocation66_spill] sm:$0xff] %v5332_v54  ;;  %781 = vmatmul.mubr.f32.vlgmr.msra.gmra.mxu0 %v5332_v54  ;;  %852 = vmatmul.mubr.f32.vlgmr.msra.gmra.mxu1 %v5332_v54  ;;  %v5592_v54 = vld [vmem:[#allocation4 + $0x18] sm:$0xff] }
 0x162   :  { %956 = vmatpush1.msra.mxu0 %v4913_v12  ;;  %1027 = vmatpush1.msra.mxu1 %v4915_v13  ;;  %v7115_v12 = vld [vmem:[#allocation17_spill] sm:$0xff]  ;;  %v7116_v13 = vld [vmem:[#allocation18_spill] sm:$0xff] }
 0x163   :  { %957 = vmatprep.subr.mxu0 %v4919_v14  ;;  %1028 = vmatprep.subr.mxu1 %v4921_v15  ;;  %v7117_v14 = vld [vmem:[#allocation19_spill] sm:$0xff]  ;;  %v7118_v15 = vld [vmem:[#allocation20_spill] sm:$0xff]  ;;  %7141 = vst [vmem:[#allocation18_spill] sm:$0xff] %v5414_v9 }
 0x164   :  { %958 = vmatpush1.msra.mxu0 %v4927_v16  ;;  %1029 = vmatpush1.msra.mxu1 %v4929_v17  ;;  %v7119_v16 = vld [vmem:[#allocation21_spill] sm:$0xff]  ;;  %v7120_v17 = vld [vmem:[#allocation22_spill] sm:$0xff]  ;;  %7142 = vst [vmem:[#allocation19_spill] sm:$0xff] %v5416_v58 }
 0x165   :  { %959 = vmatprep.subr.mxu0 %v4938_v19  ;;  %1030 = vmatprep.subr.mxu1 %v4940_v20  ;;  %v7121_v19 = vld [vmem:[#allocation23_spill] sm:$0xff]  ;;  %v7122_v20 = vld [vmem:[#allocation24_spill] sm:$0xff] }
 0x166   :  { %960 = vmatpush1.msra.mxu0 %v4944_v21  ;;  %1031 = vmatpush1.msra.mxu1 %v4946_v22  ;;  %v7123_v21 = vld [vmem:[#allocation25_spill] sm:$0xff]  ;;  %v7124_v22 = vld [vmem:[#allocation26_spill] sm:$0xff] }
 0x167   :  { %961 = vmatprep.subr.mxu0 %v4950_v23  ;;  %1032 = vmatprep.subr.mxu1 %v4952_v24  ;;  %v7125_v23 = vld [vmem:[#allocation27_spill] sm:$0xff]  ;;  %v7126_v24 = vld [vmem:[#allocation28_spill] sm:$0xff] }
 0x168   :  { %962 = vmatpush1.msra.mxu0 %v4958_v25  ;;  %1033 = vmatpush1.msra.mxu1 %v4960_v26  ;;  %v7127_v25 = vld [vmem:[#allocation29_spill] sm:$0xff]  ;;  %v7128_v26 = vld [vmem:[#allocation30_spill] sm:$0xff] }
 0x169   :  { %963 = vmatprep.subr.mxu0 %v4969_v28  ;;  %1034 = vmatprep.subr.mxu1 %v4971_v29  ;;  %v7129_v28 = vld [vmem:[#allocation31_spill] sm:$0xff]  ;;  %v7130_v29 = vld [vmem:[#allocation32_spill] sm:$0xff] }
 0x16a   :  { %964 = vmatpush1.msra.mxu0 %v4975_v30  ;;  %1035 = vmatpush1.msra.mxu1 %v4977_v31  ;;  %v7131_v30 = vld [vmem:[#allocation33_spill] sm:$0xff]  ;;  %v7132_v31 = vld [vmem:[#allocation34_spill] sm:$0xff] }
 0x16b   :  { %965 = vmatprep.subr.mxu0 %v4981_v32  ;;  %1036 = vmatprep.subr.mxu1 %v4983_v33  ;;  %v7133_v32 = vld [vmem:[#allocation35_spill] sm:$0xff]  ;;  %v7134_v33 = vld [vmem:[#allocation36_spill] sm:$0xff]  ;;  %7157 = vst [vmem:[#allocation34_spill] sm:$0xff] %v5592_v54 }
 0x16c   :  { %966 = vmatpush1.msra.mxu0 %v4989_v34  ;;  %1037 = vmatpush1.msra.mxu1 %v4991_v35  ;;  %v7135_v34 = vmov 0.0   ;;  %v7136_v35 = vld [vmem:[#allocation37_spill] sm:$0xff] }
 0x16d   :  { %967 = vmatprep.subr.mxu0 %v5000_v37  ;;  %1038 = vmatprep.subr.mxu1 %v5002_v38 }
 0x16e   :  { %968 = vmatpush1.msra.mxu0 %v5006_v39  ;;  %1039 = vmatpush1.msra.mxu1 %v5008_v40 }
 0x16f   :  { %969 = vmatprep.subr.mxu0 %v5012_v41  ;;  %1040 = vmatprep.subr.mxu1 %v5014_v42  ;;  %v7137_v41 = vld [vmem:[#allocation40_spill] sm:$0xff] }
 0x170   :  { %970 = vmatpush1.msra.mxu0 %v5020_v43  ;;  %1041 = vmatpush1.msra.mxu1 %v5022_v44 }
 0x171   :  { %971 = vmatprep.subr.mxu0 %v5031_v46  ;;  %1042 = vmatprep.subr.mxu1 %v5033_v47  ;;  %v7138_v47 = vld [vmem:[#allocation41_spill] sm:$0xff] }
 0x172   :  { %972 = vmatpush1.msra.mxu0 %v5037_v48  ;;  %1043 = vmatpush1.msra.mxu1 %v5039_v49  ;;  %v7139_v49 = vld [vmem:[#allocation39_spill] sm:$0xff] }
 0x173   :  { %973 = vmatprep.subr.mxu0 %v5043_v50  ;;  %1044 = vmatprep.subr.mxu1 %v5045_v51 }
 0x174   :  { %974 = vmatpush1.msra.mxu0 %v5051_v52  ;;  %1045 = vmatpush1.msra.mxu1 %v5053_v53 }
 0x175   :  { %975 = vmatprep.subr.mxu0 %v5062_v55  ;;  %1046 = vmatprep.subr.mxu1 %v5064_v56 }
 0x176   :  { %976 = vmatpush1.msra.mxu0 %v5068_v57  ;;  %1047 = vmatpush1.msra.mxu1 %v7115_v12  ;;  %v5450_v12 = vld [vmem:[#allocation4 + $0x188] sm:$0xff] }
 0x177   :  { %977 = vmatprep.subr.mxu0 %v7116_v13  ;;  %1048 = vmatprep.subr.mxu1 %v7117_v14  ;;  %v5452_v13 = vld [vmem:[#allocation4 + $0x198] sm:$0xff]  ;;  %v5456_v14 = vld [vmem:[#allocation4 + $0x180] sm:$0xff] }
 0x178   :  { %978 = vmatpush1.msra.mxu0 %v7118_v15  ;;  %1049 = vmatpush1.msra.mxu1 %v7119_v16  ;;  %v5458_v15 = vld [vmem:[#allocation4 + $0x190] sm:$0xff]  ;;  %v5462_v16 = vld [vmem:[#allocation4 + $0x168] sm:$0xff] }
 0x179   :  { %979 = vmatprep.subr.mxu0 %v7120_v17  ;;  %1050 = vmatprep.subr.mxu1 %v7121_v19  ;;  %v5464_v17 = vld [vmem:[#allocation4 + $0x178] sm:$0xff]  ;;  %v5468_v19 = vld [vmem:[#allocation4 + $0x160] sm:$0xff] }
 0x17a   :  { %980 = vmatpush1.msra.mxu0 %v7122_v20  ;;  %1051 = vmatpush1.msra.mxu1 %v7123_v21  ;;  %v5470_v20 = vld [vmem:[#allocation4 + $0x170] sm:$0xff]  ;;  %v5474_v21 = vld [vmem:[#allocation4 + $0x148] sm:$0xff] }
 0x17b   :  { %981 = vmatprep.subr.mxu0 %v7124_v22  ;;  %1052 = vmatprep.subr.mxu1 %v7125_v23  ;;  %v5476_v22 = vld [vmem:[#allocation4 + $0x158] sm:$0xff]  ;;  %v5480_v23 = vld [vmem:[#allocation4 + $0x140] sm:$0xff] }
 0x17c   :  { %982 = vmatpush1.msra.mxu0 %v7126_v24  ;;  %1053 = vmatpush1.msra.mxu1 %v7127_v25  ;;  %v5482_v24 = vld [vmem:[#allocation4 + $0x150] sm:$0xff]  ;;  %v5486_v25 = vld [vmem:[#allocation4 + $0x128] sm:$0xff] }
 0x17d   :  { %983 = vmatprep.subr.mxu0 %v7128_v26  ;;  %1054 = vmatprep.subr.mxu1 %v7129_v28  ;;  %v5488_v26 = vld [vmem:[#allocation4 + $0x138] sm:$0xff]  ;;  %v5492_v28 = vld [vmem:[#allocation4 + $0x120] sm:$0xff] }
 0x17e   :  { %984 = vmatpush1.msra.mxu0 %v7130_v29  ;;  %1055 = vmatpush1.msra.mxu1 %v7131_v30  ;;  %v5494_v29 = vld [vmem:[#allocation4 + $0x130] sm:$0xff]  ;;  %v5498_v30 = vld [vmem:[#allocation4 + $0x108] sm:$0xff] }
 0x17f   :  { %985 = vmatprep.subr.mxu0 %v7132_v31  ;;  %1056 = vmatprep.subr.mxu1 %v7133_v32  ;;  %v5500_v31 = vld [vmem:[#allocation4 + $0x118] sm:$0xff]  ;;  %v5502_v32 = vld [vmem:[#allocation4 + $0x100] sm:$0xff] }
 0x180   :  { %986 = vmatpush1.msra.mxu0 %v7134_v33  ;;  %1019 = vmatprep.mubr.f32.mxu0 %v7135_v34  ;;  %v5506_v33 = vld [vmem:[#allocation4 + $0x110] sm:$0xff] }
 0x181   :  { %1057 = vmatpush1.msra.mxu1 %v7136_v35  ;;  %1090 = vmatprep.mubr.f32.mxu1 %v7135_v34  ;;  %v5508_v35 = vld [vmem:[#allocation4 + $0xe8] sm:$0xff] }
 0x182   :  { %1194 = vmatprep.subr.mxu0 %v5414_v9  ;;  %1265 = vmatprep.subr.mxu1 %v5416_v58 }
 0x221   :  { %v782_v37 = vpop.f32.mrf.mxu0  ;;  %v853_v43 = vpop.f32.mrf.mxu1 }
 0x222   :  { %v858_v38 = vadd.f32 %v782_v37, %v5253_v3  ;;  %v860_v50 = vadd.f32 %v853_v43, %v7139_v49  ;;  %v5510_v37 = vld [vmem:[#allocation4 + $0xf8] sm:$0xff]  ;;  %v5526_v43 = vld [vmem:[#allocation4 + $0xd0] sm:$0xff]  ;;  %v5542_v49 = vld [vmem:[#allocation4 + $0x88] sm:$0xff] }
 0x223   :  { %v784_v39 = vpop.f32.mrf.mxu0  ;;  %v855_v46 = vpop.f32.mrf.mxu1 }
 0x224   :  { %v4265_v40 = vmul.f32 -1.442695, %v858_v38  ;;  %v859_v42 = vadd.f32 %v784_v39, %v7137_v41  ;;  %v861_v48 = vadd.f32 %v855_v46, %v7138_v47  ;;  %v5514_v38 = vld [vmem:[#allocation4 + $0xe0] sm:$0xff]  ;;  %v5516_v39 = vld [vmem:[#allocation4 + $0xf0] sm:$0xff]  ;;  %v5522_v41 = vld [vmem:[#allocation4 + $0xd8] sm:$0xff] }
 0x225   :  { %v5532_v46 = vld [vmem:[#allocation4 + $0xb8] sm:$0xff]  ;;  %v5536_v47 = vld [vmem:[#allocation4 + $0xa0] sm:$0xff] }
 0x226   :  { %4391 = vpow2.f32 %v4265_v40  ;;  %v4266_v44 = vmul.f32 -1.442695, %v859_v42  ;;  %v4267_v51 = vmul.f32 -1.442695, %v861_v48  ;;  %v5518_v40 = vld [vmem:[#allocation4 + $0xc8] sm:$0xff]  ;;  %v5524_v42 = vld [vmem:[#allocation4 + $0xc0] sm:$0xff] }
 0x227   :  { %v5538_v48 = vld [vmem:[#allocation4 + $0xb0] sm:$0xff] }
 0x228   :  { %4393 = vpow2.f32 %v4266_v44  ;;  %v5530_v44 = vld [vmem:[#allocation4 + $0xa8] sm:$0xff] }
 0x229   :  { %4395 = vtanh.f32 %v860_v50  ;;  %v5544_v50 = vld [vmem:[#allocation4 + $0x98] sm:$0xff] }
 0x22a   :  { %4397 = vpow2.f32 %v4267_v51  ;;  %v5548_v51 = vld [vmem:[#allocation4 + $0x80] sm:$0xff] }
 0x233   :  { %v4392_v52 = vpop.eup %4391 }
 0x234   :  { %v865_v53 = vadd.f32 1.0, %v4392_v52  ;;  %v5550_v52 = vld [vmem:[#allocation4 + $0x90] sm:$0xff] }
 0x235   :  { %v4394_v55 = vpop.eup %4393  ;;  %7143 = vst [vmem:[#allocation20_spill] sm:$0xff] %v5550_v52 }
 0x236   :  { %4399 = vrcp.f32 %v865_v53  ;;  %v871_v56 = vadd.f32 1.0, %v4394_v55  ;;  %v4396_v57 = vpop.eup %4395  ;;  %v5554_v53 = vld [vmem:[#allocation4 + $0x68] sm:$0xff]  ;;  %v5556_v55 = vld [vmem:[#allocation4 + $0x78] sm:$0xff] }
 0x237   :  { %v4398_v3 = vpop.eup %4397  ;;  %7144 = vst [vmem:[#allocation21_spill] sm:$0xff] %v5554_v53  ;;  %7145 = vst [vmem:[#allocation22_spill] sm:$0xff] %v5556_v55 }
 0x238   :  { %4401 = vrcp.f32 %v871_v56  ;;  %v878_v60 = vadd.f32 1.0, %v4398_v3  ;;  %v5560_v56 = vld [vmem:[#allocation4 + $0x60] sm:$0xff]  ;;  %v5566_v3 = vld [vmem:[#allocation4 + $0x48] sm:$0xff] }
 0x239   :  { %7146 = vst [vmem:[#allocation23_spill] sm:$0xff] %v5560_v56  ;;  %7148 = vst [vmem:[#allocation25_spill] sm:$0xff] %v5566_v3 }
 0x23a   :  { %4403 = vrcp.f32 %v878_v60  ;;  %v5578_v60 = vld [vmem:[#allocation4 + $0x28] sm:$0xff] }
 0x23b   :  { %7152 = vst [vmem:[#allocation29_spill] sm:$0xff] %v5578_v60 }
 0x243   :  { %v4400_v27 = vpop.eup %4399 }
 0x244   :  { %v882_v6 = vmul.f32 %v4400_v27, %v4396_v57  ;;  %v5562_v57 = vld [vmem:[#allocation4 + $0x70] sm:$0xff]  ;;  %v5568_v27 = vld [vmem:[#allocation4 + $0x58] sm:$0xff] }
 0x245   :  { %v4402_v61 = vpop.eup %4401  ;;  %7147 = vst [vmem:[#allocation24_spill] sm:$0xff] %v5562_v57  ;;  %7149 = vst [vmem:[#allocation26_spill] sm:$0xff] %v5568_v27 }
 0x246   :  { %v881_v8 = vmul.f32 %v4402_v61, %v5329_v11  ;;  %v5440_v11 = vld [vmem:[#allocation4 + $0x1b8] sm:$0xff]  ;;  %v5574_v61 = vld [vmem:[#allocation4 + $0x50] sm:$0xff] }
 0x247   :  { %v4404_v18 = vpop.eup %4403  ;;  %7151 = vst [vmem:[#allocation28_spill] sm:$0xff] %v5574_v61 }
 0x248   :  { %v5405_v7 = vadd.f32 %v882_v6, %v881_v8  ;;  %v5572_v6 = vld [vmem:[#allocation4 + $0x40] sm:$0xff]  ;;  %v5580_v8 = vld [vmem:[#allocation4 + $0x38] sm:$0xff] }
 0x249   :  { %7150 = vst [vmem:[#allocation27_spill] sm:$0xff] %v5572_v6  ;;  %7153 = vst [vmem:[#allocation30_spill] sm:$0xff] %v5580_v8 }
 0x24a   :  { %4405 = vtanh.f32 %v5405_v7 }
 0x257   :  { %v4406_v45 = vpop.eup %4405 }
 0x258   :  { %v5408_v5 = vmul.f32 %v4406_v45, %v4404_v18  ;;  %v5584_v18 = vld [vmem:[#allocation4 + $0x20] sm:$0xff]  ;;  %v5586_v45 = vld [vmem:[#allocation4 + $0x30] sm:$0xff] }
 0x259   :  { %7154 = vst [vmem:[#allocation31_spill] sm:$0xff] %v5584_v18  ;;  %7155 = vst [vmem:[#allocation32_spill] sm:$0xff] %v5586_v45 }
 0x25a   :  { %7140 = vst [vmem:[#allocation17_spill] sm:$0xff] %v5408_v5  ;;  %1020 = vmatmul.mubr.f32.vlgmr.msra.gmra.mxu0 %v5408_v5  ;;  %1091 = vmatmul.mubr.f32.vlgmr.msra.gmra.mxu1 %v5408_v5  ;;  %v5590_v5 = vld [vmem:[#allocation4 + $0x8] sm:$0xff] }
 0x25b   :  { %1258 = vmatprep.mubr.f32.mxu0 %v7135_v34  ;;  %1329 = vmatprep.mubr.f32.mxu1 %v7135_v34  ;;  %7156 = vst [vmem:[#allocation33_spill] sm:$0xff] %v5590_v5  ;;  %v5596_v34 = vld [vmem:[#allocation4] sm:$0xff] }
 0x25c   :  { %1195 = vmatpush1.msra.mxu0 %v5420_v62  ;;  %1266 = vmatpush1.msra.mxu1 %v5422_v36  ;;  %7158 = vst [vmem:[#allocation35_spill] sm:$0xff] %v5596_v34 }
 0x25d   :  { %1196 = vmatprep.subr.mxu0 %v5426_v0  ;;  %1267 = vmatprep.subr.mxu1 %v5428_v1 }
 0x25e   :  { %1197 = vmatpush1.msra.mxu0 %v5432_v63  ;;  %1268 = vmatpush1.msra.mxu1 %v5434_v4 }
 0x25f   :  { %1198 = vmatprep.subr.mxu0 %v5438_v10  ;;  %1269 = vmatprep.subr.mxu1 %v5440_v11 }
 0x260   :  { %1199 = vmatpush1.msra.mxu0 %v5444_v59  ;;  %1270 = vmatpush1.msra.mxu1 %v5446_v2 }
 0x261   :  { %1200 = vmatprep.subr.mxu0 %v5450_v12  ;;  %1271 = vmatprep.subr.mxu1 %v5452_v13 }
 0x262   :  { %1201 = vmatpush1.msra.mxu0 %v5456_v14  ;;  %1272 = vmatpush1.msra.mxu1 %v5458_v15 }
 0x263   :  { %1202 = vmatprep.subr.mxu0 %v5462_v16  ;;  %1273 = vmatprep.subr.mxu1 %v5464_v17 }
 0x264   :  { %1203 = vmatpush1.msra.mxu0 %v5468_v19  ;;  %1274 = vmatpush1.msra.mxu1 %v5470_v20 }
 0x265   :  { %1204 = vmatprep.subr.mxu0 %v5474_v21  ;;  %1275 = vmatprep.subr.mxu1 %v5476_v22 }
 0x266   :  { %1205 = vmatpush1.msra.mxu0 %v5480_v23  ;;  %1276 = vmatpush1.msra.mxu1 %v5482_v24 }
 0x267   :  { %1206 = vmatprep.subr.mxu0 %v5486_v25  ;;  %1277 = vmatprep.subr.mxu1 %v5488_v26 }
 0x268   :  { %1207 = vmatpush1.msra.mxu0 %v5492_v28  ;;  %1278 = vmatpush1.msra.mxu1 %v5494_v29 }
 0x269   :  { %1208 = vmatprep.subr.mxu0 %v5498_v30  ;;  %1279 = vmatprep.subr.mxu1 %v5500_v31 }
 0x26a   :  { %1209 = vmatpush1.msra.mxu0 %v5502_v32  ;;  %1280 = vmatpush1.msra.mxu1 %v5506_v33 }
 0x26b   :  { %1210 = vmatprep.subr.mxu0 %v5508_v35  ;;  %1281 = vmatprep.subr.mxu1 %v5510_v37 }
 0x26c   :  { %1211 = vmatpush1.msra.mxu0 %v5514_v38  ;;  %1282 = vmatpush1.msra.mxu1 %v5516_v39 }
 0x26d   :  { %1212 = vmatprep.subr.mxu0 %v5518_v40  ;;  %1283 = vmatprep.subr.mxu1 %v5522_v41 }
 0x26e   :  { %1213 = vmatpush1.msra.mxu0 %v5524_v42  ;;  %1284 = vmatpush1.msra.mxu1 %v5526_v43 }
 0x26f   :  { %1214 = vmatprep.subr.mxu0 %v5530_v44  ;;  %1285 = vmatprep.subr.mxu1 %v5532_v46 }
 0x270   :  { %1215 = vmatpush1.msra.mxu0 %v5536_v47  ;;  %1286 = vmatpush1.msra.mxu1 %v5538_v48 }
 0x271   :  { %1216 = vmatprep.subr.mxu0 %v5542_v49  ;;  %1287 = vmatprep.subr.mxu1 %v5544_v50 }
 0x272   :  { %1217 = vmatpush1.msra.mxu0 %v5548_v51  ;;  %1288 = vmatpush1.msra.mxu1 %v5550_v52 }
 0x273   :  { %1218 = vmatprep.subr.mxu0 %v5554_v53  ;;  %1289 = vmatprep.subr.mxu1 %v5556_v55  ;;  %v7163_v55 = vld [vmem:[#allocation43_spill] sm:$0xff] }
 0x274   :  { %1219 = vmatpush1.msra.mxu0 %v5560_v56  ;;  %1290 = vmatpush1.msra.mxu1 %v5562_v57  ;;  %v7162_v56 = vld [vmem:[#allocation45_spill] sm:$0xff] }
 0x275   :  { %1220 = vmatprep.subr.mxu0 %v5566_v3  ;;  %1291 = vmatprep.subr.mxu1 %v5568_v27  ;;  %v5598_v3 = vld [vmem:[#allocation4 + $0x10] sm:$0xff] }
 0x276   :  { %1221 = vmatpush1.msra.mxu0 %v5572_v6  ;;  %1292 = vmatpush1.msra.mxu1 %v5574_v61  ;;  %7159 = vst [vmem:[#allocation36_spill] sm:$0xff] %v5598_v3 }
 0x277   :  { %1222 = vmatprep.subr.mxu0 %v5578_v60  ;;  %1293 = vmatprep.subr.mxu1 %v5580_v8  ;;  %v7160_v60 = vld [vmem:[#allocation42_spill] sm:$0xff] }
 0x278   :  { %1223 = vmatpush1.msra.mxu0 %v5584_v18  ;;  %1294 = vmatpush1.msra.mxu1 %v5586_v45  ;;  %v7161_v18 = vld [vmem:[#allocation44_spill] sm:$0xff] }
 0x279   :  { %1224 = vmatprep.subr.mxu0 %v5590_v5  ;;  %1295 = vmatprep.subr.mxu1 %v5592_v54 }
 0x27a   :  { %1225 = vmatpush1.msra.mxu0 %v5596_v34  ;;  %1296 = vmatpush1.msra.mxu1 %v5598_v3 }
 0x27b   :  { %1433 = vmatprep.subr.mxu0 %v5414_v9  ;;  %1504 = vmatprep.subr.mxu1 %v5416_v58 }
 0x31a   :  { %v1021_v8 = vpop.f32.mrf.mxu0  ;;  %v1092_v45 = vpop.f32.mrf.mxu1 }
 0x31b   :  { %v1097_v61 = vadd.f32 %v1021_v8, %v7160_v60  ;;  %v1099_v3 = vadd.f32 %v1092_v45, %v7163_v55  ;;  %v7171_v45 = vld [vmem:[#allocation26_spill] sm:$0xff] }
 0x31c   :  { %v1023_v6 = vpop.f32.mrf.mxu0  ;;  %v1094_v54 = vpop.f32.mrf.mxu1 }
 0x31d   :  { %v4268_v27 = vmul.f32 -1.442695, %v1097_v61  ;;  %v1098_v57 = vadd.f32 %v1023_v6, %v7161_v18  ;;  %v1100_v34 = vadd.f32 %v1094_v54, %v7162_v56  ;;  %v7169_v56 = vld [vmem:[#allocation24_spill] sm:$0xff] }
 0x31f   :  { %4407 = vpow2.f32 %v4268_v27  ;;  %v4269_v5 = vmul.f32 -1.442695, %v1098_v57  ;;  %v4270_v53 = vmul.f32 -1.442695, %v1100_v34 }
 0x321   :  { %4409 = vpow2.f32 %v4269_v5 }
 0x322   :  { %4411 = vtanh.f32 %v1099_v3  ;;  %v7170_v3 = vld [vmem:[#allocation25_spill] sm:$0xff] }
 0x323   :  { %4413 = vpow2.f32 %v4270_v53  ;;  %v7168_v53 = vld [vmem:[#allocation23_spill] sm:$0xff] }
 0x32c   :  { %v4408_v9 = vpop.eup %4407 }
 0x32d   :  { %v1104_v52 = vadd.f32 1.0, %v4408_v9 }
 0x32e   :  { %v4410_v58 = vpop.eup %4409 }
 0x32f   :  { %4415 = vrcp.f32 %v1104_v52  ;;  %v1110_v60 = vadd.f32 1.0, %v4410_v58  ;;  %v4412_v61 = vpop.eup %4411  ;;  %v7166_v58 = vld [vmem:[#allocation21_spill] sm:$0xff]  ;;  %v7167_v52 = vld [vmem:[#allocation22_spill] sm:$0xff] }
 0x330   :  { %v4414_v6 = vpop.eup %4413 }
 0x331   :  { %4417 = vrcp.f32 %v1110_v60  ;;  %v1117_v5 = vadd.f32 1.0, %v4414_v6  ;;  %v7172_v60 = vld [vmem:[#allocation27_spill] sm:$0xff]  ;;  %v7174_v6 = vld [vmem:[#allocation29_spill] sm:$0xff] }
 0x333   :  { %4419 = vrcp.f32 %v1117_v5  ;;  %v7178_v5 = vld [vmem:[#allocation33_spill] sm:$0xff] }
 0x33c   :  { %v4416_v27 = vpop.eup %4415 }
 0x33d   :  { %v1121_v8 = vmul.f32 %v4416_v27, %v4412_v61  ;;  %v7173_v61 = vld [vmem:[#allocation28_spill] sm:$0xff]  ;;  %v7175_v27 = vld [vmem:[#allocation30_spill] sm:$0xff] }
 0x33e   :  { %v4418_v57 = vpop.eup %4417 }
 0x33f   :  { %v1120_v18 = vmul.f32 %v4418_v57, %v5405_v7  ;;  %v7165_v7 = vld [vmem:[#allocation20_spill] sm:$0xff] }
 0x340   :  { %v4420_v34 = vpop.eup %4419  ;;  %v7177_v57 = vld [vmem:[#allocation32_spill] sm:$0xff] }
 0x341   :  { %v5613_v54 = vadd.f32 %v1121_v8, %v1120_v18  ;;  %v7176_v8 = vld [vmem:[#allocation31_spill] sm:$0xff]  ;;  %v7179_v18 = vld [vmem:[#allocation34_spill] sm:$0xff] }
 0x343   :  { %4421 = vtanh.f32 %v5613_v54 }
 0x350   :  { %v4422_v9 = vpop.eup %4421 }
 0x351   :  { %v5616_v55 = vmul.f32 %v4422_v9, %v4420_v34  ;;  %v7180_v34 = vld [vmem:[#allocation35_spill] sm:$0xff]  ;;  %v7181_v9 = vmov 0.0  }
 0x353   :  { %7164 = vst [vmem:[#allocation37_spill] sm:$0xff] %v5616_v55  ;;  %1259 = vmatmul.mubr.f32.vlgmr.msra.gmra.mxu0 %v5616_v55  ;;  %1330 = vmatmul.mubr.f32.vlgmr.msra.gmra.mxu1 %v5616_v55  ;;  %v7182_v55 = vld [vmem:[#allocation36_spill] sm:$0xff] }
 0x354   :  { %1434 = vmatpush1.msra.mxu0 %v5420_v62  ;;  %1505 = vmatpush1.msra.mxu1 %v5422_v36 }
 0x355   :  { %1435 = vmatprep.subr.mxu0 %v5426_v0  ;;  %1506 = vmatprep.subr.mxu1 %v5428_v1 }
 0x356   :  { %1436 = vmatpush1.msra.mxu0 %v5432_v63  ;;  %1507 = vmatpush1.msra.mxu1 %v5434_v4 }
 0x357   :  { %1437 = vmatprep.subr.mxu0 %v5438_v10  ;;  %1508 = vmatprep.subr.mxu1 %v5440_v11 }
 0x358   :  { %1438 = vmatpush1.msra.mxu0 %v5444_v59  ;;  %1509 = vmatpush1.msra.mxu1 %v5446_v2 }
 0x359   :  { %1439 = vmatprep.subr.mxu0 %v5450_v12  ;;  %1510 = vmatprep.subr.mxu1 %v5452_v13 }
 0x35a   :  { %1440 = vmatpush1.msra.mxu0 %v5456_v14  ;;  %1511 = vmatpush1.msra.mxu1 %v5458_v15 }
 0x35b   :  { %1441 = vmatprep.subr.mxu0 %v5462_v16  ;;  %1512 = vmatprep.subr.mxu1 %v5464_v17 }
 0x35c   :  { %1442 = vmatpush1.msra.mxu0 %v5468_v19  ;;  %1513 = vmatpush1.msra.mxu1 %v5470_v20 }
 0x35d   :  { %1443 = vmatprep.subr.mxu0 %v5474_v21  ;;  %1514 = vmatprep.subr.mxu1 %v5476_v22 }
 0x35e   :  { %1444 = vmatpush1.msra.mxu0 %v5480_v23  ;;  %1515 = vmatpush1.msra.mxu1 %v5482_v24 }
 0x35f   :  { %1445 = vmatprep.subr.mxu0 %v5486_v25  ;;  %1516 = vmatprep.subr.mxu1 %v5488_v26 }
 0x360   :  { %1446 = vmatpush1.msra.mxu0 %v5492_v28  ;;  %1517 = vmatpush1.msra.mxu1 %v5494_v29 }
 0x361   :  { %1447 = vmatprep.subr.mxu0 %v5498_v30  ;;  %1518 = vmatprep.subr.mxu1 %v5500_v31 }
 0x362   :  { %1448 = vmatpush1.msra.mxu0 %v5502_v32  ;;  %1519 = vmatpush1.msra.mxu1 %v5506_v33 }
 0x363   :  { %1449 = vmatprep.subr.mxu0 %v5508_v35  ;;  %1520 = vmatprep.subr.mxu1 %v5510_v37 }
 0x364   :  { %1450 = vmatpush1.msra.mxu0 %v5514_v38  ;;  %1521 = vmatpush1.msra.mxu1 %v5516_v39 }
 0x365   :  { %1451 = vmatprep.subr.mxu0 %v5518_v40  ;;  %1522 = vmatprep.subr.mxu1 %v5522_v41 }
 0x366   :  { %1452 = vmatpush1.msra.mxu0 %v5524_v42  ;;  %1523 = vmatpush1.msra.mxu1 %v5526_v43 }
 0x367   :  { %1453 = vmatprep.subr.mxu0 %v5530_v44  ;;  %1524 = vmatprep.subr.mxu1 %v5532_v46 }
 0x368   :  { %1454 = vmatpush1.msra.mxu0 %v5536_v47  ;;  %1525 = vmatpush1.msra.mxu1 %v5538_v48 }
 0x369   :  { %1455 = vmatprep.subr.mxu0 %v5542_v49  ;;  %1526 = vmatprep.subr.mxu1 %v5544_v50 }
 0x36a   :  { %1456 = vmatpush1.msra.mxu0 %v5548_v51  ;;  %1527 = vmatpush1.msra.mxu1 %v7165_v7 }
 0x36b   :  { %1457 = vmatprep.subr.mxu0 %v7166_v58  ;;  %1528 = vmatprep.subr.mxu1 %v7167_v52  ;;  %v7188_v52 = vld [vmem:[#allocation47_spill] sm:$0xff] }
 0x36c   :  { %1458 = vmatpush1.msra.mxu0 %v7168_v53  ;;  %1529 = vmatpush1.msra.mxu1 %v7169_v56  ;;  %v7187_v53 = vld [vmem:[#allocation49_spill] sm:$0xff] }
 0x36d   :  { %1459 = vmatprep.subr.mxu0 %v7170_v3  ;;  %1530 = vmatprep.subr.mxu1 %v7171_v45 }
 0x36e   :  { %1460 = vmatpush1.msra.mxu0 %v7172_v60  ;;  %1531 = vmatpush1.msra.mxu1 %v7173_v61  ;;  %v7183_v61 = vld [vmem:[#allocation18_spill] sm:$0xff] }
 0x36f   :  { %1461 = vmatprep.subr.mxu0 %v7174_v6  ;;  %1532 = vmatprep.subr.mxu1 %v7175_v27  ;;  %v7184_v6 = vld [vmem:[#allocation19_spill] sm:$0xff] }
 0x370   :  { %1462 = vmatpush1.msra.mxu0 %v7176_v8  ;;  %1533 = vmatpush1.msra.mxu1 %v7177_v57  ;;  %v7185_v8 = vld [vmem:[#allocation46_spill] sm:$0xff] }
 0x371   :  { %1463 = vmatprep.subr.mxu0 %v7178_v5  ;;  %1534 = vmatprep.subr.mxu1 %v7179_v18  ;;  %v7186_v5 = vld [vmem:[#allocation48_spill] sm:$0xff] }
 0x372   :  { %1464 = vmatpush1.msra.mxu0 %v7180_v34  ;;  %1497 = vmatprep.mubr.f32.mxu0 %v7181_v9 }
 0x373   :  { %1535 = vmatpush1.msra.mxu1 %v7182_v55  ;;  %1568 = vmatprep.mubr.f32.mxu1 %v7181_v9 }
 0x374   :  { %1672 = vmatprep.subr.mxu0 %v7183_v61  ;;  %1743 = vmatprep.subr.mxu1 %v7184_v6 }
 0x413   :  { %v1260_v27 = vpop.f32.mrf.mxu0  ;;  %v1331_v18 = vpop.f32.mrf.mxu1 }
 0x414   :  { %v1336_v60 = vadd.f32 %v1260_v27, %v7185_v8  ;;  %v1338_v9 = vadd.f32 %v1331_v18, %v7188_v52  ;;  %v7195_v18 = vld [vmem:[#allocation25_spill] sm:$0xff] }
 0x415   :  { %v1262_v57 = vpop.f32.mrf.mxu0  ;;  %v1333_v56 = vpop.f32.mrf.mxu1 }
 0x416   :  { %v4271_v45 = vmul.f32 -1.442695, %v1336_v60  ;;  %v1337_v3 = vadd.f32 %v1262_v57, %v7186_v5  ;;  %v1339_v55 = vadd.f32 %v1333_v56, %v7187_v53 }
 0x418   :  { %4423 = vpow2.f32 %v4271_v45  ;;  %v4272_v34 = vmul.f32 -1.442695, %v1337_v3  ;;  %v4273_v58 = vmul.f32 -1.442695, %v1339_v55 }
 0x41a   :  { %4425 = vpow2.f32 %v4272_v34 }
 0x41b   :  { %4427 = vtanh.f32 %v1338_v9  ;;  %v7196_v9 = vld [vmem:[#allocation26_spill] sm:$0xff] }
 0x41c   :  { %4429 = vpow2.f32 %v4273_v58  ;;  %v7192_v58 = vld [vmem:[#allocation22_spill] sm:$0xff] }
 0x425   :  { %v4424_v61 = vpop.eup %4423 }
 0x426   :  { %v1343_v7 = vadd.f32 1.0, %v4424_v61  ;;  %v7193_v61 = vld [vmem:[#allocation23_spill] sm:$0xff] }
 0x427   :  { %v4426_v6 = vpop.eup %4425 }
 0x428   :  { %4431 = vrcp.f32 %v1343_v7  ;;  %v1349_v27 = vadd.f32 1.0, %v4426_v6  ;;  %v4428_v60 = vpop.eup %4427  ;;  %v7191_v7 = vld [vmem:[#allocation21_spill] sm:$0xff]  ;;  %v7194_v6 = vld [vmem:[#allocation24_spill] sm:$0xff] }
 0x429   :  { %v4430_v8 = vpop.eup %4429 }
 0x42a   :  { %4433 = vrcp.f32 %v1349_v27  ;;  %v1356_v5 = vadd.f32 1.0, %v4430_v8  ;;  %v7197_v27 = vld [vmem:[#allocation27_spill] sm:$0xff]  ;;  %v7199_v8 = vld [vmem:[#allocation29_spill] sm:$0xff] }
 0x42c   :  { %4435 = vrcp.f32 %v1356_v5  ;;  %v7203_v5 = vld [vmem:[#allocation33_spill] sm:$0xff] }
 0x435   :  { %v4432_v45 = vpop.eup %4431 }
 0x436   :  { %v1360_v57 = vmul.f32 %v4432_v45, %v4428_v60  ;;  %v7198_v60 = vld [vmem:[#allocation28_spill] sm:$0xff]  ;;  %v7200_v45 = vld [vmem:[#allocation30_spill] sm:$0xff] }
 0x437   :  { %v4434_v3 = vpop.eup %4433 }
 0x438   :  { %v1359_v34 = vmul.f32 %v4434_v3, %v5613_v54  ;;  %v7190_v54 = vld [vmem:[#allocation20_spill] sm:$0xff] }
 0x439   :  { %v4436_v55 = vpop.eup %4435  ;;  %v7202_v3 = vld [vmem:[#allocation32_spill] sm:$0xff] }
 0x43a   :  { %v5691_v53 = vadd.f32 %v1360_v57, %v1359_v34  ;;  %v7201_v57 = vld [vmem:[#allocation31_spill] sm:$0xff]  ;;  %v7204_v34 = vld [vmem:[#allocation34_spill] sm:$0xff] }
 0x43c   :  { %4437 = vtanh.f32 %v5691_v53 }
 0x449   :  { %v4438_v52 = vpop.eup %4437 }
 0x44a   :  { %v5694_v56 = vmul.f32 %v4438_v52, %v4436_v55  ;;  %v7205_v55 = vld [vmem:[#allocation35_spill] sm:$0xff]  ;;  %v7206_v52 = vmov 0.0  }
 0x44c   :  { %7189 = vst [vmem:[#allocation40_spill] sm:$0xff] %v5694_v56  ;;  %1498 = vmatmul.mubr.f32.vlgmr.msra.gmra.mxu0 %v5694_v56  ;;  %1569 = vmatmul.mubr.f32.vlgmr.msra.gmra.mxu1 %v5694_v56  ;;  %v7207_v56 = vld [vmem:[#allocation36_spill] sm:$0xff] }
 0x44d   :  { %1673 = vmatpush1.msra.mxu0 %v5420_v62  ;;  %1744 = vmatpush1.msra.mxu1 %v5422_v36 }
 0x44e   :  { %1674 = vmatprep.subr.mxu0 %v5426_v0  ;;  %1745 = vmatprep.subr.mxu1 %v5428_v1 }
 0x44f   :  { %1675 = vmatpush1.msra.mxu0 %v5432_v63  ;;  %1746 = vmatpush1.msra.mxu1 %v5434_v4 }
 0x450   :  { %1676 = vmatprep.subr.mxu0 %v5438_v10  ;;  %1747 = vmatprep.subr.mxu1 %v5440_v11 }
 0x451   :  { %1677 = vmatpush1.msra.mxu0 %v5444_v59  ;;  %1748 = vmatpush1.msra.mxu1 %v5446_v2 }
 0x452   :  { %1678 = vmatprep.subr.mxu0 %v5450_v12  ;;  %1749 = vmatprep.subr.mxu1 %v5452_v13 }
 0x453   :  { %1679 = vmatpush1.msra.mxu0 %v5456_v14  ;;  %1750 = vmatpush1.msra.mxu1 %v5458_v15 }
 0x454   :  { %1680 = vmatprep.subr.mxu0 %v5462_v16  ;;  %1751 = vmatprep.subr.mxu1 %v5464_v17 }
 0x455   :  { %1681 = vmatpush1.msra.mxu0 %v5468_v19  ;;  %1752 = vmatpush1.msra.mxu1 %v5470_v20 }
 0x456   :  { %1682 = vmatprep.subr.mxu0 %v5474_v21  ;;  %1753 = vmatprep.subr.mxu1 %v5476_v22 }
 0x457   :  { %1683 = vmatpush1.msra.mxu0 %v5480_v23  ;;  %1754 = vmatpush1.msra.mxu1 %v5482_v24 }
 0x458   :  { %1684 = vmatprep.subr.mxu0 %v5486_v25  ;;  %1755 = vmatprep.subr.mxu1 %v5488_v26 }
 0x459   :  { %1685 = vmatpush1.msra.mxu0 %v5492_v28  ;;  %1756 = vmatpush1.msra.mxu1 %v5494_v29 }
 0x45a   :  { %1686 = vmatprep.subr.mxu0 %v5498_v30  ;;  %1757 = vmatprep.subr.mxu1 %v5500_v31 }
 0x45b   :  { %1687 = vmatpush1.msra.mxu0 %v5502_v32  ;;  %1758 = vmatpush1.msra.mxu1 %v5506_v33 }
 0x45c   :  { %1688 = vmatprep.subr.mxu0 %v5508_v35  ;;  %1759 = vmatprep.subr.mxu1 %v5510_v37 }
 0x45d   :  { %1689 = vmatpush1.msra.mxu0 %v5514_v38  ;;  %1760 = vmatpush1.msra.mxu1 %v5516_v39 }
 0x45e   :  { %1690 = vmatprep.subr.mxu0 %v5518_v40  ;;  %1761 = vmatprep.subr.mxu1 %v5522_v41 }
 0x45f   :  { %1691 = vmatpush1.msra.mxu0 %v5524_v42  ;;  %1762 = vmatpush1.msra.mxu1 %v5526_v43 }
 0x460   :  { %1692 = vmatprep.subr.mxu0 %v5530_v44  ;;  %1763 = vmatprep.subr.mxu1 %v5532_v46 }
 0x461   :  { %1693 = vmatpush1.msra.mxu0 %v5536_v47  ;;  %1764 = vmatpush1.msra.mxu1 %v5538_v48 }
 0x462   :  { %1694 = vmatprep.subr.mxu0 %v5542_v49  ;;  %1765 = vmatprep.subr.mxu1 %v5544_v50 }
 0x463   :  { %1695 = vmatpush1.msra.mxu0 %v5548_v51  ;;  %1766 = vmatpush1.msra.mxu1 %v7190_v54 }
 0x464   :  { %1696 = vmatprep.subr.mxu0 %v7191_v7  ;;  %1767 = vmatprep.subr.mxu1 %v7192_v58  ;;  %v7213_v58 = vld [vmem:[#allocation51_spill] sm:$0xff] }
 0x465   :  { %1697 = vmatpush1.msra.mxu0 %v7193_v61  ;;  %1768 = vmatpush1.msra.mxu1 %v7194_v6  ;;  %v7212_v61 = vld [vmem:[#allocation53_spill] sm:$0xff] }
 0x466   :  { %1698 = vmatprep.subr.mxu0 %v7195_v18  ;;  %1769 = vmatprep.subr.mxu1 %v7196_v9 }
 0x467   :  { %1699 = vmatpush1.msra.mxu0 %v7197_v27  ;;  %1770 = vmatpush1.msra.mxu1 %v7198_v60  ;;  %v7208_v60 = vld [vmem:[#allocation18_spill] sm:$0xff] }
 0x468   :  { %1700 = vmatprep.subr.mxu0 %v7199_v8  ;;  %1771 = vmatprep.subr.mxu1 %v7200_v45  ;;  %v7209_v8 = vld [vmem:[#allocation19_spill] sm:$0xff] }
 0x469   :  { %1701 = vmatpush1.msra.mxu0 %v7201_v57  ;;  %1772 = vmatpush1.msra.mxu1 %v7202_v3  ;;  %v7210_v57 = vld [vmem:[#allocation50_spill] sm:$0xff] }
 0x46a   :  { %1702 = vmatprep.subr.mxu0 %v7203_v5  ;;  %1773 = vmatprep.subr.mxu1 %v7204_v34  ;;  %v7211_v5 = vld [vmem:[#allocation52_spill] sm:$0xff] }
 0x46b   :  { %1703 = vmatpush1.msra.mxu0 %v7205_v55  ;;  %1736 = vmatprep.mubr.f32.mxu0 %v7206_v52 }
 0x46c   :  { %1774 = vmatpush1.msra.mxu1 %v7207_v56  ;;  %1807 = vmatprep.mubr.f32.mxu1 %v7206_v52 }
 0x46d   :  { %1911 = vmatprep.subr.mxu0 %v7208_v60  ;;  %1982 = vmatprep.subr.mxu1 %v7209_v8 }
 0x50c   :  { %v1499_v45 = vpop.f32.mrf.mxu0  ;;  %v1570_v34 = vpop.f32.mrf.mxu1 }
 0x50d   :  { %v1575_v27 = vadd.f32 %v1499_v45, %v7210_v57  ;;  %v1577_v52 = vadd.f32 %v1570_v34, %v7213_v58  ;;  %v2147_v34 = vld [vmem:[#allocation4 + $0x1e8] sm:$0xff] }
 0x50e   :  { %v1501_v3 = vpop.f32.mrf.mxu0  ;;  %v1572_v6 = vpop.f32.mrf.mxu1 }
 0x50f   :  { %v4274_v9 = vmul.f32 -1.442695, %v1575_v27  ;;  %v1576_v18 = vadd.f32 %v1501_v3, %v7211_v5  ;;  %v1578_v56 = vadd.f32 %v1572_v6, %v7212_v61 }
 0x511   :  { %4439 = vpow2.f32 %v4274_v9  ;;  %v4275_v55 = vmul.f32 -1.442695, %v1576_v18  ;;  %v4276_v7 = vmul.f32 -1.442695, %v1578_v56 }
 0x513   :  { %4441 = vpow2.f32 %v4275_v55 }
 0x514   :  { %4443 = vtanh.f32 %v1577_v52  ;;  %v2149_v52 = vld [vmem:[#allocation4 + $0x1f8] sm:$0xff] }
 0x515   :  { %4445 = vpow2.f32 %v4276_v7 }
 0x51e   :  { %v4440_v60 = vpop.eup %4439 }
 0x51f   :  { %v1582_v54 = vadd.f32 1.0, %v4440_v60  ;;  %v2146_v60 = vld [vmem:[#allocation4 + $0x1e0] sm:$0xff] }
 0x520   :  { %v4442_v8 = vpop.eup %4441 }
 0x521   :  { %4447 = vrcp.f32 %v1582_v54  ;;  %v1588_v45 = vadd.f32 1.0, %v4442_v8  ;;  %v4444_v27 = vpop.eup %4443  ;;  %v2148_v8 = vld [vmem:[#allocation4 + $0x1f0] sm:$0xff] }
 0x522   :  { %v4446_v57 = vpop.eup %4445 }
 0x523   :  { %4449 = vrcp.f32 %v1588_v45  ;;  %v1595_v5 = vadd.f32 1.0, %v4446_v57  ;;  %v2143_v45 = vld [vmem:[#allocation4 + $0x1c8] sm:$0xff]  ;;  %v2142_v57 = vld [vmem:[#allocation4 + $0x1c0] sm:$0xff] }
 0x525   :  { %4451 = vrcp.f32 %v1595_v5  ;;  %v2138_v5 = vld [vmem:[#allocation4 + $0x1a0] sm:$0xff] }
 0x52e   :  { %v4448_v9 = vpop.eup %4447 }
 0x52f   :  { %v1599_v3 = vmul.f32 %v4448_v9, %v4444_v27  ;;  %v2145_v27 = vld [vmem:[#allocation4 + $0x1d8] sm:$0xff]  ;;  %v2144_v9 = vld [vmem:[#allocation4 + $0x1d0] sm:$0xff] }
 0x530   :  { %v4450_v18 = vpop.eup %4449 }
 0x531   :  { %v1598_v55 = vmul.f32 %v4450_v18, %v5691_v53  ;;  %v2141_v18 = vld [vmem:[#allocation4 + $0x1b8] sm:$0xff] }
 0x532   :  { %v4452_v56 = vpop.eup %4451 }
 0x533   :  { %v5769_v61 = vadd.f32 %v1599_v3, %v1598_v55  ;;  %v2139_v3 = vld [vmem:[#allocation4 + $0x1a8] sm:$0xff]  ;;  %v2140_v55 = vld [vmem:[#allocation4 + $0x1b0] sm:$0xff] }
 0x535   :  { %4453 = vtanh.f32 %v5769_v61 }
 0x542   :  { %v4454_v58 = vpop.eup %4453 }
 0x543   :  { %v5772_v6 = vmul.f32 %v4454_v58, %v4452_v56  ;;  %v2137_v56 = vld [vmem:[#allocation4 + $0x198] sm:$0xff]  ;;  %v2134_v58 = vld [vmem:[#allocation4 + $0x180] sm:$0xff] }
 0x545   :  { %1737 = vmatmul.mubr.f32.vlgmr.msra.gmra.mxu0 %v5772_v6  ;;  %1808 = vmatmul.mubr.f32.vlgmr.msra.gmra.mxu1 %v5772_v6 }
 0x546   :  { %1912 = vmatpush1.msra.mxu0 %v5420_v62  ;;  %1983 = vmatpush1.msra.mxu1 %v5422_v36  ;;  %v7214_v62 = vld [vmem:[#allocation20_spill] sm:$0xff]  ;;  %v7215_v36 = vld [vmem:[#allocation21_spill] sm:$0xff] }
 0x547   :  { %1913 = vmatprep.subr.mxu0 %v5426_v0  ;;  %1984 = vmatprep.subr.mxu1 %v5428_v1  ;;  %v7216_v0 = vld [vmem:[#allocation22_spill] sm:$0xff]  ;;  %v7217_v1 = vld [vmem:[#allocation23_spill] sm:$0xff] }
 0x548   :  { %1914 = vmatpush1.msra.mxu0 %v5432_v63  ;;  %1985 = vmatpush1.msra.mxu1 %v5434_v4  ;;  %v7218_v63 = vld [vmem:[#allocation24_spill] sm:$0xff]  ;;  %v7219_v4 = vld [vmem:[#allocation25_spill] sm:$0xff] }
 0x549   :  { %1915 = vmatprep.subr.mxu0 %v5438_v10  ;;  %1986 = vmatprep.subr.mxu1 %v5440_v11  ;;  %v7220_v10 = vld [vmem:[#allocation26_spill] sm:$0xff]  ;;  %v7221_v11 = vld [vmem:[#allocation27_spill] sm:$0xff] }
 0x54a   :  { %1916 = vmatpush1.msra.mxu0 %v5444_v59  ;;  %1987 = vmatpush1.msra.mxu1 %v5446_v2  ;;  %v7222_v59 = vld [vmem:[#allocation28_spill] sm:$0xff]  ;;  %v7223_v2 = vld [vmem:[#allocation29_spill] sm:$0xff] }
 0x54b   :  { %1917 = vmatprep.subr.mxu0 %v5450_v12  ;;  %1988 = vmatprep.subr.mxu1 %v5452_v13  ;;  %v7224_v12 = vld [vmem:[#allocation30_spill] sm:$0xff]  ;;  %v7225_v13 = vld [vmem:[#allocation31_spill] sm:$0xff] }
 0x54c   :  { %1918 = vmatpush1.msra.mxu0 %v5456_v14  ;;  %1989 = vmatpush1.msra.mxu1 %v5458_v15  ;;  %v7226_v14 = vld [vmem:[#allocation32_spill] sm:$0xff]  ;;  %v7227_v15 = vld [vmem:[#allocation33_spill] sm:$0xff] }
 0x54d   :  { %1919 = vmatprep.subr.mxu0 %v5462_v16  ;;  %1990 = vmatprep.subr.mxu1 %v5464_v17  ;;  %v7228_v16 = vld [vmem:[#allocation34_spill] sm:$0xff]  ;;  %v7229_v17 = vld [vmem:[#allocation35_spill] sm:$0xff] }
 0x54e   :  { %1920 = vmatpush1.msra.mxu0 %v5468_v19  ;;  %1991 = vmatpush1.msra.mxu1 %v5470_v20  ;;  %v7230_v19 = vmov 0.0   ;;  %v7231_v20 = vld [vmem:[#allocation36_spill] sm:$0xff] }
 0x54f   :  { %1921 = vmatprep.subr.mxu0 %v5474_v21  ;;  %1992 = vmatprep.subr.mxu1 %v5476_v22  ;;  %v7232_v22 = vld [vmem:[#allocation54_spill] sm:$0xff] }
 0x550   :  { %1922 = vmatpush1.msra.mxu0 %v5480_v23  ;;  %1993 = vmatpush1.msra.mxu1 %v5482_v24 }
 0x551   :  { %1923 = vmatprep.subr.mxu0 %v5486_v25  ;;  %1994 = vmatprep.subr.mxu1 %v5488_v26  ;;  %v7233_v26 = vld [vmem:[#allocation56_spill] sm:$0xff] }
 0x552   :  { %1924 = vmatpush1.msra.mxu0 %v5492_v28  ;;  %1995 = vmatpush1.msra.mxu1 %v5494_v29 }
 0x553   :  { %1925 = vmatprep.subr.mxu0 %v5498_v30  ;;  %1996 = vmatprep.subr.mxu1 %v5500_v31 }
 0x554   :  { %1926 = vmatpush1.msra.mxu0 %v5502_v32  ;;  %1997 = vmatpush1.msra.mxu1 %v5506_v33  ;;  %v7234_v32 = vld [vmem:[#allocation57_spill] sm:$0xff] }
 0x555   :  { %1927 = vmatprep.subr.mxu0 %v5508_v35  ;;  %1998 = vmatprep.subr.mxu1 %v5510_v37  ;;  %v7235_v35 = vld [vmem:[#allocation55_spill] sm:$0xff] }
 0x556   :  { %1928 = vmatpush1.msra.mxu0 %v5514_v38  ;;  %1999 = vmatpush1.msra.mxu1 %v5516_v39 }
 0x557   :  { %1929 = vmatprep.subr.mxu0 %v5518_v40  ;;  %2000 = vmatprep.subr.mxu1 %v5522_v41 }
 0x558   :  { %1930 = vmatpush1.msra.mxu0 %v5524_v42  ;;  %2001 = vmatpush1.msra.mxu1 %v5526_v43 }
 0x559   :  { %1931 = vmatprep.subr.mxu0 %v5530_v44  ;;  %2002 = vmatprep.subr.mxu1 %v5532_v46 }
 0x55a   :  { %1932 = vmatpush1.msra.mxu0 %v5536_v47  ;;  %2003 = vmatpush1.msra.mxu1 %v5538_v48 }
 0x55b   :  { %1933 = vmatprep.subr.mxu0 %v5542_v49  ;;  %2004 = vmatprep.subr.mxu1 %v5544_v50 }
 0x55c   :  { %1934 = vmatpush1.msra.mxu0 %v5548_v51  ;;  %2005 = vmatpush1.msra.mxu1 %v7214_v62  ;;  %v2136_v62 = vld [vmem:[#allocation4 + $0x190] sm:$0xff] }
 0x55d   :  { %1935 = vmatprep.subr.mxu0 %v7215_v36  ;;  %2006 = vmatprep.subr.mxu1 %v7216_v0  ;;  %v2131_v36 = vld [vmem:[#allocation4 + $0x168] sm:$0xff]  ;;  %v2133_v0 = vld [vmem:[#allocation4 + $0x178] sm:$0xff] }
 0x55e   :  { %1936 = vmatpush1.msra.mxu0 %v7217_v1  ;;  %2007 = vmatpush1.msra.mxu1 %v7218_v63  ;;  %v2130_v1 = vld [vmem:[#allocation4 + $0x160] sm:$0xff]  ;;  %v2132_v63 = vld [vmem:[#allocation4 + $0x170] sm:$0xff] }
 0x55f   :  { %1937 = vmatprep.subr.mxu0 %v7219_v4  ;;  %2008 = vmatprep.subr.mxu1 %v7220_v10  ;;  %v2127_v4 = vld [vmem:[#allocation4 + $0x148] sm:$0xff]  ;;  %v2129_v10 = vld [vmem:[#allocation4 + $0x158] sm:$0xff] }
 0x560   :  { %1938 = vmatpush1.msra.mxu0 %v7221_v11  ;;  %2009 = vmatpush1.msra.mxu1 %v7222_v59  ;;  %v2126_v11 = vld [vmem:[#allocation4 + $0x140] sm:$0xff]  ;;  %v2128_v59 = vld [vmem:[#allocation4 + $0x150] sm:$0xff] }
 0x561   :  { %1939 = vmatprep.subr.mxu0 %v7223_v2  ;;  %2010 = vmatprep.subr.mxu1 %v7224_v12  ;;  %v2123_v2 = vld [vmem:[#allocation4 + $0x128] sm:$0xff]  ;;  %v2125_v12 = vld [vmem:[#allocation4 + $0x138] sm:$0xff] }
 0x562   :  { %1940 = vmatpush1.msra.mxu0 %v7225_v13  ;;  %2011 = vmatpush1.msra.mxu1 %v7226_v14  ;;  %v2122_v13 = vld [vmem:[#allocation4 + $0x120] sm:$0xff]  ;;  %v2124_v14 = vld [vmem:[#allocation4 + $0x130] sm:$0xff] }
 0x563   :  { %1941 = vmatprep.subr.mxu0 %v7227_v15  ;;  %2012 = vmatprep.subr.mxu1 %v7228_v16  ;;  %v2119_v15 = vld [vmem:[#allocation4 + $0x108] sm:$0xff]  ;;  %v2121_v16 = vld [vmem:[#allocation4 + $0x118] sm:$0xff] }
 0x564   :  { %1942 = vmatpush1.msra.mxu0 %v7229_v17  ;;  %1975 = vmatprep.mubr.f32.mxu0 %v7230_v19  ;;  %v2118_v17 = vld [vmem:[#allocation4 + $0x100] sm:$0xff] }
 0x565   :  { %2013 = vmatpush1.msra.mxu1 %v7231_v20  ;;  %2046 = vmatprep.mubr.f32.mxu1 %v7230_v19  ;;  %v2120_v20 = vld [vmem:[#allocation4 + $0x110] sm:$0xff] }
 0x566   :  { %2150 = vmatprep.subr.mxu0 %v2147_v34  ;;  %2221 = vmatprep.subr.mxu1 %v2149_v52  ;;  %v2087_v34 = vld [vmem:[#allocation4 + $0x8] sm:$0xff]  ;;  %v2089_v52 = vld [vmem:[#allocation4 + $0x18] sm:$0xff] }
 0x605   :  { %v1738_v21 = vpop.f32.mrf.mxu0  ;;  %v1809_v29 = vpop.f32.mrf.mxu1 }
 0x606   :  { %v1814_v23 = vadd.f32 %v1738_v21, %v7232_v22  ;;  %v1816_v37 = vadd.f32 %v1809_v29, %v7235_v35  ;;  %v2115_v21 = vld [vmem:[#allocation4 + $0xe8] sm:$0xff]  ;;  %v2117_v22 = vld [vmem:[#allocation4 + $0xf8] sm:$0xff]  ;;  %v2112_v29 = vld [vmem:[#allocation4 + $0xd0] sm:$0xff] }
 0x607   :  { %v1740_v24 = vpop.f32.mrf.mxu0  ;;  %v1811_v31 = vpop.f32.mrf.mxu1  ;;  %v2103_v35 = vld [vmem:[#allocation4 + $0x88] sm:$0xff] }
 0x608   :  { %v4277_v25 = vmul.f32 -1.442695, %v1814_v23  ;;  %v1815_v28 = vadd.f32 %v1740_v24, %v7233_v26  ;;  %v1817_v33 = vadd.f32 %v1811_v31, %v7234_v32  ;;  %v2114_v23 = vld [vmem:[#allocation4 + $0xe0] sm:$0xff]  ;;  %v2116_v24 = vld [vmem:[#allocation4 + $0xf0] sm:$0xff]  ;;  %v2113_v26 = vld [vmem:[#allocation4 + $0xd8] sm:$0xff] }
 0x609   :  { %v2109_v31 = vld [vmem:[#allocation4 + $0xb8] sm:$0xff]  ;;  %v2106_v32 = vld [vmem:[#allocation4 + $0xa0] sm:$0xff] }
 0x60a   :  { %4455 = vpow2.f32 %v4277_v25  ;;  %v4278_v30 = vmul.f32 -1.442695, %v1815_v28  ;;  %v4279_v38 = vmul.f32 -1.442695, %v1817_v33  ;;  %v2111_v25 = vld [vmem:[#allocation4 + $0xc8] sm:$0xff]  ;;  %v2110_v28 = vld [vmem:[#allocation4 + $0xc0] sm:$0xff] }
 0x60b   :  { %v2108_v33 = vld [vmem:[#allocation4 + $0xb0] sm:$0xff] }
 0x60c   :  { %4457 = vpow2.f32 %v4278_v30  ;;  %v2107_v30 = vld [vmem:[#allocation4 + $0xa8] sm:$0xff] }
 0x60d   :  { %4459 = vtanh.f32 %v1816_v37  ;;  %v2105_v37 = vld [vmem:[#allocation4 + $0x98] sm:$0xff] }
 0x60e   :  { %4461 = vpow2.f32 %v4279_v38  ;;  %v2102_v38 = vld [vmem:[#allocation4 + $0x80] sm:$0xff] }
 0x617   :  { %v4456_v39 = vpop.eup %4455 }
 0x618   :  { %v1821_v40 = vadd.f32 1.0, %v4456_v39  ;;  %v2104_v39 = vld [vmem:[#allocation4 + $0x90] sm:$0xff] }
 0x619   :  { %v4458_v41 = vpop.eup %4457 }
 0x61a   :  { %4463 = vrcp.f32 %v1821_v40  ;;  %v1827_v42 = vadd.f32 1.0, %v4458_v41  ;;  %v4460_v43 = vpop.eup %4459  ;;  %v2099_v40 = vld [vmem:[#allocation4 + $0x68] sm:$0xff]  ;;  %v2101_v41 = vld [vmem:[#allocation4 + $0x78] sm:$0xff] }
 0x61b   :  { %v4462_v44 = vpop.eup %4461 }
 0x61c   :  { %4465 = vrcp.f32 %v1827_v42  ;;  %v1834_v49 = vadd.f32 1.0, %v4462_v44  ;;  %v2098_v42 = vld [vmem:[#allocation4 + $0x60] sm:$0xff]  ;;  %v2095_v44 = vld [vmem:[#allocation4 + $0x48] sm:$0xff] }
 0x61e   :  { %4467 = vrcp.f32 %v1834_v49  ;;  %v2091_v49 = vld [vmem:[#allocation4 + $0x28] sm:$0xff] }
 0x627   :  { %v4464_v46 = vpop.eup %4463 }
 0x628   :  { %v1838_v47 = vmul.f32 %v4464_v46, %v4460_v43  ;;  %v2100_v43 = vld [vmem:[#allocation4 + $0x70] sm:$0xff]  ;;  %v2097_v46 = vld [vmem:[#allocation4 + $0x58] sm:$0xff] }
 0x629   :  { %v4466_v48 = vpop.eup %4465 }
 0x62a   :  { %v1837_v50 = vmul.f32 %v4466_v48, %v5769_v61  ;;  %v2135_v61 = vld [vmem:[#allocation4 + $0x188] sm:$0xff]  ;;  %v2096_v48 = vld [vmem:[#allocation4 + $0x50] sm:$0xff] }
 0x62b   :  { %v4468_v53 = vpop.eup %4467 }
 0x62c   :  { %v5845_v51 = vadd.f32 %v1838_v47, %v1837_v50  ;;  %v2094_v47 = vld [vmem:[#allocation4 + $0x40] sm:$0xff]  ;;  %v2093_v50 = vld [vmem:[#allocation4 + $0x38] sm:$0xff] }
 0x62e   :  { %4469 = vtanh.f32 %v5845_v51 }
 0x63b   :  { %v4470_v54 = vpop.eup %4469 }
 0x63c   :  { %v5848_v7 = vmul.f32 %v4470_v54, %v4468_v53  ;;  %v2090_v53 = vld [vmem:[#allocation4 + $0x20] sm:$0xff]  ;;  %v2092_v54 = vld [vmem:[#allocation4 + $0x30] sm:$0xff] }
 0x63e   :  { %1976 = vmatmul.mubr.f32.vlgmr.msra.gmra.mxu0 %v5848_v7  ;;  %2047 = vmatmul.mubr.f32.vlgmr.msra.gmra.mxu1 %v5848_v7 }
 0x63f   :  { %2214 = vmatprep.mubr.f32.mxu0 %v7230_v19  ;;  %2285 = vmatprep.mubr.f32.mxu1 %v7230_v19 }
 0x640   :  { %2151 = vmatpush1.msra.mxu0 %v2146_v60  ;;  %2222 = vmatpush1.msra.mxu1 %v2148_v8  ;;  %v2086_v60 = vld [vmem:[#allocation4] sm:$0xff]  ;;  %v2088_v8 = vld [vmem:[#allocation4 + $0x10] sm:$0xff] }
 0x641   :  { %2152 = vmatprep.subr.mxu0 %v2143_v45  ;;  %2223 = vmatprep.subr.mxu1 %v2145_v27  ;;  %v2390_v45 = vld [vmem:[#allocation7 + $0x1e8] sm:$0xff]  ;;  %v2392_v27 = vld [vmem:[#allocation7 + $0x1f8] sm:$0xff] }
 0x642   :  { %2153 = vmatpush1.msra.mxu0 %v2142_v57  ;;  %2224 = vmatpush1.msra.mxu1 %v2144_v9  ;;  %v7236_v9 = vld [vmem:[#allocation58_spill] sm:$0xff] }
 0x643   :  { %2154 = vmatprep.subr.mxu0 %v2139_v3  ;;  %2225 = vmatprep.subr.mxu1 %v2141_v18 }
 0x644   :  { %2155 = vmatpush1.msra.mxu0 %v2138_v5  ;;  %2226 = vmatpush1.msra.mxu1 %v2140_v55  ;;  %v7237_v55 = vld [vmem:[#allocation60_spill] sm:$0xff] }
 0x645   :  { %2156 = vmatprep.subr.mxu0 %v2135_v61  ;;  %2227 = vmatprep.subr.mxu1 %v2137_v56 }
 0x646   :  { %2157 = vmatpush1.msra.mxu0 %v2134_v58  ;;  %2228 = vmatpush1.msra.mxu1 %v2136_v62 }
 0x647   :  { %2158 = vmatprep.subr.mxu0 %v2131_v36  ;;  %2229 = vmatprep.subr.mxu1 %v2133_v0  ;;  %v7238_v36 = vld [vmem:[#allocation61_spill] sm:$0xff] }
 0x648   :  { %2159 = vmatpush1.msra.mxu0 %v2130_v1  ;;  %2230 = vmatpush1.msra.mxu1 %v2132_v63  ;;  %v7239_v1 = vld [vmem:[#allocation59_spill] sm:$0xff] }
 0x649   :  { %2160 = vmatprep.subr.mxu0 %v2127_v4  ;;  %2231 = vmatprep.subr.mxu1 %v2129_v10 }
 0x64a   :  { %2161 = vmatpush1.msra.mxu0 %v2126_v11  ;;  %2232 = vmatpush1.msra.mxu1 %v2128_v59 }
 0x64b   :  { %2162 = vmatprep.subr.mxu0 %v2123_v2  ;;  %2233 = vmatprep.subr.mxu1 %v2125_v12 }
 0x64c   :  { %2163 = vmatpush1.msra.mxu0 %v2122_v13  ;;  %2234 = vmatpush1.msra.mxu1 %v2124_v14 }
 0x64d   :  { %2164 = vmatprep.subr.mxu0 %v2119_v15  ;;  %2235 = vmatprep.subr.mxu1 %v2121_v16 }
 0x64e   :  { %2165 = vmatpush1.msra.mxu0 %v2118_v17  ;;  %2236 = vmatpush1.msra.mxu1 %v2120_v20 }
 0x64f   :  { %2166 = vmatprep.subr.mxu0 %v2115_v21  ;;  %2237 = vmatprep.subr.mxu1 %v2117_v22 }
 0x650   :  { %2167 = vmatpush1.msra.mxu0 %v2114_v23  ;;  %2238 = vmatpush1.msra.mxu1 %v2116_v24 }
 0x651   :  { %2168 = vmatprep.subr.mxu0 %v2111_v25  ;;  %2239 = vmatprep.subr.mxu1 %v2113_v26  ;;  %v2389_v25 = vld [vmem:[#allocation7 + $0x1e0] sm:$0xff]  ;;  %v2391_v26 = vld [vmem:[#allocation7 + $0x1f0] sm:$0xff] }
 0x652   :  { %2169 = vmatpush1.msra.mxu0 %v2110_v28  ;;  %2240 = vmatpush1.msra.mxu1 %v2112_v29  ;;  %v2386_v28 = vld [vmem:[#allocation7 + $0x1c8] sm:$0xff]  ;;  %v2388_v29 = vld [vmem:[#allocation7 + $0x1d8] sm:$0xff] }
 0x653   :  { %2170 = vmatprep.subr.mxu0 %v2107_v30  ;;  %2241 = vmatprep.subr.mxu1 %v2109_v31  ;;  %v2385_v30 = vld [vmem:[#allocation7 + $0x1c0] sm:$0xff]  ;;  %v2387_v31 = vld [vmem:[#allocation7 + $0x1d0] sm:$0xff] }
 0x654   :  { %2171 = vmatpush1.msra.mxu0 %v2106_v32  ;;  %2242 = vmatpush1.msra.mxu1 %v2108_v33  ;;  %v2384_v32 = vld [vmem:[#allocation7 + $0x1b8] sm:$0xff]  ;;  %v2381_v33 = vld [vmem:[#allocation7 + $0x1a0] sm:$0xff] }
 0x655   :  { %2172 = vmatprep.subr.mxu0 %v2103_v35  ;;  %2243 = vmatprep.subr.mxu1 %v2105_v37  ;;  %v2383_v35 = vld [vmem:[#allocation7 + $0x1b0] sm:$0xff]  ;;  %v2378_v37 = vld [vmem:[#allocation7 + $0x188] sm:$0xff] }
 0x656   :  { %2173 = vmatpush1.msra.mxu0 %v2102_v38  ;;  %2244 = vmatpush1.msra.mxu1 %v2104_v39  ;;  %v2380_v38 = vld [vmem:[#allocation7 + $0x198] sm:$0xff]  ;;  %v2377_v39 = vld [vmem:[#allocation7 + $0x180] sm:$0xff] }
 0x657   :  { %2174 = vmatprep.subr.mxu0 %v2099_v40  ;;  %2245 = vmatprep.subr.mxu1 %v2101_v41  ;;  %v2379_v40 = vld [vmem:[#allocation7 + $0x190] sm:$0xff]  ;;  %v2374_v41 = vld [vmem:[#allocation7 + $0x168] sm:$0xff] }
 0x658   :  { %2175 = vmatpush1.msra.mxu0 %v2098_v42  ;;  %2246 = vmatpush1.msra.mxu1 %v2100_v43  ;;  %v2376_v42 = vld [vmem:[#allocation7 + $0x178] sm:$0xff]  ;;  %v2373_v43 = vld [vmem:[#allocation7 + $0x160] sm:$0xff] }
 0x659   :  { %2176 = vmatprep.subr.mxu0 %v2095_v44  ;;  %2247 = vmatprep.subr.mxu1 %v2097_v46  ;;  %v2375_v44 = vld [vmem:[#allocation7 + $0x170] sm:$0xff]  ;;  %v2370_v46 = vld [vmem:[#allocation7 + $0x148] sm:$0xff] }
 0x65a   :  { %2177 = vmatpush1.msra.mxu0 %v2094_v47  ;;  %2248 = vmatpush1.msra.mxu1 %v2096_v48  ;;  %v2372_v47 = vld [vmem:[#allocation7 + $0x158] sm:$0xff]  ;;  %v2369_v48 = vld [vmem:[#allocation7 + $0x140] sm:$0xff] }
 0x65b   :  { %2178 = vmatprep.subr.mxu0 %v2091_v49  ;;  %2249 = vmatprep.subr.mxu1 %v2093_v50  ;;  %v2371_v49 = vld [vmem:[#allocation7 + $0x150] sm:$0xff]  ;;  %v2366_v50 = vld [vmem:[#allocation7 + $0x128] sm:$0xff] }
 0x65c   :  { %2179 = vmatpush1.msra.mxu0 %v2090_v53  ;;  %2250 = vmatpush1.msra.mxu1 %v2092_v54  ;;  %v2368_v53 = vld [vmem:[#allocation7 + $0x138] sm:$0xff]  ;;  %v2365_v54 = vld [vmem:[#allocation7 + $0x120] sm:$0xff] }
 0x65d   :  { %2180 = vmatprep.subr.mxu0 %v2087_v34  ;;  %2251 = vmatprep.subr.mxu1 %v2089_v52  ;;  %v2367_v34 = vld [vmem:[#allocation7 + $0x130] sm:$0xff]  ;;  %v2362_v52 = vld [vmem:[#allocation7 + $0x108] sm:$0xff] }
 0x65e   :  { %2181 = vmatpush1.msra.mxu0 %v2086_v60  ;;  %2252 = vmatpush1.msra.mxu1 %v2088_v8  ;;  %v2364_v60 = vld [vmem:[#allocation7 + $0x118] sm:$0xff]  ;;  %v2361_v8 = vld [vmem:[#allocation7 + $0x100] sm:$0xff] }
 0x65f   :  { %2415 = vmatprep.subr.mxu0 %v2390_v45  ;;  %2528 = vmatprep.subr.mxu1 %v2392_v27  ;;  %v2363_v45 = vld [vmem:[#allocation7 + $0x110] sm:$0xff]  ;;  %v2358_v27 = vld [vmem:[#allocation7 + $0xe8] sm:$0xff] }
 0x6fe   :  { %v1977_v57 = vpop.f32.mrf.mxu0  ;;  %v2048_v56 = vpop.f32.mrf.mxu1 }
 0x6ff   :  { %v2053_v3 = vadd.f32 %v1977_v57, %v7236_v9  ;;  %v2055_v63 = vadd.f32 %v2048_v56, %v7239_v1  ;;  %v2360_v57 = vld [vmem:[#allocation7 + $0xf8] sm:$0xff]  ;;  %v2357_v9 = vld [vmem:[#allocation7 + $0xe0] sm:$0xff]  ;;  %v2350_v56 = vld [vmem:[#allocation7 + $0xa8] sm:$0xff] }
 0x700   :  { %v1979_v18 = vpop.f32.mrf.mxu0  ;;  %v2050_v62 = vpop.f32.mrf.mxu1  ;;  %v2348_v1 = vld [vmem:[#allocation7 + $0x98] sm:$0xff] }
 0x701   :  { %v4280_v5 = vmul.f32 -1.442695, %v2053_v3  ;;  %v2054_v61 = vadd.f32 %v1979_v18, %v7237_v55  ;;  %v2056_v0 = vadd.f32 %v2050_v62, %v7238_v36  ;;  %v2359_v3 = vld [vmem:[#allocation7 + $0xf0] sm:$0xff]  ;;  %v2354_v18 = vld [vmem:[#allocation7 + $0xc8] sm:$0xff]  ;;  %v2353_v55 = vld [vmem:[#allocation7 + $0xc0] sm:$0xff] }
 0x702   :  { %v2349_v62 = vld [vmem:[#allocation7 + $0xa0] sm:$0xff]  ;;  %v2351_v36 = vld [vmem:[#allocation7 + $0xb0] sm:$0xff] }
 0x703   :  { %4471 = vpow2.f32 %v4280_v5  ;;  %v4281_v58 = vmul.f32 -1.442695, %v2054_v61  ;;  %v4282_v4 = vmul.f32 -1.442695, %v2056_v0  ;;  %v2356_v5 = vld [vmem:[#allocation7 + $0xd8] sm:$0xff]  ;;  %v2355_v61 = vld [vmem:[#allocation7 + $0xd0] sm:$0xff] }
 0x704   :  { %v2346_v0 = vld [vmem:[#allocation7 + $0x88] sm:$0xff] }
 0x705   :  { %4473 = vpow2.f32 %v4281_v58  ;;  %v2352_v58 = vld [vmem:[#allocation7 + $0xb8] sm:$0xff] }
 0x706   :  { %4475 = vtanh.f32 %v2055_v63  ;;  %v2345_v63 = vld [vmem:[#allocation7 + $0x80] sm:$0xff] }
 0x707   :  { %4477 = vpow2.f32 %v4282_v4  ;;  %v2347_v4 = vld [vmem:[#allocation7 + $0x90] sm:$0xff] }
 0x710   :  { %v4472_v10 = vpop.eup %4471 }
 0x711   :  { %v2060_v11 = vadd.f32 1.0, %v4472_v10  ;;  %v2342_v10 = vld [vmem:[#allocation7 + $0x68] sm:$0xff] }
 0x712   :  { %v4474_v59 = vpop.eup %4473 }
 0x713   :  { %4479 = vrcp.f32 %v2060_v11  ;;  %v2066_v2 = vadd.f32 1.0, %v4474_v59  ;;  %v4476_v12 = vpop.eup %4475  ;;  %v2344_v11 = vld [vmem:[#allocation7 + $0x78] sm:$0xff]  ;;  %v2341_v59 = vld [vmem:[#allocation7 + $0x60] sm:$0xff] }
 0x714   :  { %v4478_v13 = vpop.eup %4477 }
 0x715   :  { %4481 = vrcp.f32 %v2066_v2  ;;  %v2073_v17 = vadd.f32 1.0, %v4478_v13  ;;  %v2343_v2 = vld [vmem:[#allocation7 + $0x70] sm:$0xff]  ;;  %v2340_v13 = vld [vmem:[#allocation7 + $0x58] sm:$0xff] }
 0x717   :  { %4483 = vrcp.f32 %v2073_v17  ;;  %v2336_v17 = vld [vmem:[#allocation7 + $0x38] sm:$0xff] }
 0x720   :  { %v4480_v14 = vpop.eup %4479 }
 0x721   :  { %v2077_v15 = vmul.f32 %v4480_v14, %v4476_v12  ;;  %v2338_v12 = vld [vmem:[#allocation7 + $0x48] sm:$0xff]  ;;  %v2337_v14 = vld [vmem:[#allocation7 + $0x40] sm:$0xff] }
 0x722   :  { %v4482_v16 = vpop.eup %4481 }
 0x723   :  { %v2076_v20 = vmul.f32 %v4482_v16, %v5845_v51  ;;  %v2382_v51 = vld [vmem:[#allocation7 + $0x1a8] sm:$0xff] }
 0x724   :  { %v4484_v22 = vpop.eup %4483  ;;  %v2334_v16 = vld [vmem:[#allocation7 + $0x28] sm:$0xff] }
 0x725   :  { %v5859_v21 = vadd.f32 %v2077_v15, %v2076_v20  ;;  %v2339_v15 = vld [vmem:[#allocation7 + $0x50] sm:$0xff]  ;;  %v2333_v20 = vld [vmem:[#allocation7 + $0x20] sm:$0xff] }
 0x727   :  { %4485 = vtanh.f32 %v5859_v21 }
 0x734   :  { %v4486_v23 = vpop.eup %4485 }
 0x735   :  { %v5862_v24 = vmul.f32 %v4486_v23, %v4484_v22  ;;  %v2335_v22 = vld [vmem:[#allocation7 + $0x30] sm:$0xff]  ;;  %v2330_v23 = vld [vmem:[#allocation7 + $0x8] sm:$0xff] }
 0x737   :  { %2215 = vmatmul.mubr.f32.vlgmr.msra.gmra.mxu0 %v5862_v24  ;;  %2286 = vmatmul.mubr.f32.vlgmr.msra.gmra.mxu1 %v5862_v24 }
 0x738   :  { %2416 = vmatpush1.msra.mxu0 %v2389_v25  ;;  %2529 = vmatpush1.msra.mxu1 %v2391_v26  ;;  %v2332_v25 = vld [vmem:[#allocation7 + $0x18] sm:$0xff]  ;;  %v2329_v26 = vld [vmem:[#allocation7] sm:$0xff] }
 0x739   :  { %2417 = vmatprep.subr.mxu0 %v2386_v28  ;;  %2530 = vmatprep.subr.mxu1 %v2388_v29  ;;  %v2331_v28 = vld [vmem:[#allocation7 + $0x10] sm:$0xff] }
 0x73a   :  { %2418 = vmatpush1.msra.mxu0 %v2385_v30  ;;  %2531 = vmatpush1.msra.mxu1 %v2387_v31  ;;  %v7240_v29 = vld [vmem:[#allocation66_spill] sm:$0xff]  ;;  %v7241_v30 = vld [vmem:[#allocation17_spill] sm:$0xff] }
 0x73b   :  { %2419 = vmatprep.subr.mxu0 %v2382_v51  ;;  %2532 = vmatprep.subr.mxu1 %v2384_v32  ;;  %v7242_v31 = vld [vmem:[#allocation37_spill] sm:$0xff]  ;;  %v7243_v51 = vld [vmem:[#allocation40_spill] sm:$0xff]  ;;  %v5898_v32 = vld [vmem:[#allocation9 + $0x1f8] sm:$0xff] }
 0x73c   :  { %2420 = vmatpush1.msra.mxu0 %v2381_v33  ;;  %2533 = vmatpush1.msra.mxu1 %v2383_v35  ;;  %7245 = vst [vmem:[#allocation39_spill] sm:$0xff] %v5898_v32  ;;  %v5904_v33 = vld [vmem:[#allocation9 + $0x1f0] sm:$0xff]  ;;  %v5910_v35 = vld [vmem:[#allocation9 + $0x1d8] sm:$0xff] }
 0x73d   :  { %2421 = vmatprep.subr.mxu0 %v2378_v37  ;;  %2534 = vmatprep.subr.mxu1 %v2380_v38  ;;  %v5914_v37 = vld [vmem:[#allocation9 + $0x1c0] sm:$0xff]  ;;  %v5916_v38 = vld [vmem:[#allocation9 + $0x1d0] sm:$0xff] }
 0x73e   :  { %2422 = vmatpush1.msra.mxu0 %v2377_v39  ;;  %2535 = vmatpush1.msra.mxu1 %v2379_v40  ;;  %v5920_v39 = vld [vmem:[#allocation9 + $0x1a8] sm:$0xff]  ;;  %v5922_v40 = vld [vmem:[#allocation9 + $0x1b8] sm:$0xff] }
 0x73f   :  { %2423 = vmatprep.subr.mxu0 %v2374_v41  ;;  %2536 = vmatprep.subr.mxu1 %v2376_v42  ;;  %v5926_v41 = vld [vmem:[#allocation9 + $0x1a0] sm:$0xff]  ;;  %v5928_v42 = vld [vmem:[#allocation9 + $0x1b0] sm:$0xff] }
 0x740   :  { %2424 = vmatpush1.msra.mxu0 %v2373_v43  ;;  %2537 = vmatpush1.msra.mxu1 %v2375_v44  ;;  %v5932_v43 = vld [vmem:[#allocation9 + $0x188] sm:$0xff]  ;;  %v5934_v44 = vld [vmem:[#allocation9 + $0x198] sm:$0xff] }
 0x741   :  { %2425 = vmatprep.subr.mxu0 %v2370_v46  ;;  %2538 = vmatprep.subr.mxu1 %v2372_v47  ;;  %v5938_v46 = vld [vmem:[#allocation9 + $0x180] sm:$0xff]  ;;  %v5940_v47 = vld [vmem:[#allocation9 + $0x190] sm:$0xff] }
 0x742   :  { %2426 = vmatpush1.msra.mxu0 %v2369_v48  ;;  %2539 = vmatpush1.msra.mxu1 %v2371_v49  ;;  %v5944_v48 = vld [vmem:[#allocation9 + $0x168] sm:$0xff]  ;;  %v5946_v49 = vld [vmem:[#allocation9 + $0x178] sm:$0xff] }
 0x743   :  { %2427 = vmatprep.subr.mxu0 %v2366_v50  ;;  %2540 = vmatprep.subr.mxu1 %v2368_v53  ;;  %v5950_v50 = vld [vmem:[#allocation9 + $0x160] sm:$0xff]  ;;  %v5952_v53 = vld [vmem:[#allocation9 + $0x170] sm:$0xff] }
 0x744   :  { %2428 = vmatpush1.msra.mxu0 %v2365_v54  ;;  %2541 = vmatpush1.msra.mxu1 %v2367_v34  ;;  %v5956_v54 = vld [vmem:[#allocation9 + $0x148] sm:$0xff]  ;;  %v5958_v34 = vld [vmem:[#allocation9 + $0x158] sm:$0xff] }
 0x745   :  { %2429 = vmatprep.subr.mxu0 %v2362_v52  ;;  %2542 = vmatprep.subr.mxu1 %v2364_v60  ;;  %v5962_v52 = vld [vmem:[#allocation9 + $0x140] sm:$0xff]  ;;  %v5964_v60 = vld [vmem:[#allocation9 + $0x150] sm:$0xff] }
 0x746   :  { %2430 = vmatpush1.msra.mxu0 %v2361_v8  ;;  %2543 = vmatpush1.msra.mxu1 %v2363_v45  ;;  %v5968_v8 = vld [vmem:[#allocation9 + $0x128] sm:$0xff]  ;;  %v5970_v45 = vld [vmem:[#allocation9 + $0x138] sm:$0xff] }
 0x747   :  { %2431 = vmatprep.subr.mxu0 %v2358_v27  ;;  %2544 = vmatprep.subr.mxu1 %v2360_v57  ;;  %v5974_v27 = vld [vmem:[#allocation9 + $0x120] sm:$0xff]  ;;  %v5976_v57 = vld [vmem:[#allocation9 + $0x130] sm:$0xff] }
 0x748   :  { %2432 = vmatpush1.msra.mxu0 %v2357_v9  ;;  %2545 = vmatpush1.msra.mxu1 %v2359_v3  ;;  %v5980_v9 = vld [vmem:[#allocation9 + $0x108] sm:$0xff]  ;;  %v5982_v3 = vld [vmem:[#allocation9 + $0x118] sm:$0xff] }
 0x749   :  { %2433 = vmatprep.subr.mxu0 %v2354_v18  ;;  %2546 = vmatprep.subr.mxu1 %v2356_v5  ;;  %v5986_v18 = vld [vmem:[#allocation9 + $0x100] sm:$0xff]  ;;  %v5988_v5 = vld [vmem:[#allocation9 + $0x110] sm:$0xff] }
 0x74a   :  { %2434 = vmatpush1.msra.mxu0 %v2353_v55  ;;  %2547 = vmatpush1.msra.mxu1 %v2355_v61  ;;  %v5992_v55 = vld [vmem:[#allocation9 + $0xe8] sm:$0xff]  ;;  %v5994_v61 = vld [vmem:[#allocation9 + $0xf8] sm:$0xff] }
 0x74b   :  { %2435 = vmatprep.subr.mxu0 %v2350_v56  ;;  %2548 = vmatprep.subr.mxu1 %v2352_v58  ;;  %v5998_v56 = vld [vmem:[#allocation9 + $0xe0] sm:$0xff]  ;;  %v6000_v58 = vld [vmem:[#allocation9 + $0xf0] sm:$0xff] }
 0x74c   :  { %2436 = vmatpush1.msra.mxu0 %v2349_v62  ;;  %2549 = vmatpush1.msra.mxu1 %v2351_v36  ;;  %v6004_v62 = vld [vmem:[#allocation9 + $0xc8] sm:$0xff]  ;;  %v6006_v36 = vld [vmem:[#allocation9 + $0xd8] sm:$0xff] }
 0x74d   :  { %2437 = vmatprep.subr.mxu0 %v2346_v0  ;;  %2550 = vmatprep.subr.mxu1 %v2348_v1  ;;  %v6010_v0 = vld [vmem:[#allocation9 + $0xc0] sm:$0xff]  ;;  %v6012_v1 = vld [vmem:[#allocation9 + $0xd0] sm:$0xff] }
 0x74e   :  { %2438 = vmatpush1.msra.mxu0 %v2345_v63  ;;  %2551 = vmatpush1.msra.mxu1 %v2347_v4  ;;  %v6016_v63 = vld [vmem:[#allocation9 + $0xa8] sm:$0xff]  ;;  %v6018_v4 = vld [vmem:[#allocation9 + $0xb8] sm:$0xff] }
 0x74f   :  { %2439 = vmatprep.subr.mxu0 %v2342_v10  ;;  %2552 = vmatprep.subr.mxu1 %v2344_v11  ;;  %v6022_v10 = vld [vmem:[#allocation9 + $0xa0] sm:$0xff]  ;;  %v6024_v11 = vld [vmem:[#allocation9 + $0xb0] sm:$0xff] }
 0x750   :  { %2440 = vmatpush1.msra.mxu0 %v2341_v59  ;;  %2553 = vmatpush1.msra.mxu1 %v2343_v2  ;;  %7246 = vst [vmem:[#allocation42_spill] sm:$0xff] %v6024_v11  ;;  %v6028_v59 = vld [vmem:[#allocation9 + $0x88] sm:$0xff]  ;;  %v6030_v2 = vld [vmem:[#allocation9 + $0x98] sm:$0xff] }
 0x751   :  { %2441 = vmatprep.subr.mxu0 %v2338_v12  ;;  %2554 = vmatprep.subr.mxu1 %v2340_v13  ;;  %7247 = vst [vmem:[#allocation44_spill] sm:$0xff] %v6028_v59  ;;  %7248 = vst [vmem:[#allocation45_spill] sm:$0xff] %v6030_v2  ;;  %v6034_v12 = vld [vmem:[#allocation9 + $0x80] sm:$0xff]  ;;  %v6036_v13 = vld [vmem:[#allocation9 + $0x90] sm:$0xff] }
 0x752   :  { %2442 = vmatpush1.msra.mxu0 %v2337_v14  ;;  %2555 = vmatpush1.msra.mxu1 %v2339_v15  ;;  %7249 = vst [vmem:[#allocation43_spill] sm:$0xff] %v6034_v12  ;;  %7250 = vst [vmem:[#allocation46_spill] sm:$0xff] %v6036_v13  ;;  %v6040_v14 = vld [vmem:[#allocation9 + $0x68] sm:$0xff]  ;;  %v6042_v15 = vld [vmem:[#allocation9 + $0x78] sm:$0xff] }
 0x753   :  { %2443 = vmatprep.subr.mxu0 %v2334_v16  ;;  %2556 = vmatprep.subr.mxu1 %v2336_v17  ;;  %7251 = vst [vmem:[#allocation48_spill] sm:$0xff] %v6040_v14  ;;  %7252 = vst [vmem:[#allocation49_spill] sm:$0xff] %v6042_v15  ;;  %v6046_v16 = vld [vmem:[#allocation9 + $0x60] sm:$0xff]  ;;  %v6048_v17 = vld [vmem:[#allocation9 + $0x70] sm:$0xff] }
 0x754   :  { %2444 = vmatpush1.msra.mxu0 %v2333_v20  ;;  %2557 = vmatpush1.msra.mxu1 %v2335_v22  ;;  %7253 = vst [vmem:[#allocation47_spill] sm:$0xff] %v6046_v16  ;;  %7254 = vst [vmem:[#allocation18_spill] sm:$0xff] %v6048_v17  ;;  %v6052_v20 = vld [vmem:[#allocation9 + $0x48] sm:$0xff]  ;;  %v6054_v22 = vld [vmem:[#allocation9 + $0x58] sm:$0xff] }
 0x755   :  { %2445 = vmatprep.subr.mxu0 %v2330_v23  ;;  %2558 = vmatprep.subr.mxu1 %v2332_v25  ;;  %7255 = vst [vmem:[#allocation19_spill] sm:$0xff] %v6052_v20  ;;  %7256 = vst [vmem:[#allocation50_spill] sm:$0xff] %v6054_v22  ;;  %v6058_v23 = vld [vmem:[#allocation9 + $0x40] sm:$0xff]  ;;  %v6060_v25 = vld [vmem:[#allocation9 + $0x50] sm:$0xff] }
 0x756   :  { %2446 = vmatpush1.msra.mxu0 %v2329_v26  ;;  %2479 = vmatprep.mubr.f32.mxu0 %v7230_v19  ;;  %7257 = vst [vmem:[#allocation52_spill] sm:$0xff] %v6058_v23  ;;  %7258 = vst [vmem:[#allocation53_spill] sm:$0xff] %v6060_v25  ;;  %v6064_v26 = vld [vmem:[#allocation9 + $0x28] sm:$0xff] }
 0x757   :  { %2559 = vmatpush1.msra.mxu1 %v2331_v28  ;;  %2592 = vmatprep.mubr.f32.mxu1 %v7230_v19  ;;  %7259 = vst [vmem:[#allocation51_spill] sm:$0xff] %v6064_v26  ;;  %v6066_v28 = vld [vmem:[#allocation9 + $0x38] sm:$0xff] }
 0x758   :  { %2480 = vmatmul.mubr.f32.vlgmr.msra.gmra.mxu0 %v7240_v29  ;;  %2593 = vmatmul.mubr.f32.vlgmr.msra.gmra.mxu1 %v7240_v29  ;;  %7260 = vst [vmem:[#allocation20_spill] sm:$0xff] %v6066_v28  ;;  %v6070_v29 = vld [vmem:[#allocation9 + $0x20] sm:$0xff] }
 0x759   :  { %2485 = vmatprep.mubr.f32.mxu0 %v7230_v19  ;;  %2598 = vmatprep.mubr.f32.mxu1 %v7230_v19  ;;  %7261 = vst [vmem:[#allocation21_spill] sm:$0xff] %v6070_v29 }
 0x75a   :  { %2812 = vmatprep.subr.mxu1 %v5898_v32 }
 0x75b   :  { %2813 = vmatpush1.msra.mxu1 %v5904_v33 }
 0x75c   :  { %2486 = vmatmul.mubr.f32.gmra.mxu0 %v7241_v30  ;;  %2599 = vmatmul.mubr.f32.gmra.mxu1 %v7241_v30  ;;  %v6072_v30 = vld [vmem:[#allocation9 + $0x30] sm:$0xff] }
 0x75d   :  { %2491 = vmatprep.mubr.f32.mxu0 %v7230_v19  ;;  %2604 = vmatprep.mubr.f32.mxu1 %v7230_v19  ;;  %7262 = vst [vmem:[#allocation22_spill] sm:$0xff] %v6072_v30 }
 0x75e   :  { %2814 = vmatprep.subr.mxu1 %v5910_v35 }
 0x75f   :  { %2815 = vmatpush1.msra.mxu1 %v5916_v38 }
 0x760   :  { %2492 = vmatmul.mubr.f32.gmra.mxu0 %v7242_v31  ;;  %2605 = vmatmul.mubr.f32.gmra.mxu1 %v7242_v31  ;;  %v6076_v31 = vld [vmem:[#allocation9 + $0x8] sm:$0xff] }
 0x761   :  { %2497 = vmatprep.mubr.f32.mxu0 %v7230_v19  ;;  %2610 = vmatprep.mubr.f32.mxu1 %v7230_v19  ;;  %7263 = vst [vmem:[#allocation23_spill] sm:$0xff] %v6076_v31 }
 0x762   :  { %2816 = vmatprep.subr.mxu1 %v5922_v40 }
 0x763   :  { %2817 = vmatpush1.msra.mxu1 %v5928_v42 }
 0x764   :  { %2498 = vmatmul.mubr.f32.gmra.mxu0 %v7243_v51  ;;  %2611 = vmatmul.mubr.f32.gmra.mxu1 %v7243_v51  ;;  %v6078_v51 = vld [vmem:[#allocation9 + $0x18] sm:$0xff] }
 0x765   :  { %2503 = vmatprep.mubr.f32.mxu0 %v7230_v19  ;;  %2616 = vmatprep.mubr.f32.mxu1 %v7230_v19  ;;  %7264 = vst [vmem:[#allocation24_spill] sm:$0xff] %v6078_v51 }
 0x766   :  { %2818 = vmatprep.subr.mxu1 %v5934_v44 }
 0x767   :  { %2819 = vmatpush1.msra.mxu1 %v5940_v47 }
 0x768   :  { %2504 = vmatmul.mubr.f32.gmra.mxu0 %v5772_v6  ;;  %2617 = vmatmul.mubr.f32.gmra.mxu1 %v5772_v6  ;;  %v5896_v6 = vld [vmem:[#allocation9 + $0x1e8] sm:$0xff] }
 0x769   :  { %2509 = vmatprep.mubr.f32.mxu0 %v7230_v19  ;;  %2622 = vmatprep.mubr.f32.mxu1 %v7230_v19  ;;  %7244 = vst [vmem:[#allocation41_spill] sm:$0xff] %v5896_v6 }
 0x76a   :  { %2741 = vmatprep.subr.mxu0 %v5896_v6  ;;  %2820 = vmatprep.subr.mxu1 %v5946_v49 }
 0x76b   :  { %2821 = vmatpush1.msra.mxu1 %v5952_v53 }
 0x76c   :  { %2510 = vmatmul.mubr.f32.gmra.mxu0 %v5848_v7  ;;  %2623 = vmatmul.mubr.f32.gmra.mxu1 %v5848_v7  ;;  %v5902_v7 = vld [vmem:[#allocation9 + $0x1e0] sm:$0xff] }
 0x76d   :  { %2515 = vmatprep.mubr.f32.mxu0 %v7230_v19  ;;  %2628 = vmatprep.mubr.f32.mxu1 %v7230_v19 }
 0x76e   :  { %2742 = vmatpush1.msra.mxu0 %v5902_v7  ;;  %2822 = vmatprep.subr.mxu1 %v5958_v34 }
 0x76f   :  { %2823 = vmatpush1.msra.mxu1 %v5964_v60 }
 0x770   :  { %2516 = vmatmul.mubr.f32.gmra.mxu0 %v5862_v24  ;;  %2629 = vmatmul.mubr.f32.gmra.mxu1 %v5862_v24  ;;  %v5908_v24 = vld [vmem:[#allocation9 + $0x1c8] sm:$0xff] }
 0x771   :  { %2521 = vmatprep.mubr.f32.mxu0 %v7230_v19  ;;  %2634 = vmatprep.mubr.f32.mxu1 %v7230_v19 }
 0x772   :  { %2743 = vmatprep.subr.mxu0 %v5908_v24  ;;  %2824 = vmatprep.subr.mxu1 %v5970_v45 }
 0x773   :  { %2744 = vmatpush1.msra.mxu0 %v5914_v37  ;;  %2825 = vmatpush1.msra.mxu1 %v5976_v57 }
 0x774   :  { %2745 = vmatprep.subr.mxu0 %v5920_v39  ;;  %2826 = vmatprep.subr.mxu1 %v5982_v3 }
 0x775   :  { %2746 = vmatpush1.msra.mxu0 %v5926_v41  ;;  %2827 = vmatpush1.msra.mxu1 %v5988_v5 }
 0x776   :  { %2747 = vmatprep.subr.mxu0 %v5932_v43  ;;  %2828 = vmatprep.subr.mxu1 %v5994_v61 }
 0x777   :  { %2748 = vmatpush1.msra.mxu0 %v5938_v46  ;;  %2829 = vmatpush1.msra.mxu1 %v6000_v58 }
 0x778   :  { %2749 = vmatprep.subr.mxu0 %v5944_v48  ;;  %2830 = vmatprep.subr.mxu1 %v6006_v36 }
 0x779   :  { %2750 = vmatpush1.msra.mxu0 %v5950_v50  ;;  %2831 = vmatpush1.msra.mxu1 %v6012_v1 }
 0x77a   :  { %2751 = vmatprep.subr.mxu0 %v5956_v54  ;;  %2832 = vmatprep.subr.mxu1 %v6018_v4 }
 0x77b   :  { %2752 = vmatpush1.msra.mxu0 %v5962_v52  ;;  %2833 = vmatpush1.msra.mxu1 %v6024_v11 }
 0x77c   :  { %2753 = vmatprep.subr.mxu0 %v5968_v8  ;;  %2834 = vmatprep.subr.mxu1 %v6030_v2 }
 0x77d   :  { %2754 = vmatpush1.msra.mxu0 %v5974_v27  ;;  %2835 = vmatpush1.msra.mxu1 %v6036_v13 }
 0x77e   :  { %2755 = vmatprep.subr.mxu0 %v5980_v9  ;;  %2836 = vmatprep.subr.mxu1 %v6042_v15  ;;  %v7269_v15 = vld [vmem:[#allocation65_spill] sm:$0xff] }
 0x77f   :  { %2756 = vmatpush1.msra.mxu0 %v5986_v18  ;;  %2837 = vmatpush1.msra.mxu1 %v6048_v17 }
 0x780   :  { %2757 = vmatprep.subr.mxu0 %v5992_v55  ;;  %2838 = vmatprep.subr.mxu1 %v6054_v22 }
 0x781   :  { %2758 = vmatpush1.msra.mxu0 %v5998_v56  ;;  %2839 = vmatpush1.msra.mxu1 %v6060_v25  ;;  %v6080_v25 = vld [vmem:[#allocation9] sm:$0xff] }
 0x782   :  { %2759 = vmatprep.subr.mxu0 %v6004_v62  ;;  %2840 = vmatprep.subr.mxu1 %v6066_v28  ;;  %7265 = vst [vmem:[#allocation25_spill] sm:$0xff] %v6080_v25 }
 0x783   :  { %2760 = vmatpush1.msra.mxu0 %v6010_v0  ;;  %2841 = vmatpush1.msra.mxu1 %v6072_v30 }
 0x784   :  { %2761 = vmatprep.subr.mxu0 %v6016_v63  ;;  %2842 = vmatprep.subr.mxu1 %v6078_v51 }
 0x785   :  { %2762 = vmatpush1.msra.mxu0 %v6022_v10 }
 0x786   :  { %2763 = vmatprep.subr.mxu0 %v6028_v59 }
 0x787   :  { %2764 = vmatpush1.msra.mxu0 %v6034_v12 }
 0x788   :  { %2765 = vmatprep.subr.mxu0 %v6040_v14  ;;  %v7270_v14 = vld [vmem:[#allocation63_spill] sm:$0xff] }
 0x789   :  { %2766 = vmatpush1.msra.mxu0 %v6046_v16 }
 0x78a   :  { %2767 = vmatprep.subr.mxu0 %v6052_v20  ;;  %v7268_v20 = vld [vmem:[#allocation64_spill] sm:$0xff] }
 0x78b   :  { %2768 = vmatpush1.msra.mxu0 %v6058_v23 }
 0x78c   :  { %2769 = vmatprep.subr.mxu0 %v6064_v26  ;;  %v6084_v26 = vld [vmem:[#allocation9 + $0x10] sm:$0xff] }
 0x78d   :  { %2770 = vmatpush1.msra.mxu0 %v6070_v29  ;;  %7266 = vst [vmem:[#allocation26_spill] sm:$0xff] %v6084_v26  ;;  %2843 = vmatpush1.msra.mxu1 %v6084_v26  ;;  %v7267_v29 = vld [vmem:[#allocation62_spill] sm:$0xff] }
 0x78e   :  { %2771 = vmatprep.subr.mxu0 %v6076_v31  ;;  %2986 = vmatprep.subr.mxu1 %v5898_v32 }
 0x78f   :  { %2772 = vmatpush1.msra.mxu0 %v6080_v25 }
 0x790   :  { %2915 = vmatprep.subr.mxu0 %v5896_v6 }
 0x7f7   :  { %v2216_v30 = vpop.f32.mrf.mxu0  ;;  %v2287_v31 = vpop.f32.mrf.mxu1 }
 0x7f8   :  { %v2292_v28 = vadd.f32 %v2216_v30, %v7267_v29  ;;  %v2294_v26 = vadd.f32 %v2287_v31, %v7270_v14  ;;  %v7277_v31 = vld [vmem:[#allocation19_spill] sm:$0xff] }
 0x7f9   :  { %v2218_v23 = vpop.f32.mrf.mxu0  ;;  %v2289_v16 = vpop.f32.mrf.mxu1 }
 0x7fa   :  { %v4283_v22 = vmul.f32 -1.442695, %v2292_v28  ;;  %v2293_v17 = vadd.f32 %v2218_v23, %v7268_v20  ;;  %v2295_v25 = vadd.f32 %v2289_v16, %v7269_v15 }
 0x7fc   :  { %4487 = vpow2.f32 %v4283_v22  ;;  %v4284_v51 = vmul.f32 -1.442695, %v2293_v17  ;;  %v4285_v13 = vmul.f32 -1.442695, %v2295_v25  ;;  %v7275_v25 = vld [vmem:[#allocation47_spill] sm:$0xff] }
 0x7fe   :  { %4489 = vpow2.f32 %v4284_v51 }
 0x7ff   :  { %4491 = vtanh.f32 %v2294_v26  ;;  %v7276_v26 = vld [vmem:[#allocation18_spill] sm:$0xff] }
 0x800   :  { %4493 = vpow2.f32 %v4285_v13  ;;  %v7274_v13 = vld [vmem:[#allocation49_spill] sm:$0xff] }
 0x809   :  { %v4488_v6 = vpop.eup %4487 }
 0x80a   :  { %v2299_v12 = vadd.f32 1.0, %v4488_v6 }
 0x80b   :  { %v4490_v32 = vpop.eup %4489 }
 0x80c   :  { %4495 = vrcp.f32 %v2299_v12  ;;  %v2305_v29 = vadd.f32 1.0, %v4490_v32  ;;  %v4492_v28 = vpop.eup %4491  ;;  %v7272_v32 = vld [vmem:[#allocation46_spill] sm:$0xff]  ;;  %v7273_v12 = vld [vmem:[#allocation48_spill] sm:$0xff] }
 0x80d   :  { %v4494_v20 = vpop.eup %4493 }
 0x80e   :  { %4497 = vrcp.f32 %v2305_v29  ;;  %v2312_v30 = vadd.f32 1.0, %v4494_v20  ;;  %v7278_v29 = vld [vmem:[#allocation50_spill] sm:$0xff]  ;;  %v7280_v20 = vld [vmem:[#allocation53_spill] sm:$0xff] }
 0x810   :  { %4499 = vrcp.f32 %v2312_v30  ;;  %v7284_v30 = vld [vmem:[#allocation22_spill] sm:$0xff] }
 0x819   :  { %v4496_v22 = vpop.eup %4495 }
 0x81a   :  { %v2316_v23 = vmul.f32 %v4496_v22, %v4492_v28  ;;  %v7279_v28 = vld [vmem:[#allocation52_spill] sm:$0xff]  ;;  %v7281_v22 = vld [vmem:[#allocation51_spill] sm:$0xff] }
 0x81b   :  { %v4498_v17 = vpop.eup %4497 }
 0x81c   :  { %v2315_v51 = vmul.f32 %v4498_v17, %v5859_v21  ;;  %v7271_v21 = vld [vmem:[#allocation43_spill] sm:$0xff]  ;;  %v7283_v17 = vld [vmem:[#allocation21_spill] sm:$0xff] }
 0x81d   :  { %v4500_v14 = vpop.eup %4499 }
 0x81e   :  { %v2317_v15 = vadd.f32 %v2316_v23, %v2315_v51  ;;  %v7282_v23 = vld [vmem:[#allocation20_spill] sm:$0xff]  ;;  %v7285_v51 = vld [vmem:[#allocation23_spill] sm:$0xff] }
 0x820   :  { %4501 = vtanh.f32 %v2317_v15  ;;  %v7286_v15 = vld [vmem:[#allocation24_spill] sm:$0xff] }
 0x82d   :  { %v4502_v16 = vpop.eup %4501 }
 0x82e   :  { %v2319_v6 = vmul.f32 %v4502_v16, %v4500_v14  ;;  %v7287_v14 = vld [vmem:[#allocation25_spill] sm:$0xff]  ;;  %v7288_v16 = vld [vmem:[#allocation26_spill] sm:$0xff] }
 0x830   :  { %2522 = vmatmul.mubr.f32.gmra.mxu0 %v2319_v6  ;;  %2635 = vmatmul.mubr.f32.gmra.mxu1 %v2319_v6  ;;  %v7289_v6 = vld [vmem:[#allocation41_spill] sm:$0xff] }
 0x831   :  { %2805 = vmatprep.mubr.f32.mxu0 %v7230_v19  ;;  %2876 = vmatprep.mubr.f32.mxu1 %v7230_v19 }
 0x834   :  { %2806 = vmatmul.mubr.f32.vlgmr.msra.gmra.mxu0 %v7230_v19  ;;  %2877 = vmatmul.mubr.f32.vlgmr.msra.gmra.mxu1 %v7230_v19 }
 0x835   :  { %2916 = vmatpush1.msra.mxu0 %v5902_v7  ;;  %2987 = vmatpush1.msra.mxu1 %v5904_v33 }
 0x836   :  { %2917 = vmatprep.subr.mxu0 %v5908_v24  ;;  %2988 = vmatprep.subr.mxu1 %v5910_v35 }
 0x837   :  { %2918 = vmatpush1.msra.mxu0 %v5914_v37  ;;  %2989 = vmatpush1.msra.mxu1 %v5916_v38 }
 0x838   :  { %2919 = vmatprep.subr.mxu0 %v5920_v39  ;;  %2990 = vmatprep.subr.mxu1 %v5922_v40 }
 0x839   :  { %2920 = vmatpush1.msra.mxu0 %v5926_v41  ;;  %2991 = vmatpush1.msra.mxu1 %v5928_v42 }
 0x83a   :  { %2921 = vmatprep.subr.mxu0 %v5932_v43  ;;  %2992 = vmatprep.subr.mxu1 %v5934_v44 }
 0x83b   :  { %2922 = vmatpush1.msra.mxu0 %v5938_v46  ;;  %2993 = vmatpush1.msra.mxu1 %v5940_v47 }
 0x83c   :  { %2923 = vmatprep.subr.mxu0 %v5944_v48  ;;  %2994 = vmatprep.subr.mxu1 %v5946_v49 }
 0x83d   :  { %2924 = vmatpush1.msra.mxu0 %v5950_v50  ;;  %2995 = vmatpush1.msra.mxu1 %v5952_v53 }
 0x83e   :  { %2925 = vmatprep.subr.mxu0 %v5956_v54  ;;  %2996 = vmatprep.subr.mxu1 %v5958_v34 }
 0x83f   :  { %2926 = vmatpush1.msra.mxu0 %v5962_v52  ;;  %2997 = vmatpush1.msra.mxu1 %v5964_v60 }
 0x840   :  { %2927 = vmatprep.subr.mxu0 %v5968_v8  ;;  %2998 = vmatprep.subr.mxu1 %v5970_v45 }
 0x841   :  { %2928 = vmatpush1.msra.mxu0 %v5974_v27  ;;  %2999 = vmatpush1.msra.mxu1 %v5976_v57 }
 0x842   :  { %2929 = vmatprep.subr.mxu0 %v5980_v9  ;;  %3000 = vmatprep.subr.mxu1 %v5982_v3 }
 0x843   :  { %2930 = vmatpush1.msra.mxu0 %v5986_v18  ;;  %3001 = vmatpush1.msra.mxu1 %v5988_v5 }
 0x844   :  { %2931 = vmatprep.subr.mxu0 %v5992_v55  ;;  %3002 = vmatprep.subr.mxu1 %v5994_v61 }
 0x845   :  { %2932 = vmatpush1.msra.mxu0 %v5998_v56  ;;  %3003 = vmatpush1.msra.mxu1 %v6000_v58 }
 0x846   :  { %2933 = vmatprep.subr.mxu0 %v6004_v62  ;;  %3004 = vmatprep.subr.mxu1 %v6006_v36 }
 0x847   :  { %2934 = vmatpush1.msra.mxu0 %v6010_v0  ;;  %3005 = vmatpush1.msra.mxu1 %v6012_v1 }
 0x848   :  { %2935 = vmatprep.subr.mxu0 %v6016_v63  ;;  %3006 = vmatprep.subr.mxu1 %v6018_v4 }
 0x849   :  { %2936 = vmatpush1.msra.mxu0 %v6022_v10  ;;  %3007 = vmatpush1.msra.mxu1 %v6024_v11 }
 0x84a   :  { %2937 = vmatprep.subr.mxu0 %v6028_v59  ;;  %3008 = vmatprep.subr.mxu1 %v6030_v2 }
 0x84b   :  { %2938 = vmatpush1.msra.mxu0 %v7271_v21  ;;  %3009 = vmatpush1.msra.mxu1 %v7272_v32 }
 0x84c   :  { %2939 = vmatprep.subr.mxu0 %v7273_v12  ;;  %3010 = vmatprep.subr.mxu1 %v7274_v13 }
 0x84d   :  { %2940 = vmatpush1.msra.mxu0 %v7275_v25  ;;  %3011 = vmatpush1.msra.mxu1 %v7276_v26 }
 0x84e   :  { %2941 = vmatprep.subr.mxu0 %v7277_v31  ;;  %3012 = vmatprep.subr.mxu1 %v7278_v29 }
 0x84f   :  { %2942 = vmatpush1.msra.mxu0 %v7279_v28  ;;  %3013 = vmatpush1.msra.mxu1 %v7280_v20 }
 0x850   :  { %2943 = vmatprep.subr.mxu0 %v7281_v22  ;;  %3014 = vmatprep.subr.mxu1 %v7282_v23  ;;  %v7290_v22 = vld [vmem:[#allocation39_spill] sm:$0xff]  ;;  %v2481_v23 = vpop.f32.mrf.mxu0 }
 0x851   :  { %2944 = vmatpush1.msra.mxu0 %v7283_v17  ;;  %3015 = vmatpush1.msra.mxu1 %v7284_v30  ;;  %v2594_v17 = vpop.f32.mrf.mxu1 }
 0x852   :  { %2945 = vmatprep.subr.mxu0 %v7285_v51  ;;  %3016 = vmatprep.subr.mxu1 %v7286_v15  ;;  %v2483_v20 = vpop.f32.mrf.mxu0 }
 0x853   :  { %2946 = vmatpush1.msra.mxu0 %v7287_v14  ;;  %2979 = vmatprep.mubr.f32.mxu0 %v7230_v19  ;;  %v2596_v30 = vpop.f32.mrf.mxu1 }
 0x854   :  { %3017 = vmatpush1.msra.mxu1 %v7288_v16  ;;  %3050 = vmatprep.mubr.f32.mxu1 %v7230_v19  ;;  %v6165_v28 = vpop.f32.mrf.mxu0 }
 0x855   :  { %3089 = vmatprep.subr.mxu0 %v7289_v6  ;;  %3160 = vmatprep.subr.mxu1 %v7290_v22  ;;  %7291 = vst [vmem:[#allocation27_spill] sm:$0xff] %v6165_v28  ;;  %v6167_v51 = vpop.f32.mrf.mxu1 }
 0x856   :  { %7292 = vst [vmem:[#allocation28_spill] sm:$0xff] %v6167_v51  ;;  %v6169_v15 = vpop.f32.mrf.mxu0 }
 0x857   :  { %7293 = vst [vmem:[#allocation29_spill] sm:$0xff] %v6169_v15  ;;  %v6171_v14 = vpop.f32.mrf.mxu1 }
 0x858   :  { %7294 = vst [vmem:[#allocation30_spill] sm:$0xff] %v6171_v14  ;;  %v6173_v29 = vpop.f32.mrf.mxu0 }
 0x859   :  { %7295 = vst [vmem:[#allocation31_spill] sm:$0xff] %v6173_v29  ;;  %v6175_v16 = vpop.f32.mrf.mxu1 }
 0x85a   :  { %7296 = vst [vmem:[#allocation32_spill] sm:$0xff] %v6175_v16  ;;  %v6177_v19 = vpop.f32.mrf.mxu0 }
 0x85b   :  { %7297 = vst [vmem:[#allocation33_spill] sm:$0xff] %v6177_v19  ;;  %v6179_v6 = vpop.f32.mrf.mxu1 }
 0x85c   :  { %7298 = vst [vmem:[#allocation34_spill] sm:$0xff] %v6179_v6  ;;  %v6181_v22 = vpop.f32.mrf.mxu0 }
 0x85d   :  { %7299 = vst [vmem:[#allocation35_spill] sm:$0xff] %v6181_v22  ;;  %v6183_v31 = vpop.f32.mrf.mxu1 }
 0x85e   :  { %7300 = vst [vmem:[#allocation36_spill] sm:$0xff] %v6183_v31  ;;  %v6185_v26 = vpop.f32.mrf.mxu0 }
 0x85f   :  { %7301 = vst [vmem:[#allocation54_spill] sm:$0xff] %v6185_v26  ;;  %v6187_v28 = vpop.f32.mrf.mxu1 }
 0x860   :  { %7302 = vst [vmem:[#allocation56_spill] sm:$0xff] %v6187_v28  ;;  %v6189_v51 = vpop.f32.mrf.mxu0 }
 0x861   :  { %7303 = vst [vmem:[#allocation57_spill] sm:$0xff] %v6189_v51  ;;  %v6191_v15 = vpop.f32.mrf.mxu1 }
 0x862   :  { %7304 = vst [vmem:[#allocation55_spill] sm:$0xff] %v6191_v15  ;;  %v6193_v14 = vpop.f32.mrf.mxu0  ;;  %v2393_v15 = vld [vmem:[%s6879_s6] sm:$0xf] }
 0x863   :  { %7305 = vst [vmem:[#allocation58_spill] sm:$0xff] %v6193_v14  ;;  %v6195_v29 = vpop.f32.mrf.mxu1  ;;  %v7314_v14 = vld [vmem:[#allocation38_spill] sm:$0xff] }
 0x864   :  { %7306 = vst [vmem:[#allocation60_spill] sm:$0xff] %v6195_v29  ;;  %v6197_v16 = vpop.f32.mrf.mxu0  ;;  %v7315_v29 = vsub.s32 0, %v7314_v14 }
 0x865   :  { %7307 = vst [vmem:[#allocation61_spill] sm:$0xff] %v6197_v16  ;;  %v6199_v19 = vpop.f32.mrf.mxu1 }
 0x866   :  { %7308 = vst [vmem:[#allocation59_spill] sm:$0xff] %v6199_v19  ;;  %v6201_v6 = vpop.f32.mrf.mxu0  ;;  %v6216_v28 = vrot.slane %v2393_v15, %v7315_v29 }
 0x867   :  { %7309 = vst [vmem:[#allocation66_spill] sm:$0xff] %v6201_v6  ;;  %v6203_v22 = vpop.f32.mrf.mxu1 }
 0x868   :  { %7310 = vst [vmem:[#allocation17_spill] sm:$0xff] %v6203_v22  ;;  %v6205_v31 = vpop.f32.mrf.mxu0  ;;  %7316 = vst [vmem:[#allocation64_spill] sm:$0xff] %v6216_v28  ;;  %v7319_v22 = vsub.s32 1, %v7314_v14  ;;  %v2482_v25 = vadd.f32 %v2481_v23, %v6216_v28 }
 0x869   :  { %7311 = vst [vmem:[#allocation37_spill] sm:$0xff] %v6205_v31  ;;  %v6207_v26 = vpop.f32.mrf.mxu1 }
 0x86a   :  { %7312 = vst [vmem:[#allocation40_spill] sm:$0xff] %v6207_v26  ;;  %v6212_v51 = vpop.f32.mrf.mxu0  ;;  %v6224_v6 = vrot.slane %v2393_v15, %v7319_v22  ;;  %v7323_v22 = vsub.s32 3, %v7314_v14 }
 0x86b   :  { %7313 = vst [vmem:[#allocation62_spill] sm:$0xff] %v6212_v51  ;;  %v6218_v16 = vpop.f32.mrf.mxu1 }
 0x86c   :  { %7317 = vst [vmem:[#allocation65_spill] sm:$0xff] %v6218_v16  ;;  %v2484_v51 = vadd.f32 %v2483_v20, %v6224_v6  ;;  %v6236_v59 = vrot.slane %v2393_v15, %v7323_v22 }
 0x86e   :  { %7324 = vst [vmem:[#allocation69_spill] sm:$0xff] %v6236_v59  ;;  %v2597_v23 = vadd.f32 %v2596_v30, %v6236_v59 }
 0x8f0   :  { %v6220_v19 = vpop.f32.mrf.mxu0  ;;  %v6226_v31 = vpop.f32.mrf.mxu1 }
 0x8f1   :  { %7318 = vst [vmem:[#allocation63_spill] sm:$0xff] %v6220_v19  ;;  %7320 = vst [vmem:[#allocation38_spill] sm:$0xff] %v6226_v31 }
 0x8f2   :  { %v6228_v26 = vpop.f32.mrf.mxu0  ;;  %v6232_v12 = vpop.f32.mrf.mxu1 }
 0x8f3   :  { %7321 = vst [vmem:[#allocation67_spill] sm:$0xff] %v6228_v26  ;;  %7322 = vst [vmem:[#allocation68_spill] sm:$0xff] %v6232_v12  ;;  %v7325_v26 = vsub.s32 2, %v7314_v14 }
 0x8f4   :  { %v2807_v13 = vpop.f32.mrf.mxu0  ;;  %v2878_v19 = vpop.f32.mrf.mxu1 }
 0x8f5   :  { %v2883_v29 = vadd.f32 %v2807_v13, %v2482_v25  ;;  %v6241_v20 = vrot.slane %v2393_v15, %v7325_v26 }
 0x8f6   :  { %v2809_v32 = vpop.f32.mrf.mxu0  ;;  %v2880_v31 = vpop.f32.mrf.mxu1 }
 0x8f7   :  { %v4286_v16 = vmul.f32 -1.442695, %v2883_v29  ;;  %v2884_v21 = vadd.f32 %v2809_v32, %v2484_v51  ;;  %v2886_v12 = vadd.f32 %v2880_v31, %v2597_v23  ;;  %v2595_v13 = vadd.f32 %v2594_v17, %v6241_v20  ;;  %v7327_v23 = vld [vmem:[#allocation45_spill] sm:$0xff] }
 0x8f9   :  { %4503 = vpow2.f32 %v4286_v16  ;;  %v4287_v2 = vmul.f32 -1.442695, %v2884_v21  ;;  %v4288_v25 = vmul.f32 -1.442695, %v2886_v12  ;;  %v2885_v51 = vadd.f32 %v2878_v19, %v2595_v13  ;;  %v7328_v13 = vld [vmem:[#allocation43_spill] sm:$0xff] }
 0x8fb   :  { %4505 = vpow2.f32 %v4287_v2 }
 0x8fc   :  { %4507 = vpow2.f32 %v4288_v25  ;;  %v7329_v25 = vld [vmem:[#allocation46_spill] sm:$0xff] }
 0x906   :  { %v4504_v32 = vpop.eup %4503 }
 0x907   :  { %v2890_v16 = vadd.f32 1.0, %v4504_v32  ;;  %v7330_v32 = vld [vmem:[#allocation48_spill] sm:$0xff] }
 0x908   :  { %v4506_v21 = vpop.eup %4505 }
 0x909   :  { %4509 = vrcp.f32 %v2890_v16  ;;  %v2896_v29 = vadd.f32 1.0, %v4506_v21  ;;  %v4508_v2 = vpop.eup %4507  ;;  %v7332_v16 = vld [vmem:[#allocation47_spill] sm:$0xff]  ;;  %v7333_v21 = vld [vmem:[#allocation18_spill] sm:$0xff] }
 0x90a   :  { %4511 = vtanh.f32 %v2885_v51  ;;  %v2903_v14 = vadd.f32 1.0, %v4508_v2  ;;  %v7331_v51 = vld [vmem:[#allocation49_spill] sm:$0xff]  ;;  %v7335_v2 = vld [vmem:[#allocation50_spill] sm:$0xff] }
 0x90b   :  { %4513 = vrcp.f32 %v2896_v29  ;;  %v7334_v29 = vld [vmem:[#allocation19_spill] sm:$0xff] }
 0x90c   :  { %4515 = vrcp.f32 %v2903_v14  ;;  %v7338_v14 = vld [vmem:[#allocation51_spill] sm:$0xff] }
 0x916   :  { %v4510_v22 = vpop.eup %4509 }
 0x917   :  { %v4512_v30 = vpop.eup %4511 }
 0x918   :  { %v4514_v59 = vpop.eup %4513  ;;  %v2907_v15 = vmul.f32 %v4512_v30, %v4510_v22  ;;  %v7336_v22 = vld [vmem:[#allocation52_spill] sm:$0xff]  ;;  %v7337_v30 = vld [vmem:[#allocation53_spill] sm:$0xff] }
 0x919   :  { %v2906_v26 = vmul.f32 0.0, %v4514_v59  ;;  %v4516_v19 = vpop.eup %4515  ;;  %v7326_v59 = vld [vmem:[#allocation44_spill] sm:$0xff] }
 0x91b   :  { %v6244_v31 = vadd.f32 %v2907_v15, %v2906_v26  ;;  %v7339_v26 = vld [vmem:[#allocation20_spill] sm:$0xff]  ;;  %v7340_v15 = vld [vmem:[#allocation21_spill] sm:$0xff] }
 0x91d   :  { %4517 = vtanh.f32 %v6244_v31 }
 0x92a   :  { %v4518_v12 = vpop.eup %4517 }
 0x92b   :  { %v2910_v17 = vmul.f32 %v4518_v12, %v4516_v19  ;;  %v7341_v19 = vld [vmem:[#allocation22_spill] sm:$0xff]  ;;  %v7342_v12 = vld [vmem:[#allocation23_spill] sm:$0xff] }
 0x92d   :  { %2980 = vmatmul.mubr.f32.vlgmr.msra.gmra.mxu0 %v2910_v17  ;;  %3051 = vmatmul.mubr.f32.vlgmr.msra.gmra.mxu1 %v2910_v17  ;;  %v7343_v17 = vld [vmem:[#allocation24_spill] sm:$0xff] }
 0x92e   :  { %3090 = vmatpush1.msra.mxu0 %v5902_v7  ;;  %3161 = vmatpush1.msra.mxu1 %v5904_v33 }
 0x92f   :  { %3091 = vmatprep.subr.mxu0 %v5908_v24  ;;  %3162 = vmatprep.subr.mxu1 %v5910_v35 }
 0x930   :  { %3092 = vmatpush1.msra.mxu0 %v5914_v37  ;;  %3163 = vmatpush1.msra.mxu1 %v5916_v38 }
 0x931   :  { %3093 = vmatprep.subr.mxu0 %v5920_v39  ;;  %3164 = vmatprep.subr.mxu1 %v5922_v40 }
 0x932   :  { %3094 = vmatpush1.msra.mxu0 %v5926_v41  ;;  %3165 = vmatpush1.msra.mxu1 %v5928_v42 }
 0x933   :  { %3095 = vmatprep.subr.mxu0 %v5932_v43  ;;  %3166 = vmatprep.subr.mxu1 %v5934_v44 }
 0x934   :  { %3096 = vmatpush1.msra.mxu0 %v5938_v46  ;;  %3167 = vmatpush1.msra.mxu1 %v5940_v47 }
 0x935   :  { %3097 = vmatprep.subr.mxu0 %v5944_v48  ;;  %3168 = vmatprep.subr.mxu1 %v5946_v49 }
 0x936   :  { %3098 = vmatpush1.msra.mxu0 %v5950_v50  ;;  %3169 = vmatpush1.msra.mxu1 %v5952_v53 }
 0x937   :  { %3099 = vmatprep.subr.mxu0 %v5956_v54  ;;  %3170 = vmatprep.subr.mxu1 %v5958_v34 }
 0x938   :  { %3100 = vmatpush1.msra.mxu0 %v5962_v52  ;;  %3171 = vmatpush1.msra.mxu1 %v5964_v60 }
 0x939   :  { %3101 = vmatprep.subr.mxu0 %v5968_v8  ;;  %3172 = vmatprep.subr.mxu1 %v5970_v45 }
 0x93a   :  { %3102 = vmatpush1.msra.mxu0 %v5974_v27  ;;  %3173 = vmatpush1.msra.mxu1 %v5976_v57 }
 0x93b   :  { %3103 = vmatprep.subr.mxu0 %v5980_v9  ;;  %3174 = vmatprep.subr.mxu1 %v5982_v3 }
 0x93c   :  { %3104 = vmatpush1.msra.mxu0 %v5986_v18  ;;  %3175 = vmatpush1.msra.mxu1 %v5988_v5 }
 0x93d   :  { %3105 = vmatprep.subr.mxu0 %v5992_v55  ;;  %3176 = vmatprep.subr.mxu1 %v5994_v61 }
 0x93e   :  { %3106 = vmatpush1.msra.mxu0 %v5998_v56  ;;  %3177 = vmatpush1.msra.mxu1 %v6000_v58 }
 0x93f   :  { %3107 = vmatprep.subr.mxu0 %v6004_v62  ;;  %3178 = vmatprep.subr.mxu1 %v6006_v36 }
 0x940   :  { %3108 = vmatpush1.msra.mxu0 %v6010_v0  ;;  %3179 = vmatpush1.msra.mxu1 %v6012_v1 }
 0x941   :  { %3109 = vmatprep.subr.mxu0 %v6016_v63  ;;  %3180 = vmatprep.subr.mxu1 %v6018_v4 }
 0x942   :  { %3110 = vmatpush1.msra.mxu0 %v6022_v10  ;;  %3181 = vmatpush1.msra.mxu1 %v6024_v11 }
 0x943   :  { %3111 = vmatprep.subr.mxu0 %v7326_v59  ;;  %3182 = vmatprep.subr.mxu1 %v7327_v23  ;;  %v7353_v23 = vld [vmem:[#allocation28_spill] sm:$0xff] }
 0x944   :  { %3112 = vmatpush1.msra.mxu0 %v7328_v13  ;;  %3183 = vmatpush1.msra.mxu1 %v7329_v25  ;;  %v7351_v25 = vld [vmem:[#allocation69_spill] sm:$0xff] }
 0x945   :  { %3113 = vmatprep.subr.mxu0 %v7330_v32  ;;  %3184 = vmatprep.subr.mxu1 %v7331_v51 }
 0x946   :  { %3114 = vmatpush1.msra.mxu0 %v7332_v16  ;;  %3185 = vmatpush1.msra.mxu1 %v7333_v21  ;;  %v7344_v21 = vld [vmem:[#allocation25_spill] sm:$0xff] }
 0x947   :  { %3115 = vmatprep.subr.mxu0 %v7334_v29  ;;  %3186 = vmatprep.subr.mxu1 %v7335_v2  ;;  %v7345_v29 = vmov 0.0   ;;  %v7346_v2 = vld [vmem:[#allocation26_spill] sm:$0xff] }
 0x948   :  { %3116 = vmatpush1.msra.mxu0 %v7336_v22  ;;  %3187 = vmatpush1.msra.mxu1 %v7337_v30  ;;  %v7347_v30 = vld [vmem:[#allocation41_spill] sm:$0xff] }
 0x949   :  { %3117 = vmatprep.subr.mxu0 %v7338_v14  ;;  %3188 = vmatprep.subr.mxu1 %v7339_v26  ;;  %v7348_v14 = vld [vmem:[#allocation39_spill] sm:$0xff] }
 0x94a   :  { %3118 = vmatpush1.msra.mxu0 %v7340_v15  ;;  %3189 = vmatpush1.msra.mxu1 %v7341_v19  ;;  %v7349_v15 = vld [vmem:[#allocation27_spill] sm:$0xff] }
 0x94b   :  { %3119 = vmatprep.subr.mxu0 %v7342_v12  ;;  %3190 = vmatprep.subr.mxu1 %v7343_v17  ;;  %v2488_v26 = vadd.f32 %v7349_v15, %v6216_v28  ;;  %v7350_v12 = vld [vmem:[#allocation29_spill] sm:$0xff]  ;;  %v2601_v15 = vadd.f32 %v7353_v23, %v6241_v20 }
 0x94c   :  { %3120 = vmatpush1.msra.mxu0 %v7344_v21  ;;  %3153 = vmatprep.mubr.f32.mxu0 %v7345_v29  ;;  %v2490_v22 = vadd.f32 %v7350_v12, %v6224_v6 }
 0x94d   :  { %3191 = vmatpush1.msra.mxu1 %v7346_v2  ;;  %3224 = vmatprep.mubr.f32.mxu1 %v7345_v29 }
 0x94e   :  { %3263 = vmatprep.subr.mxu0 %v7347_v30  ;;  %3334 = vmatprep.subr.mxu1 %v7348_v14  ;;  %v7352_v30 = vld [vmem:[#allocation30_spill] sm:$0xff] }
 0x94f   :  { %v2603_v13 = vadd.f32 %v7352_v30, %v7351_v25 }
 0x9ed   :  { %v2981_v19 = vpop.f32.mrf.mxu0  ;;  %v3052_v32 = vpop.f32.mrf.mxu1 }
 0x9ee   :  { %v3057_v17 = vadd.f32 %v2981_v19, %v2488_v26  ;;  %v3059_v28 = vadd.f32 %v3052_v32, %v2601_v15  ;;  %v7366_v32 = vld [vmem:[#allocation53_spill] sm:$0xff] }
 0x9ef   :  { %v2983_v16 = vpop.f32.mrf.mxu0  ;;  %v3054_v29 = vpop.f32.mrf.mxu1  ;;  %v7369_v15 = vld [vmem:[#allocation21_spill] sm:$0xff] }
 0x9f0   :  { %v4289_v21 = vmul.f32 -1.442695, %v3057_v17  ;;  %v3058_v51 = vadd.f32 %v2983_v16, %v2490_v22  ;;  %v3060_v14 = vadd.f32 %v3054_v29, %v2603_v13  ;;  %v7368_v17 = vld [vmem:[#allocation20_spill] sm:$0xff] }
 0x9f2   :  { %4519 = vpow2.f32 %v4289_v21  ;;  %v4290_v2 = vmul.f32 -1.442695, %v3058_v51  ;;  %v4291_v59 = vmul.f32 -1.442695, %v3060_v14  ;;  %v7367_v14 = vld [vmem:[#allocation51_spill] sm:$0xff] }
 0x9f4   :  { %4521 = vpow2.f32 %v4290_v2 }
 0x9f5   :  { %4523 = vtanh.f32 %v3059_v28 }
 0x9f6   :  { %4525 = vpow2.f32 %v4291_v59  ;;  %v7365_v59 = vld [vmem:[#allocation52_spill] sm:$0xff] }
 0x9ff   :  { %v4520_v11 = vpop.eup %4519 }
 0xa00   :  { %v3064_v12 = vadd.f32 1.0, %v4520_v11 }
 0xa01   :  { %v4522_v26 = vpop.eup %4521 }
 0xa02   :  { %4527 = vrcp.f32 %v3064_v12  ;;  %v3070_v16 = vadd.f32 1.0, %v4522_v26  ;;  %v4524_v51 = vpop.eup %4523  ;;  %v7370_v12 = vld [vmem:[#allocation22_spill] sm:$0xff]  ;;  %v7371_v26 = vld [vmem:[#allocation23_spill] sm:$0xff] }
 0xa03   :  { %v4526_v21 = vpop.eup %4525 }
 0xa04   :  { %4529 = vrcp.f32 %v3070_v16  ;;  %v3077_v30 = vadd.f32 1.0, %v4526_v21  ;;  %v7372_v16 = vld [vmem:[#allocation24_spill] sm:$0xff]  ;;  %v7374_v21 = vmov 0.0  }
 0xa06   :  { %4531 = vrcp.f32 %v3077_v30  ;;  %v7378_v30 = vld [vmem:[#allocation64_spill] sm:$0xff] }
 0xa0f   :  { %v4528_v2 = vpop.eup %4527 }
 0xa10   :  { %v3081_v22 = vmul.f32 %v4528_v2, %v4524_v51  ;;  %v7373_v51 = vld [vmem:[#allocation25_spill] sm:$0xff]  ;;  %v7375_v2 = vld [vmem:[#allocation26_spill] sm:$0xff] }
 0xa11   :  { %v4530_v19 = vpop.eup %4529 }
 0xa12   :  { %v3080_v13 = vmul.f32 %v4530_v19, %v6244_v31  ;;  %v7364_v31 = vld [vmem:[#allocation50_spill] sm:$0xff]  ;;  %v7377_v19 = vld [vmem:[#allocation39_spill] sm:$0xff] }
 0xa13   :  { %v4532_v11 = vpop.eup %4531 }
 0xa14   :  { %v6322_v29 = vadd.f32 %v3081_v22, %v3080_v13  ;;  %v7376_v22 = vld [vmem:[#allocation41_spill] sm:$0xff]  ;;  %v7379_v13 = vld [vmem:[#allocation31_spill] sm:$0xff] }
 0xa16   :  { %4533 = vtanh.f32 %v6322_v29 }
 0xa23   :  { %v4534_v28 = vpop.eup %4533 }
 0xa24   :  { %v3084_v23 = vmul.f32 %v4534_v28, %v4532_v11  ;;  %v2494_v11 = vadd.f32 %v7379_v13, %v7378_v30 }
 0xa26   :  { %3154 = vmatmul.mubr.f32.vlgmr.msra.gmra.mxu0 %v3084_v23  ;;  %3225 = vmatmul.mubr.f32.vlgmr.msra.gmra.mxu1 %v3084_v23  ;;  %v7380_v23 = vld [vmem:[#allocation33_spill] sm:$0xff] }
 0xa27   :  { %3264 = vmatpush1.msra.mxu0 %v5902_v7  ;;  %3335 = vmatpush1.msra.mxu1 %v5904_v33  ;;  %v7354_v7 = vld [vmem:[#allocation42_spill] sm:$0xff]  ;;  %v7355_v33 = vld [vmem:[#allocation44_spill] sm:$0xff] }
 0xa28   :  { %3265 = vmatprep.subr.mxu0 %v5908_v24  ;;  %3336 = vmatprep.subr.mxu1 %v5910_v35  ;;  %v7356_v24 = vld [vmem:[#allocation45_spill] sm:$0xff]  ;;  %v7357_v35 = vld [vmem:[#allocation43_spill] sm:$0xff] }
 0xa29   :  { %3266 = vmatpush1.msra.mxu0 %v5914_v37  ;;  %3337 = vmatpush1.msra.mxu1 %v5916_v38  ;;  %v7358_v37 = vld [vmem:[#allocation46_spill] sm:$0xff]  ;;  %v7359_v38 = vld [vmem:[#allocation48_spill] sm:$0xff] }
 0xa2a   :  { %3267 = vmatprep.subr.mxu0 %v5920_v39  ;;  %3338 = vmatprep.subr.mxu1 %v5922_v40  ;;  %v7360_v39 = vld [vmem:[#allocation49_spill] sm:$0xff]  ;;  %v7361_v40 = vld [vmem:[#allocation47_spill] sm:$0xff] }
 0xa2b   :  { %3268 = vmatpush1.msra.mxu0 %v5926_v41  ;;  %3339 = vmatpush1.msra.mxu1 %v5928_v42  ;;  %v7362_v41 = vld [vmem:[#allocation18_spill] sm:$0xff]  ;;  %v7363_v42 = vld [vmem:[#allocation19_spill] sm:$0xff] }
 0xa2c   :  { %3269 = vmatprep.subr.mxu0 %v5932_v43  ;;  %3340 = vmatprep.subr.mxu1 %v5934_v44 }
 0xa2d   :  { %3270 = vmatpush1.msra.mxu0 %v5938_v46  ;;  %3341 = vmatpush1.msra.mxu1 %v5940_v47 }
 0xa2e   :  { %3271 = vmatprep.subr.mxu0 %v5944_v48  ;;  %3342 = vmatprep.subr.mxu1 %v5946_v49 }
 0xa2f   :  { %3272 = vmatpush1.msra.mxu0 %v5950_v50  ;;  %3343 = vmatpush1.msra.mxu1 %v5952_v53 }
 0xa30   :  { %3273 = vmatprep.subr.mxu0 %v5956_v54  ;;  %3344 = vmatprep.subr.mxu1 %v5958_v34 }
 0xa31   :  { %3274 = vmatpush1.msra.mxu0 %v5962_v52  ;;  %3345 = vmatpush1.msra.mxu1 %v5964_v60 }
 0xa32   :  { %3275 = vmatprep.subr.mxu0 %v5968_v8  ;;  %3346 = vmatprep.subr.mxu1 %v5970_v45 }
 0xa33   :  { %3276 = vmatpush1.msra.mxu0 %v5974_v27  ;;  %3347 = vmatpush1.msra.mxu1 %v5976_v57 }
 0xa34   :  { %3277 = vmatprep.subr.mxu0 %v5980_v9  ;;  %3348 = vmatprep.subr.mxu1 %v5982_v3 }
 0xa35   :  { %3278 = vmatpush1.msra.mxu0 %v5986_v18  ;;  %3349 = vmatpush1.msra.mxu1 %v5988_v5 }
 0xa36   :  { %3279 = vmatprep.subr.mxu0 %v5992_v55  ;;  %3350 = vmatprep.subr.mxu1 %v5994_v61 }
 0xa37   :  { %3280 = vmatpush1.msra.mxu0 %v5998_v56  ;;  %3351 = vmatpush1.msra.mxu1 %v6000_v58 }
 0xa38   :  { %3281 = vmatprep.subr.mxu0 %v6004_v62  ;;  %3352 = vmatprep.subr.mxu1 %v6006_v36 }
 0xa39   :  { %3282 = vmatpush1.msra.mxu0 %v6010_v0  ;;  %3353 = vmatpush1.msra.mxu1 %v6012_v1 }
 0xa3a   :  { %3283 = vmatprep.subr.mxu0 %v6016_v63  ;;  %3354 = vmatprep.subr.mxu1 %v6018_v4 }
 0xa3b   :  { %3284 = vmatpush1.msra.mxu0 %v6022_v10  ;;  %3355 = vmatpush1.msra.mxu1 %v7354_v7 }
 0xa3c   :  { %3285 = vmatprep.subr.mxu0 %v7355_v33  ;;  %3356 = vmatprep.subr.mxu1 %v7356_v24 }
 0xa3d   :  { %3286 = vmatpush1.msra.mxu0 %v7357_v35  ;;  %3357 = vmatpush1.msra.mxu1 %v7358_v37 }
 0xa3e   :  { %3287 = vmatprep.subr.mxu0 %v7359_v38  ;;  %3358 = vmatprep.subr.mxu1 %v7360_v39 }
 0xa3f   :  { %3288 = vmatpush1.msra.mxu0 %v7361_v40  ;;  %3359 = vmatpush1.msra.mxu1 %v7362_v41 }
 0xa40   :  { %3289 = vmatprep.subr.mxu0 %v7363_v42  ;;  %3360 = vmatprep.subr.mxu1 %v7364_v31 }
 0xa41   :  { %3290 = vmatpush1.msra.mxu0 %v7365_v59  ;;  %3361 = vmatpush1.msra.mxu1 %v7366_v32  ;;  %v7382_v32 = vld [vmem:[#allocation32_spill] sm:$0xff] }
 0xa42   :  { %3291 = vmatprep.subr.mxu0 %v7367_v14  ;;  %3362 = vmatprep.subr.mxu1 %v7368_v17  ;;  %v2607_v13 = vadd.f32 %v7382_v32, %v6241_v20 }
 0xa43   :  { %3292 = vmatpush1.msra.mxu0 %v7369_v15  ;;  %3363 = vmatpush1.msra.mxu1 %v7370_v12 }
 0xa44   :  { %3293 = vmatprep.subr.mxu0 %v7371_v26  ;;  %3364 = vmatprep.subr.mxu1 %v7372_v16  ;;  %v2496_v26 = vadd.f32 %v7380_v23, %v6224_v6 }
 0xa45   :  { %3294 = vmatpush1.msra.mxu0 %v7373_v51  ;;  %3327 = vmatprep.mubr.f32.mxu0 %v7374_v21 }
 0xa46   :  { %3365 = vmatpush1.msra.mxu1 %v7375_v2  ;;  %3398 = vmatprep.mubr.f32.mxu1 %v7374_v21 }
 0xa47   :  { %3437 = vmatprep.subr.mxu0 %v7376_v22  ;;  %3508 = vmatprep.subr.mxu1 %v7377_v19  ;;  %v7381_v22 = vld [vmem:[#allocation34_spill] sm:$0xff] }
 0xa48   :  { %v2609_v14 = vadd.f32 %v7381_v22, %v7351_v25  ;;  %v6409_v22 = vld [vmem:[#allocation9 + $0x1c8] sm:$0xff] }
 0xae6   :  { %v3155_v28 = vpop.f32.mrf.mxu0  ;;  %v3226_v17 = vpop.f32.mrf.mxu1 }
 0xae7   :  { %v3231_v16 = vadd.f32 %v3155_v28, %v2494_v11  ;;  %v3233_v30 = vadd.f32 %v3226_v17, %v2607_v13  ;;  %v6418_v13 = vld [vmem:[#allocation9 + $0x1d0] sm:$0xff] }
 0xae8   :  { %v3157_v12 = vpop.f32.mrf.mxu0  ;;  %v3228_v21 = vpop.f32.mrf.mxu1 }
 0xae9   :  { %v4292_v51 = vmul.f32 -1.442695, %v3231_v16  ;;  %v3232_v15 = vadd.f32 %v3157_v12, %v2496_v26  ;;  %v3234_v19 = vadd.f32 %v3228_v21, %v2609_v14 }
 0xaeb   :  { %4535 = vpow2.f32 %v4292_v51  ;;  %v4293_v2 = vmul.f32 -1.442695, %v3232_v15  ;;  %v4294_v59 = vmul.f32 -1.442695, %v3234_v19  ;;  %v6415_v19 = vld [vmem:[#allocation9 + $0x1c0] sm:$0xff] }
 0xaed   :  { %4537 = vpow2.f32 %v4293_v2 }
 0xaee   :  { %4539 = vtanh.f32 %v3233_v30  ;;  %v6406_v30 = vld [vmem:[#allocation9 + $0x1f0] sm:$0xff] }
 0xaef   :  { %4541 = vpow2.f32 %v4294_v59  ;;  %v6403_v59 = vld [vmem:[#allocation9 + $0x1e0] sm:$0xff] }
 0xaf8   :  { %v4536_v31 = vpop.eup %4535 }
 0xaf9   :  { %v3238_v23 = vadd.f32 1.0, %v4536_v31 }
 0xafa   :  { %v4538_v11 = vpop.eup %4537 }
 0xafb   :  { %4543 = vrcp.f32 %v3238_v23  ;;  %v3244_v12 = vadd.f32 1.0, %v4538_v11  ;;  %v4540_v15 = vpop.eup %4539  ;;  %v6421_v23 = vld [vmem:[#allocation9 + $0x1a8] sm:$0xff]  ;;  %v6424_v11 = vld [vmem:[#allocation9 + $0x1b8] sm:$0xff] }
 0xafc   :  { %v4542_v26 = vpop.eup %4541 }
 0xafd   :  { %4545 = vrcp.f32 %v3244_v12  ;;  %v3251_v28 = vadd.f32 1.0, %v4542_v26  ;;  %v6427_v12 = vld [vmem:[#allocation9 + $0x1a0] sm:$0xff] }
 0xaff   :  { %4547 = vrcp.f32 %v3251_v28 }
 0xb08   :  { %v4544_v16 = vpop.eup %4543 }
 0xb09   :  { %v3255_v51 = vmul.f32 %v4544_v16, %v4540_v15  ;;  %v6430_v15 = vld [vmem:[#allocation9 + $0x1b0] sm:$0xff] }
 0xb0a   :  { %v4546_v2 = vpop.eup %4545 }
 0xb0b   :  { %v3254_v14 = vmul.f32 %v4546_v2, %v6322_v29  ;;  %v6412_v29 = vld [vmem:[#allocation9 + $0x1d8] sm:$0xff] }
 0xb0c   :  { %v4548_v31 = vpop.eup %4547 }
 0xb0d   :  { %v6400_v21 = vadd.f32 %v3255_v51, %v3254_v14 }
 0xb0f   :  { %4549 = vtanh.f32 %v6400_v21 }
 0xb1c   :  { %v4550_v32 = vpop.eup %4549 }
 0xb1d   :  { %v3258_v17 = vmul.f32 %v4550_v32, %v4548_v31 }
 0xb1f   :  { %3328 = vmatmul.mubr.f32.vlgmr.msra.gmra.mxu0 %v3258_v17  ;;  %3399 = vmatmul.mubr.f32.vlgmr.msra.gmra.mxu1 %v3258_v17  ;;  %v6518_v17 = vld [vmem:[#allocation9 + $0x198] sm:$0xff] }
 0xb20   :  { %3438 = vmatpush1.msra.mxu0 %v6403_v59  ;;  %3509 = vmatpush1.msra.mxu1 %v6406_v30 }
 0xb21   :  { %3439 = vmatprep.subr.mxu0 %v6409_v22  ;;  %3510 = vmatprep.subr.mxu1 %v6412_v29 }
 0xb22   :  { %3440 = vmatpush1.msra.mxu0 %v6415_v19  ;;  %3511 = vmatpush1.msra.mxu1 %v6418_v13 }
 0xb23   :  { %3441 = vmatprep.subr.mxu0 %v6421_v23  ;;  %3512 = vmatprep.subr.mxu1 %v6424_v11 }
 0xb24   :  { %3442 = vmatpush1.msra.mxu0 %v6427_v12  ;;  %3513 = vmatpush1.msra.mxu1 %v6430_v15 }
 0xb25   :  { %3443 = vmatprep.subr.mxu0 %v5932_v43  ;;  %3514 = vmatprep.subr.mxu1 %v5934_v44  ;;  %v7383_v43 = vld [vmem:[#allocation50_spill] sm:$0xff]  ;;  %v7384_v44 = vld [vmem:[#allocation52_spill] sm:$0xff] }
 0xb26   :  { %3444 = vmatpush1.msra.mxu0 %v5938_v46  ;;  %3515 = vmatpush1.msra.mxu1 %v5940_v47  ;;  %v7385_v46 = vld [vmem:[#allocation53_spill] sm:$0xff]  ;;  %v7386_v47 = vld [vmem:[#allocation51_spill] sm:$0xff] }
 0xb27   :  { %3445 = vmatprep.subr.mxu0 %v5944_v48  ;;  %3516 = vmatprep.subr.mxu1 %v5946_v49  ;;  %v7387_v48 = vld [vmem:[#allocation20_spill] sm:$0xff]  ;;  %v7388_v49 = vld [vmem:[#allocation21_spill] sm:$0xff] }
 0xb28   :  { %3446 = vmatpush1.msra.mxu0 %v5950_v50  ;;  %3517 = vmatpush1.msra.mxu1 %v5952_v53  ;;  %v7389_v50 = vld [vmem:[#allocation22_spill] sm:$0xff]  ;;  %v7390_v53 = vld [vmem:[#allocation23_spill] sm:$0xff] }
 0xb29   :  { %3447 = vmatprep.subr.mxu0 %v5956_v54  ;;  %3518 = vmatprep.subr.mxu1 %v5958_v34  ;;  %v7391_v54 = vld [vmem:[#allocation24_spill] sm:$0xff]  ;;  %v7392_v34 = vld [vmem:[#allocation25_spill] sm:$0xff] }
 0xb2a   :  { %3448 = vmatpush1.msra.mxu0 %v5962_v52  ;;  %3519 = vmatpush1.msra.mxu1 %v5964_v60  ;;  %v7393_v52 = vmov 0.0   ;;  %v7394_v60 = vld [vmem:[#allocation26_spill] sm:$0xff] }
 0xb2b   :  { %3449 = vmatprep.subr.mxu0 %v5968_v8  ;;  %3520 = vmatprep.subr.mxu1 %v5970_v45  ;;  %v6487_v8 = vld [vmem:[#allocation9 + $0x1e8] sm:$0xff]  ;;  %v6490_v45 = vld [vmem:[#allocation9 + $0x1f8] sm:$0xff] }
 0xb2c   :  { %3450 = vmatpush1.msra.mxu0 %v5974_v27  ;;  %3521 = vmatpush1.msra.mxu1 %v5976_v57  ;;  %7395 = vst [vmem:[#allocation27_spill] sm:$0xff] %v6487_v8  ;;  %7396 = vst [vmem:[#allocation29_spill] sm:$0xff] %v6490_v45  ;;  %v7397_v27 = vld [vmem:[#allocation64_spill] sm:$0xff]  ;;  %v7398_v57 = vld [vmem:[#allocation35_spill] sm:$0xff] }
 0xb2d   :  { %3451 = vmatprep.subr.mxu0 %v5980_v9  ;;  %3522 = vmatprep.subr.mxu1 %v5982_v3  ;;  %v2500_v9 = vadd.f32 %v7398_v57, %v7397_v27  ;;  %v6554_v57 = vld [vmem:[#allocation9 + $0x138] sm:$0xff] }
 0xb2e   :  { %3452 = vmatpush1.msra.mxu0 %v5986_v18  ;;  %3523 = vmatpush1.msra.mxu1 %v5988_v5  ;;  %v7399_v18 = vld [vmem:[#allocation54_spill] sm:$0xff] }
 0xb2f   :  { %3453 = vmatprep.subr.mxu0 %v5992_v55  ;;  %3524 = vmatprep.subr.mxu1 %v5994_v61  ;;  %v2502_v5 = vadd.f32 %v7399_v18, %v6224_v6  ;;  %v6563_v18 = vld [vmem:[#allocation9 + $0x108] sm:$0xff] }
 0xb30   :  { %3454 = vmatpush1.msra.mxu0 %v5998_v56  ;;  %3525 = vmatpush1.msra.mxu1 %v6000_v58 }
 0xb31   :  { %3455 = vmatprep.subr.mxu0 %v6004_v62  ;;  %3526 = vmatprep.subr.mxu1 %v6006_v36 }
 0xb32   :  { %3456 = vmatpush1.msra.mxu0 %v6010_v0  ;;  %3527 = vmatpush1.msra.mxu1 %v6012_v1  ;;  %v7400_v1 = vld [vmem:[#allocation56_spill] sm:$0xff] }
 0xb33   :  { %3457 = vmatprep.subr.mxu0 %v6016_v63  ;;  %3528 = vmatprep.subr.mxu1 %v6018_v4  ;;  %v2615_v63 = vadd.f32 %v7400_v1, %v7351_v25  ;;  %v6590_v1 = vld [vmem:[#allocation9 + $0xd8] sm:$0xff] }
 0xb34   :  { %3458 = vmatpush1.msra.mxu0 %v6022_v10  ;;  %3529 = vmatpush1.msra.mxu1 %v7354_v7  ;;  %v7401_v10 = vld [vmem:[#allocation36_spill] sm:$0xff] }
 0xb35   :  { %3459 = vmatprep.subr.mxu0 %v7355_v33  ;;  %3530 = vmatprep.subr.mxu1 %v7356_v24  ;;  %v2613_v7 = vadd.f32 %v7401_v10, %v6241_v20  ;;  %v6599_v10 = vld [vmem:[#allocation9 + $0xa8] sm:$0xff] }
 0xb36   :  { %3460 = vmatpush1.msra.mxu0 %v7357_v35  ;;  %3531 = vmatpush1.msra.mxu1 %v7358_v37 }
 0xb37   :  { %3461 = vmatprep.subr.mxu0 %v7359_v38  ;;  %3532 = vmatprep.subr.mxu1 %v7360_v39 }
 0xb38   :  { %3462 = vmatpush1.msra.mxu0 %v7361_v40  ;;  %3533 = vmatpush1.msra.mxu1 %v7362_v41 }
 0xb39   :  { %3463 = vmatprep.subr.mxu0 %v7363_v42  ;;  %3534 = vmatprep.subr.mxu1 %v7383_v43  ;;  %v6521_v43 = vld [vmem:[#allocation9 + $0x180] sm:$0xff] }
 0xb3a   :  { %3464 = vmatpush1.msra.mxu0 %v7384_v44  ;;  %3535 = vmatpush1.msra.mxu1 %v7385_v46  ;;  %v6524_v44 = vld [vmem:[#allocation9 + $0x190] sm:$0xff]  ;;  %v6527_v46 = vld [vmem:[#allocation9 + $0x168] sm:$0xff] }
 0xb3b   :  { %3465 = vmatprep.subr.mxu0 %v7386_v47  ;;  %3536 = vmatprep.subr.mxu1 %v7387_v48  ;;  %v6530_v47 = vld [vmem:[#allocation9 + $0x178] sm:$0xff]  ;;  %v6533_v48 = vld [vmem:[#allocation9 + $0x160] sm:$0xff] }
 0xb3c   :  { %3466 = vmatpush1.msra.mxu0 %v7388_v49  ;;  %3537 = vmatpush1.msra.mxu1 %v7389_v50  ;;  %v6536_v49 = vld [vmem:[#allocation9 + $0x170] sm:$0xff]  ;;  %v6539_v50 = vld [vmem:[#allocation9 + $0x148] sm:$0xff] }
 0xb3d   :  { %3467 = vmatprep.subr.mxu0 %v7390_v53  ;;  %3538 = vmatprep.subr.mxu1 %v7391_v54  ;;  %v6542_v53 = vld [vmem:[#allocation9 + $0x158] sm:$0xff]  ;;  %v6545_v54 = vld [vmem:[#allocation9 + $0x140] sm:$0xff] }
 0xb3e   :  { %3468 = vmatpush1.msra.mxu0 %v7392_v34  ;;  %3501 = vmatprep.mubr.f32.mxu0 %v7393_v52  ;;  %v6548_v34 = vld [vmem:[#allocation9 + $0x150] sm:$0xff] }
 0xb3f   :  { %3539 = vmatpush1.msra.mxu1 %v7394_v60  ;;  %3572 = vmatprep.mubr.f32.mxu1 %v7393_v52  ;;  %v6551_v60 = vld [vmem:[#allocation9 + $0x128] sm:$0xff] }
 0xb40   :  { %3611 = vmatprep.subr.mxu0 %v6487_v8  ;;  %3682 = vmatprep.subr.mxu1 %v6490_v45 }
 0xbdf   :  { %v3329_v3 = vpop.f32.mrf.mxu0  ;;  %v3400_v62 = vpop.f32.mrf.mxu1 }
 0xbe0   :  { %v3405_v55 = vadd.f32 %v3329_v3, %v2500_v9  ;;  %v3407_v33 = vadd.f32 %v3400_v62, %v2613_v7  ;;  %v6557_v9 = vld [vmem:[#allocation9 + $0x120] sm:$0xff]  ;;  %v6560_v3 = vld [vmem:[#allocation9 + $0x130] sm:$0xff]  ;;  %v6602_v7 = vld [vmem:[#allocation9 + $0xb8] sm:$0xff] }
 0xbe1   :  { %v3331_v61 = vpop.f32.mrf.mxu0  ;;  %v3402_v0 = vpop.f32.mrf.mxu1  ;;  %v6581_v62 = vld [vmem:[#allocation9 + $0xe0] sm:$0xff] }
 0xbe2   :  { %v4295_v56 = vmul.f32 -1.442695, %v3405_v55  ;;  %v3406_v58 = vadd.f32 %v3331_v61, %v2502_v5  ;;  %v3408_v4 = vadd.f32 %v3402_v0, %v2615_v63  ;;  %v6566_v5 = vld [vmem:[#allocation9 + $0x118] sm:$0xff]  ;;  %v6569_v55 = vld [vmem:[#allocation9 + $0x100] sm:$0xff]  ;;  %v6572_v61 = vld [vmem:[#allocation9 + $0x110] sm:$0xff] }
 0xbe3   :  { %v6587_v0 = vld [vmem:[#allocation9 + $0xc8] sm:$0xff]  ;;  %v6593_v63 = vld [vmem:[#allocation9 + $0xc0] sm:$0xff] }
 0xbe4   :  { %4551 = vpow2.f32 %v4295_v56  ;;  %v4296_v36 = vmul.f32 -1.442695, %v3406_v58  ;;  %v4297_v24 = vmul.f32 -1.442695, %v3408_v4  ;;  %v6575_v56 = vld [vmem:[#allocation9 + $0xe8] sm:$0xff]  ;;  %v6578_v58 = vld [vmem:[#allocation9 + $0xf8] sm:$0xff] }
 0xbe5   :  { %v6596_v4 = vld [vmem:[#allocation9 + $0xd0] sm:$0xff] }
 0xbe6   :  { %4553 = vpow2.f32 %v4296_v36  ;;  %v6584_v36 = vld [vmem:[#allocation9 + $0xf0] sm:$0xff] }
 0xbe7   :  { %4555 = vtanh.f32 %v3407_v33  ;;  %v6605_v33 = vld [vmem:[#allocation9 + $0xa0] sm:$0xff] }
 0xbe8   :  { %4557 = vpow2.f32 %v4297_v24  ;;  %v6608_v24 = vld [vmem:[#allocation9 + $0xb0] sm:$0xff] }
 0xbe9   :  { %7402 = vst [vmem:[#allocation69_spill] sm:$0xff] %v6608_v24 }
 0xbf1   :  { %v4552_v35 = vpop.eup %4551 }
 0xbf2   :  { %v3412_v37 = vadd.f32 1.0, %v4552_v35  ;;  %v6611_v35 = vld [vmem:[#allocation9 + $0x88] sm:$0xff] }
 0xbf3   :  { %v4554_v38 = vpop.eup %4553  ;;  %7403 = vst [vmem:[#allocation30_spill] sm:$0xff] %v6611_v35 }
 0xbf4   :  { %4559 = vrcp.f32 %v3412_v37  ;;  %v3418_v39 = vadd.f32 1.0, %v4554_v38  ;;  %v4556_v40 = vpop.eup %4555  ;;  %v6614_v37 = vld [vmem:[#allocation9 + $0x98] sm:$0xff]  ;;  %v6617_v38 = vld [vmem:[#allocation9 + $0x80] sm:$0xff] }
 0xbf5   :  { %v4558_v41 = vpop.eup %4557  ;;  %7404 = vst [vmem:[#allocation28_spill] sm:$0xff] %v6614_v37  ;;  %7405 = vst [vmem:[#allocation42_spill] sm:$0xff] %v6617_v38 }
 0xbf6   :  { %4561 = vrcp.f32 %v3418_v39  ;;  %v3425_v51 = vadd.f32 1.0, %v4558_v41  ;;  %v6620_v39 = vld [vmem:[#allocation9 + $0x90] sm:$0xff]  ;;  %v6626_v41 = vld [vmem:[#allocation9 + $0x78] sm:$0xff] }
 0xbf7   :  { %7406 = vst [vmem:[#allocation44_spill] sm:$0xff] %v6620_v39  ;;  %7408 = vst [vmem:[#allocation43_spill] sm:$0xff] %v6626_v41 }
 0xbf8   :  { %4563 = vrcp.f32 %v3425_v51  ;;  %v6638_v51 = vld [vmem:[#allocation9 + $0x58] sm:$0xff] }
 0xbf9   :  { %7412 = vst [vmem:[#allocation47_spill] sm:$0xff] %v6638_v51 }
 0xc01   :  { %v4560_v42 = vpop.eup %4559 }
 0xc02   :  { %v3429_v26 = vmul.f32 %v4560_v42, %v4556_v40  ;;  %v6623_v40 = vld [vmem:[#allocation9 + $0x68] sm:$0xff]  ;;  %v6629_v42 = vld [vmem:[#allocation9 + $0x60] sm:$0xff] }
 0xc03   :  { %v4562_v16 = vpop.eup %4561  ;;  %7407 = vst [vmem:[#allocation45_spill] sm:$0xff] %v6623_v40  ;;  %7409 = vst [vmem:[#allocation46_spill] sm:$0xff] %v6629_v42 }
 0xc04   :  { %v3428_v2 = vmul.f32 %v4562_v16, %v6400_v21  ;;  %v6515_v21 = vld [vmem:[#allocation9 + $0x188] sm:$0xff] }
 0xc05   :  { %v4564_v14 = vpop.eup %4563  ;;  %v6635_v16 = vld [vmem:[#allocation9 + $0x48] sm:$0xff] }
 0xc06   :  { %v6502_v28 = vadd.f32 %v3429_v26, %v3428_v2  ;;  %v6632_v26 = vld [vmem:[#allocation9 + $0x70] sm:$0xff]  ;;  %7411 = vst [vmem:[#allocation49_spill] sm:$0xff] %v6635_v16  ;;  %v6641_v2 = vld [vmem:[#allocation9 + $0x40] sm:$0xff] }
 0xc07   :  { %7410 = vst [vmem:[#allocation48_spill] sm:$0xff] %v6632_v26  ;;  %7413 = vst [vmem:[#allocation18_spill] sm:$0xff] %v6641_v2 }
 0xc08   :  { %4565 = vtanh.f32 %v6502_v28 }
 0xc15   :  { %v4566_v31 = vpop.eup %4565 }
 0xc16   :  { %v3432_v32 = vmul.f32 %v4566_v31, %v4564_v14  ;;  %v6644_v14 = vld [vmem:[#allocation9 + $0x50] sm:$0xff]  ;;  %v6647_v31 = vld [vmem:[#allocation9 + $0x28] sm:$0xff] }
 0xc17   :  { %7414 = vst [vmem:[#allocation19_spill] sm:$0xff] %v6644_v14  ;;  %7415 = vst [vmem:[#allocation41_spill] sm:$0xff] %v6647_v31 }
 0xc18   :  { %3502 = vmatmul.mubr.f32.vlgmr.msra.gmra.mxu0 %v3432_v32  ;;  %3573 = vmatmul.mubr.f32.vlgmr.msra.gmra.mxu1 %v3432_v32  ;;  %v6650_v32 = vld [vmem:[#allocation9 + $0x38] sm:$0xff] }
 0xc19   :  { %3612 = vmatpush1.msra.mxu0 %v6403_v59  ;;  %3683 = vmatpush1.msra.mxu1 %v6406_v30  ;;  %7416 = vst [vmem:[#allocation39_spill] sm:$0xff] %v6650_v32 }
 0xc1a   :  { %3613 = vmatprep.subr.mxu0 %v6409_v22  ;;  %3684 = vmatprep.subr.mxu1 %v6412_v29 }
 0xc1b   :  { %3614 = vmatpush1.msra.mxu0 %v6415_v19  ;;  %3685 = vmatpush1.msra.mxu1 %v6418_v13 }
 0xc1c   :  { %3615 = vmatprep.subr.mxu0 %v6421_v23  ;;  %3686 = vmatprep.subr.mxu1 %v6424_v11 }
 0xc1d   :  { %3616 = vmatpush1.msra.mxu0 %v6427_v12  ;;  %3687 = vmatpush1.msra.mxu1 %v6430_v15 }
 0xc1e   :  { %3617 = vmatprep.subr.mxu0 %v6515_v21  ;;  %3688 = vmatprep.subr.mxu1 %v6518_v17 }
 0xc1f   :  { %3618 = vmatpush1.msra.mxu0 %v6521_v43  ;;  %3689 = vmatpush1.msra.mxu1 %v6524_v44 }
 0xc20   :  { %3619 = vmatprep.subr.mxu0 %v6527_v46  ;;  %3690 = vmatprep.subr.mxu1 %v6530_v47 }
 0xc21   :  { %3620 = vmatpush1.msra.mxu0 %v6533_v48  ;;  %3691 = vmatpush1.msra.mxu1 %v6536_v49 }
 0xc22   :  { %3621 = vmatprep.subr.mxu0 %v6539_v50  ;;  %3692 = vmatprep.subr.mxu1 %v6542_v53 }
 0xc23   :  { %3622 = vmatpush1.msra.mxu0 %v6545_v54  ;;  %3693 = vmatpush1.msra.mxu1 %v6548_v34 }
 0xc24   :  { %3623 = vmatprep.subr.mxu0 %v6551_v60  ;;  %3694 = vmatprep.subr.mxu1 %v6554_v57 }
 0xc25   :  { %3624 = vmatpush1.msra.mxu0 %v6557_v9  ;;  %3695 = vmatpush1.msra.mxu1 %v6560_v3 }
 0xc26   :  { %3625 = vmatprep.subr.mxu0 %v6563_v18  ;;  %3696 = vmatprep.subr.mxu1 %v6566_v5 }
 0xc27   :  { %3626 = vmatpush1.msra.mxu0 %v6569_v55  ;;  %3697 = vmatpush1.msra.mxu1 %v6572_v61 }
 0xc28   :  { %3627 = vmatprep.subr.mxu0 %v6575_v56  ;;  %3698 = vmatprep.subr.mxu1 %v6578_v58 }
 0xc29   :  { %3628 = vmatpush1.msra.mxu0 %v6581_v62  ;;  %3699 = vmatpush1.msra.mxu1 %v6584_v36 }
 0xc2a   :  { %3629 = vmatprep.subr.mxu0 %v6587_v0  ;;  %3700 = vmatprep.subr.mxu1 %v6590_v1 }
 0xc2b   :  { %3630 = vmatpush1.msra.mxu0 %v6593_v63  ;;  %3701 = vmatpush1.msra.mxu1 %v6596_v4 }
 0xc2c   :  { %3631 = vmatprep.subr.mxu0 %v6599_v10  ;;  %3702 = vmatprep.subr.mxu1 %v6602_v7 }
 0xc2d   :  { %3632 = vmatpush1.msra.mxu0 %v6605_v33  ;;  %3703 = vmatpush1.msra.mxu1 %v6608_v24 }
 0xc2e   :  { %3633 = vmatprep.subr.mxu0 %v6611_v35  ;;  %3704 = vmatprep.subr.mxu1 %v6614_v37  ;;  %v7426_v37 = vld [vmem:[#allocation55_spill] sm:$0xff] }
 0xc2f   :  { %3634 = vmatpush1.msra.mxu0 %v6617_v38  ;;  %3705 = vmatpush1.msra.mxu1 %v6620_v39 }
 0xc30   :  { %3635 = vmatprep.subr.mxu0 %v6623_v40  ;;  %3706 = vmatprep.subr.mxu1 %v6626_v41 }
 0xc31   :  { %3636 = vmatpush1.msra.mxu0 %v6629_v42  ;;  %3707 = vmatpush1.msra.mxu1 %v6632_v26 }
 0xc32   :  { %3637 = vmatprep.subr.mxu0 %v6635_v16  ;;  %3708 = vmatprep.subr.mxu1 %v6638_v51  ;;  %v6653_v16 = vld [vmem:[#allocation9 + $0x20] sm:$0xff]  ;;  %v6656_v51 = vld [vmem:[#allocation9 + $0x30] sm:$0xff] }
 0xc33   :  { %3638 = vmatpush1.msra.mxu0 %v6641_v2  ;;  %3709 = vmatpush1.msra.mxu1 %v6644_v14  ;;  %7417 = vst [vmem:[#allocation31_spill] sm:$0xff] %v6653_v16  ;;  %7418 = vst [vmem:[#allocation33_spill] sm:$0xff] %v6656_v51  ;;  %v6659_v2 = vld [vmem:[#allocation9 + $0x8] sm:$0xff]  ;;  %v6662_v14 = vld [vmem:[#allocation9 + $0x18] sm:$0xff] }
 0xc34   :  { %3639 = vmatprep.subr.mxu0 %v6647_v31  ;;  %3710 = vmatprep.subr.mxu1 %v6650_v32  ;;  %7419 = vst [vmem:[#allocation34_spill] sm:$0xff] %v6659_v2  ;;  %7420 = vst [vmem:[#allocation32_spill] sm:$0xff] %v6662_v14  ;;  %v6665_v31 = vld [vmem:[#allocation9] sm:$0xff]  ;;  %v6669_v32 = vld [vmem:[#allocation9 + $0x10] sm:$0xff] }
 0xc35   :  { %3640 = vmatpush1.msra.mxu0 %v6653_v16  ;;  %3711 = vmatpush1.msra.mxu1 %v6656_v51  ;;  %7421 = vst [vmem:[#allocation50_spill] sm:$0xff] %v6665_v31  ;;  %7422 = vst [vmem:[#allocation52_spill] sm:$0xff] %v6669_v32  ;;  %v7424_v16 = vld [vmem:[#allocation58_spill] sm:$0xff] }
 0xc36   :  { %3641 = vmatprep.subr.mxu0 %v6659_v2  ;;  %3712 = vmatprep.subr.mxu1 %v6662_v14  ;;  %v7423_v2 = vld [vmem:[#allocation57_spill] sm:$0xff]  ;;  %v2508_v26 = vadd.f32 %v7424_v16, %v6224_v6 }
 0xc37   :  { %3642 = vmatpush1.msra.mxu0 %v6665_v31  ;;  %3675 = vmatprep.mubr.f32.mxu0 %v7393_v52  ;;  %v2506_v51 = vadd.f32 %v7423_v2, %v7397_v27  ;;  %v2619_v2 = vadd.f32 %v7426_v37, %v6241_v20  ;;  %v7429_v37 = vld [vmem:[#allocation28_spill] sm:$0xff] }
 0xc38   :  { %3713 = vmatpush1.msra.mxu1 %v6669_v32  ;;  %3746 = vmatprep.mubr.f32.mxu1 %v7393_v52 }
 0xc39   :  { %3785 = vmatprep.subr.mxu0 %v6487_v8  ;;  %3856 = vmatprep.subr.mxu1 %v6490_v45  ;;  %v7425_v8 = vld [vmem:[#allocation60_spill] sm:$0xff] }
 0xc3a   :  { %v2621_v38 = vadd.f32 %v7425_v8, %v7351_v25 }
 0xcd8   :  { %v3503_v14 = vpop.f32.mrf.mxu0  ;;  %v3574_v39 = vpop.f32.mrf.mxu1 }
 0xcd9   :  { %v3579_v31 = vadd.f32 %v3503_v14, %v2506_v51  ;;  %v3581_v27 = vadd.f32 %v3574_v39, %v2619_v2  ;;  %v7430_v39 = vld [vmem:[#allocation42_spill] sm:$0xff]  ;;  %v7432_v2 = vld [vmem:[#allocation45_spill] sm:$0xff] }
 0xcda   :  { %v3505_v42 = vpop.f32.mrf.mxu0  ;;  %v3576_v52 = vpop.f32.mrf.mxu1 }
 0xcdb   :  { %v4298_v41 = vmul.f32 -1.442695, %v3579_v31  ;;  %v3580_v40 = vadd.f32 %v3505_v42, %v2508_v26  ;;  %v3582_v45 = vadd.f32 %v3576_v52, %v2621_v38 }
 0xcdd   :  { %4567 = vpow2.f32 %v4298_v41  ;;  %v4299_v32 = vmul.f32 -1.442695, %v3580_v40  ;;  %v4300_v35 = vmul.f32 -1.442695, %v3582_v45 }
 0xcdf   :  { %4569 = vpow2.f32 %v4299_v32  ;;  %v7431_v32 = vld [vmem:[#allocation44_spill] sm:$0xff] }
 0xce0   :  { %4571 = vtanh.f32 %v3581_v27 }
 0xce1   :  { %4573 = vpow2.f32 %v4300_v35  ;;  %v7428_v35 = vld [vmem:[#allocation30_spill] sm:$0xff] }
 0xcea   :  { %v4568_v24 = vpop.eup %4567 }
 0xceb   :  { %v3586_v16 = vadd.f32 1.0, %v4568_v24 }
 0xcec   :  { %v4570_v51 = vpop.eup %4569 }
 0xced   :  { %4575 = vrcp.f32 %v3586_v16  ;;  %v3592_v41 = vadd.f32 1.0, %v4570_v51  ;;  %v4572_v40 = vpop.eup %4571  ;;  %v7433_v16 = vld [vmem:[#allocation43_spill] sm:$0xff]  ;;  %v7434_v51 = vld [vmem:[#allocation46_spill] sm:$0xff] }
 0xcee   :  { %v4574_v42 = vpop.eup %4573 }
 0xcef   :  { %4577 = vrcp.f32 %v3592_v41  ;;  %v3599_v8 = vadd.f32 1.0, %v4574_v42  ;;  %v7435_v41 = vld [vmem:[#allocation48_spill] sm:$0xff]  ;;  %v7437_v42 = vld [vmem:[#allocation47_spill] sm:$0xff] }
 0xcf1   :  { %4579 = vrcp.f32 %v3599_v8  ;;  %v7441_v8 = vld [vmem:[#allocation39_spill] sm:$0xff] }
 0xcfa   :  { %v4576_v26 = vpop.eup %4575 }
 0xcfb   :  { %v3603_v14 = vmul.f32 %v4576_v26, %v4572_v40  ;;  %v7436_v40 = vld [vmem:[#allocation49_spill] sm:$0xff]  ;;  %v7438_v26 = vld [vmem:[#allocation18_spill] sm:$0xff] }
 0xcfc   :  { %v4578_v31 = vpop.eup %4577 }
 0xcfd   :  { %v3602_v52 = vmul.f32 %v4578_v31, %v6502_v28  ;;  %v7427_v28 = vld [vmem:[#allocation69_spill] sm:$0xff] }
 0xcfe   :  { %v4580_v45 = vpop.eup %4579  ;;  %v7440_v31 = vld [vmem:[#allocation41_spill] sm:$0xff] }
 0xcff   :  { %v6684_v38 = vadd.f32 %v3603_v14, %v3602_v52  ;;  %v7439_v14 = vld [vmem:[#allocation19_spill] sm:$0xff] }
 0xd00   :  { %v7442_v52 = vld [vmem:[#allocation31_spill] sm:$0xff] }
 0xd01   :  { %4581 = vtanh.f32 %v6684_v38 }
 0xd0e   :  { %v4582_v27 = vpop.eup %4581 }
 0xd0f   :  { %v3606_v24 = vmul.f32 %v4582_v27, %v4580_v45  ;;  %v7443_v45 = vld [vmem:[#allocation33_spill] sm:$0xff]  ;;  %v7444_v27 = vld [vmem:[#allocation34_spill] sm:$0xff] }
 0xd11   :  { %3676 = vmatmul.mubr.f32.vlgmr.msra.gmra.mxu0 %v3606_v24  ;;  %3747 = vmatmul.mubr.f32.vlgmr.msra.gmra.mxu1 %v3606_v24  ;;  %v7445_v24 = vld [vmem:[#allocation32_spill] sm:$0xff] }
 0xd12   :  { %3786 = vmatpush1.msra.mxu0 %v6403_v59  ;;  %3857 = vmatpush1.msra.mxu1 %v6406_v30 }
 0xd13   :  { %3787 = vmatprep.subr.mxu0 %v6409_v22  ;;  %3858 = vmatprep.subr.mxu1 %v6412_v29 }
 0xd14   :  { %3788 = vmatpush1.msra.mxu0 %v6415_v19  ;;  %3859 = vmatpush1.msra.mxu1 %v6418_v13 }
 0xd15   :  { %3789 = vmatprep.subr.mxu0 %v6421_v23  ;;  %3860 = vmatprep.subr.mxu1 %v6424_v11 }
 0xd16   :  { %3790 = vmatpush1.msra.mxu0 %v6427_v12  ;;  %3861 = vmatpush1.msra.mxu1 %v6430_v15 }
 0xd17   :  { %3791 = vmatprep.subr.mxu0 %v6515_v21  ;;  %3862 = vmatprep.subr.mxu1 %v6518_v17 }
 0xd18   :  { %3792 = vmatpush1.msra.mxu0 %v6521_v43  ;;  %3863 = vmatpush1.msra.mxu1 %v6524_v44 }
 0xd19   :  { %3793 = vmatprep.subr.mxu0 %v6527_v46  ;;  %3864 = vmatprep.subr.mxu1 %v6530_v47 }
 0xd1a   :  { %3794 = vmatpush1.msra.mxu0 %v6533_v48  ;;  %3865 = vmatpush1.msra.mxu1 %v6536_v49 }
 0xd1b   :  { %3795 = vmatprep.subr.mxu0 %v6539_v50  ;;  %3866 = vmatprep.subr.mxu1 %v6542_v53 }
 0xd1c   :  { %3796 = vmatpush1.msra.mxu0 %v6545_v54  ;;  %3867 = vmatpush1.msra.mxu1 %v6548_v34 }
 0xd1d   :  { %3797 = vmatprep.subr.mxu0 %v6551_v60  ;;  %3868 = vmatprep.subr.mxu1 %v6554_v57 }
 0xd1e   :  { %3798 = vmatpush1.msra.mxu0 %v6557_v9  ;;  %3869 = vmatpush1.msra.mxu1 %v6560_v3 }
 0xd1f   :  { %3799 = vmatprep.subr.mxu0 %v6563_v18  ;;  %3870 = vmatprep.subr.mxu1 %v6566_v5 }
 0xd20   :  { %3800 = vmatpush1.msra.mxu0 %v6569_v55  ;;  %3871 = vmatpush1.msra.mxu1 %v6572_v61 }
 0xd21   :  { %3801 = vmatprep.subr.mxu0 %v6575_v56  ;;  %3872 = vmatprep.subr.mxu1 %v6578_v58 }
 0xd22   :  { %3802 = vmatpush1.msra.mxu0 %v6581_v62  ;;  %3873 = vmatpush1.msra.mxu1 %v6584_v36 }
 0xd23   :  { %3803 = vmatprep.subr.mxu0 %v6587_v0  ;;  %3874 = vmatprep.subr.mxu1 %v6590_v1 }
 0xd24   :  { %3804 = vmatpush1.msra.mxu0 %v6593_v63  ;;  %3875 = vmatpush1.msra.mxu1 %v6596_v4 }
 0xd25   :  { %3805 = vmatprep.subr.mxu0 %v6599_v10  ;;  %3876 = vmatprep.subr.mxu1 %v6602_v7 }
 0xd26   :  { %3806 = vmatpush1.msra.mxu0 %v6605_v33  ;;  %3877 = vmatpush1.msra.mxu1 %v7427_v28 }
 0xd27   :  { %3807 = vmatprep.subr.mxu0 %v7428_v35  ;;  %3878 = vmatprep.subr.mxu1 %v7429_v37  ;;  %v7455_v37 = vld [vmem:[#allocation59_spill] sm:$0xff] }
 0xd28   :  { %3808 = vmatpush1.msra.mxu0 %v7430_v39  ;;  %3879 = vmatpush1.msra.mxu1 %v7431_v32 }
 0xd29   :  { %3809 = vmatprep.subr.mxu0 %v7432_v2  ;;  %3880 = vmatprep.subr.mxu1 %v7433_v16 }
 0xd2a   :  { %3810 = vmatpush1.msra.mxu0 %v7434_v51  ;;  %3881 = vmatpush1.msra.mxu1 %v7435_v41  ;;  %v7446_v41 = vld [vmem:[#allocation50_spill] sm:$0xff] }
 0xd2b   :  { %3811 = vmatprep.subr.mxu0 %v7436_v40  ;;  %3882 = vmatprep.subr.mxu1 %v7437_v42  ;;  %v7447_v40 = vmov 0.0   ;;  %v7448_v42 = vld [vmem:[#allocation52_spill] sm:$0xff] }
 0xd2c   :  { %3812 = vmatpush1.msra.mxu0 %v7438_v26  ;;  %3883 = vmatpush1.msra.mxu1 %v7439_v14  ;;  %v7449_v14 = vld [vmem:[#allocation27_spill] sm:$0xff] }
 0xd2d   :  { %3813 = vmatprep.subr.mxu0 %v7440_v31  ;;  %3884 = vmatprep.subr.mxu1 %v7441_v8  ;;  %v7450_v31 = vld [vmem:[#allocation29_spill] sm:$0xff]  ;;  %v7451_v8 = vld [vmem:[#allocation64_spill] sm:$0xff] }
 0xd2e   :  { %3814 = vmatpush1.msra.mxu0 %v7442_v52  ;;  %3885 = vmatpush1.msra.mxu1 %v7443_v45  ;;  %v7452_v52 = vld [vmem:[#allocation61_spill] sm:$0xff] }
 0xd2f   :  { %3815 = vmatprep.subr.mxu0 %v7444_v27  ;;  %3886 = vmatprep.subr.mxu1 %v7445_v24  ;;  %v2512_v26 = vadd.f32 %v7452_v52, %v7451_v8  ;;  %v7453_v27 = vld [vmem:[#allocation66_spill] sm:$0xff]  ;;  %v2625_v52 = vadd.f32 %v7455_v37, %v6241_v20 }
 0xd30   :  { %3816 = vmatpush1.msra.mxu0 %v7446_v41  ;;  %3849 = vmatprep.mubr.f32.mxu0 %v7447_v40  ;;  %v2514_v51 = vadd.f32 %v7453_v27, %v6224_v6 }
 0xd31   :  { %3887 = vmatpush1.msra.mxu1 %v7448_v42  ;;  %3920 = vmatprep.mubr.f32.mxu1 %v7447_v40 }
 0xd32   :  { %3959 = vmatprep.subr.mxu0 %v7449_v14  ;;  %4030 = vmatprep.subr.mxu1 %v7450_v31  ;;  %v7454_v14 = vld [vmem:[#allocation17_spill] sm:$0xff] }
 0xd33   :  { %v2627_v39 = vadd.f32 %v7454_v14, %v7351_v25 }
 0xdd1   :  { %v3677_v45 = vpop.f32.mrf.mxu0  ;;  %v3748_v32 = vpop.f32.mrf.mxu1 }
 0xdd2   :  { %v3753_v24 = vadd.f32 %v3677_v45, %v2512_v26  ;;  %v3755_v8 = vadd.f32 %v3748_v32, %v2625_v52 }
 0xdd3   :  { %v3679_v16 = vpop.f32.mrf.mxu0  ;;  %v3750_v40 = vpop.f32.mrf.mxu1 }
 0xdd4   :  { %v4301_v41 = vmul.f32 -1.442695, %v3753_v24  ;;  %v3754_v2 = vadd.f32 %v3679_v16, %v2514_v51  ;;  %v3756_v31 = vadd.f32 %v3750_v40, %v2627_v39 }
 0xdd6   :  { %4583 = vpow2.f32 %v4301_v41  ;;  %v4302_v42 = vmul.f32 -1.442695, %v3754_v2  ;;  %v4303_v35 = vmul.f32 -1.442695, %v3756_v31 }
 0xdd8   :  { %4585 = vpow2.f32 %v4302_v42 }
 0xdd9   :  { %4587 = vtanh.f32 %v3755_v8 }
 0xdda   :  { %4589 = vpow2.f32 %v4303_v35 }
 0xde3   :  { %v4584_v28 = vpop.eup %4583 }
 0xde4   :  { %v3760_v27 = vadd.f32 1.0, %v4584_v28 }
 0xde5   :  { %v4586_v26 = vpop.eup %4585 }
 0xde6   :  { %4591 = vrcp.f32 %v3760_v27  ;;  %v3766_v16 = vadd.f32 1.0, %v4586_v26  ;;  %v4588_v2 = vpop.eup %4587 }
 0xde7   :  { %v4590_v51 = vpop.eup %4589 }
 0xde8   :  { %4593 = vrcp.f32 %v3766_v16  ;;  %v3773_v24 = vadd.f32 1.0, %v4590_v51 }
 0xdea   :  { %4595 = vrcp.f32 %v3773_v24 }
 0xdf3   :  { %v4592_v41 = vpop.eup %4591 }
 0xdf4   :  { %v3777_v42 = vmul.f32 %v4592_v41, %v4588_v2 }
 0xdf5   :  { %v4594_v45 = vpop.eup %4593 }
 0xdf6   :  { %v3776_v39 = vmul.f32 %v4594_v45, %v6684_v38 }
 0xdf7   :  { %v4596_v28 = vpop.eup %4595 }
 0xdf8   :  { %v6762_v40 = vadd.f32 %v3777_v42, %v3776_v39 }
 0xdfa   :  { %4597 = vtanh.f32 %v6762_v40 }
 0xe07   :  { %v4598_v37 = vpop.eup %4597 }
 0xe08   :  { %v3780_v32 = vmul.f32 %v4598_v37, %v4596_v28  ;;  %v4144_v28 = vld [vmem:[#allocation10 + $0x78] sm:$0xff]  ;;  %v4143_v37 = vld [vmem:[#allocation10 + $0x70] sm:$0xff] }
 0xe0a   :  { %3850 = vmatmul.mubr.f32.vlgmr.msra.gmra.mxu0 %v3780_v32  ;;  %3921 = vmatmul.mubr.f32.vlgmr.msra.gmra.mxu1 %v3780_v32  ;;  %v4142_v32 = vld [vmem:[#allocation10 + $0x68] sm:$0xff] }
 0xe0b   :  { %3960 = vmatpush1.msra.mxu0 %v6403_v59  ;;  %4031 = vmatpush1.msra.mxu1 %v6406_v30  ;;  %v7456_v59 = vld [vmem:[#allocation69_spill] sm:$0xff]  ;;  %v7457_v30 = vld [vmem:[#allocation30_spill] sm:$0xff] }
 0xe0c   :  { %3961 = vmatprep.subr.mxu0 %v6409_v22  ;;  %4032 = vmatprep.subr.mxu1 %v6412_v29  ;;  %v7458_v22 = vld [vmem:[#allocation28_spill] sm:$0xff]  ;;  %v7459_v29 = vld [vmem:[#allocation42_spill] sm:$0xff] }
 0xe0d   :  { %3962 = vmatpush1.msra.mxu0 %v6415_v19  ;;  %4033 = vmatpush1.msra.mxu1 %v6418_v13  ;;  %v7460_v19 = vld [vmem:[#allocation44_spill] sm:$0xff]  ;;  %v7461_v13 = vld [vmem:[#allocation45_spill] sm:$0xff] }
 0xe0e   :  { %3963 = vmatprep.subr.mxu0 %v6421_v23  ;;  %4034 = vmatprep.subr.mxu1 %v6424_v11  ;;  %v7462_v23 = vld [vmem:[#allocation43_spill] sm:$0xff]  ;;  %v7463_v11 = vld [vmem:[#allocation46_spill] sm:$0xff] }
 0xe0f   :  { %3964 = vmatpush1.msra.mxu0 %v6427_v12  ;;  %4035 = vmatpush1.msra.mxu1 %v6430_v15  ;;  %v7464_v12 = vld [vmem:[#allocation48_spill] sm:$0xff]  ;;  %v7465_v15 = vld [vmem:[#allocation49_spill] sm:$0xff] }
 0xe10   :  { %3965 = vmatprep.subr.mxu0 %v6515_v21  ;;  %4036 = vmatprep.subr.mxu1 %v6518_v17  ;;  %v7466_v21 = vld [vmem:[#allocation47_spill] sm:$0xff]  ;;  %v7467_v17 = vld [vmem:[#allocation18_spill] sm:$0xff] }
 0xe11   :  { %3966 = vmatpush1.msra.mxu0 %v6521_v43  ;;  %4037 = vmatpush1.msra.mxu1 %v6524_v44  ;;  %v7468_v43 = vld [vmem:[#allocation19_spill] sm:$0xff]  ;;  %v7469_v44 = vld [vmem:[#allocation41_spill] sm:$0xff] }
 0xe12   :  { %3967 = vmatprep.subr.mxu0 %v6527_v46  ;;  %4038 = vmatprep.subr.mxu1 %v6530_v47  ;;  %v7470_v46 = vld [vmem:[#allocation39_spill] sm:$0xff] }
 0xe13   :  { %3968 = vmatpush1.msra.mxu0 %v6533_v48  ;;  %4039 = vmatpush1.msra.mxu1 %v6536_v49  ;;  %v7471_v47 = vld [vmem:[#allocation31_spill] sm:$0xff]  ;;  %v7472_v48 = vld [vmem:[#allocation33_spill] sm:$0xff]  ;;  %v7473_v49 = vld [vmem:[#allocation34_spill] sm:$0xff] }
 0xe14   :  { %3969 = vmatprep.subr.mxu0 %v6539_v50  ;;  %4040 = vmatprep.subr.mxu1 %v6542_v53  ;;  %v7474_v50 = vld [vmem:[#allocation32_spill] sm:$0xff]  ;;  %v7475_v53 = vld [vmem:[#allocation50_spill] sm:$0xff] }
 0xe15   :  { %3970 = vmatpush1.msra.mxu0 %v6545_v54  ;;  %4041 = vmatpush1.msra.mxu1 %v6548_v34  ;;  %v7476_v54 = vmov 0.0   ;;  %v7477_v34 = vld [vmem:[#allocation52_spill] sm:$0xff] }
 0xe16   :  { %3971 = vmatprep.subr.mxu0 %v6551_v60  ;;  %4042 = vmatprep.subr.mxu1 %v6554_v57  ;;  %v7478_v60 = vld [vmem:[#allocation64_spill] sm:$0xff]  ;;  %v7479_v57 = vld [vmem:[#allocation37_spill] sm:$0xff] }
 0xe17   :  { %3972 = vmatpush1.msra.mxu0 %v6557_v9  ;;  %4043 = vmatpush1.msra.mxu1 %v6560_v3  ;;  %v2518_v9 = vadd.f32 %v7479_v57, %v7478_v60 }
 0xe18   :  { %3973 = vmatprep.subr.mxu0 %v6563_v18  ;;  %4044 = vmatprep.subr.mxu1 %v6566_v5  ;;  %v7480_v18 = vld [vmem:[#allocation62_spill] sm:$0xff] }
 0xe19   :  { %3974 = vmatpush1.msra.mxu0 %v6569_v55  ;;  %4045 = vmatpush1.msra.mxu1 %v6572_v61  ;;  %v2520_v5 = vadd.f32 %v7480_v18, %v6224_v6  ;;  %v7485_v18 = vld [vmem:[#allocation68_spill] sm:$0xff] }
 0xe1a   :  { %3975 = vmatprep.subr.mxu0 %v6575_v56  ;;  %4046 = vmatprep.subr.mxu1 %v6578_v58 }
 0xe1b   :  { %3976 = vmatpush1.msra.mxu0 %v6581_v62  ;;  %4047 = vmatpush1.msra.mxu1 %v6584_v36 }
 0xe1c   :  { %3977 = vmatprep.subr.mxu0 %v6587_v0  ;;  %4048 = vmatprep.subr.mxu1 %v6590_v1  ;;  %v7481_v1 = vld [vmem:[#allocation65_spill] sm:$0xff] }
 0xe1d   :  { %3978 = vmatpush1.msra.mxu0 %v6593_v63  ;;  %4049 = vmatpush1.msra.mxu1 %v6596_v4  ;;  %v2633_v63 = vadd.f32 %v7481_v1, %v7351_v25 }
 0xe1e   :  { %3979 = vmatprep.subr.mxu0 %v6599_v10  ;;  %4050 = vmatprep.subr.mxu1 %v6602_v7  ;;  %v7482_v10 = vld [vmem:[#allocation40_spill] sm:$0xff] }
 0xe1f   :  { %3980 = vmatpush1.msra.mxu0 %v6605_v33  ;;  %4051 = vmatpush1.msra.mxu1 %v7456_v59  ;;  %v2631_v7 = vadd.f32 %v7482_v10, %v6241_v20  ;;  %v4140_v59 = vld [vmem:[#allocation10 + $0x58] sm:$0xff] }
 0xe20   :  { %3981 = vmatprep.subr.mxu0 %v7457_v30  ;;  %4052 = vmatprep.subr.mxu1 %v7458_v22  ;;  %v4139_v30 = vld [vmem:[#allocation10 + $0x50] sm:$0xff]  ;;  %v4138_v22 = vld [vmem:[#allocation10 + $0x48] sm:$0xff] }
 0xe21   :  { %3982 = vmatpush1.msra.mxu0 %v7459_v29  ;;  %4053 = vmatpush1.msra.mxu1 %v7460_v19  ;;  %v4137_v29 = vld [vmem:[#allocation10 + $0x40] sm:$0xff]  ;;  %v4136_v19 = vld [vmem:[#allocation10 + $0x38] sm:$0xff] }
 0xe22   :  { %3983 = vmatprep.subr.mxu0 %v7461_v13  ;;  %4054 = vmatprep.subr.mxu1 %v7462_v23  ;;  %v4135_v13 = vld [vmem:[#allocation10 + $0x30] sm:$0xff]  ;;  %v4134_v23 = vld [vmem:[#allocation10 + $0x28] sm:$0xff] }
 0xe23   :  { %3984 = vmatpush1.msra.mxu0 %v7463_v11  ;;  %4055 = vmatpush1.msra.mxu1 %v7464_v12  ;;  %v4133_v11 = vld [vmem:[#allocation10 + $0x20] sm:$0xff]  ;;  %v4132_v12 = vld [vmem:[#allocation10 + $0x18] sm:$0xff] }
 0xe24   :  { %3985 = vmatprep.subr.mxu0 %v7465_v15  ;;  %4056 = vmatprep.subr.mxu1 %v7466_v21  ;;  %v4131_v15 = vld [vmem:[#allocation10 + $0x10] sm:$0xff]  ;;  %v4130_v21 = vld [vmem:[#allocation10 + $0x8] sm:$0xff] }
 0xe25   :  { %3986 = vmatpush1.msra.mxu0 %v7467_v17  ;;  %4057 = vmatpush1.msra.mxu1 %v7468_v43  ;;  %v4129_v17 = vld [vmem:[#allocation10] sm:$0xff]  ;;  %v7483_v43 = vld [vmem:[#allocation63_spill] sm:$0xff] }
 0xe26   :  { %3987 = vmatprep.subr.mxu0 %v7469_v44  ;;  %4058 = vmatprep.subr.mxu1 %v7470_v46  ;;  %v2524_v44 = vadd.f32 %v7483_v43, %v7478_v60 }
 0xe27   :  { %3988 = vmatpush1.msra.mxu0 %v7471_v47  ;;  %4059 = vmatpush1.msra.mxu1 %v7472_v48  ;;  %v7484_v47 = vld [vmem:[#allocation67_spill] sm:$0xff] }
 0xe28   :  { %3989 = vmatprep.subr.mxu0 %v7473_v49  ;;  %4060 = vmatprep.subr.mxu1 %v7474_v50  ;;  %v2526_v48 = vadd.f32 %v7484_v47, %v6224_v6 }
 0xe29   :  { %3990 = vmatpush1.msra.mxu0 %v7475_v53  ;;  %4023 = vmatprep.mubr.f32.mxu0 %v7476_v54 }
 0xe2a   :  { %4061 = vmatpush1.msra.mxu1 %v7477_v34  ;;  %4094 = vmatprep.mubr.f32.mxu1 %v7476_v54 }
 0xe2b   :  { %4329 = vmatprep.subr.mxu0 %v7476_v54 }
 0xeca   :  { %v3851_v3 = vpop.f32.mrf.mxu0  ;;  %v3922_v62 = vpop.f32.mrf.mxu1 }
 0xecb   :  { %v3927_v55 = vadd.f32 %v3851_v3, %v2518_v9  ;;  %v3929_v33 = vadd.f32 %v3922_v62, %v2631_v7 }
 0xecc   :  { %v3853_v61 = vpop.f32.mrf.mxu0  ;;  %v3924_v0 = vpop.f32.mrf.mxu1 }
 0xecd   :  { %v4304_v56 = vmul.f32 -1.442695, %v3927_v55  ;;  %v3928_v58 = vadd.f32 %v3853_v61, %v2520_v5  ;;  %v3930_v4 = vadd.f32 %v3924_v0, %v2633_v63  ;;  %v7486_v55 = vld [vmem:[#allocation38_spill] sm:$0xff] }
 0xece   :  { %v2637_v60 = vadd.f32 %v7486_v55, %v6241_v20 }
 0xecf   :  { %4599 = vpow2.f32 %v4304_v56  ;;  %v4305_v36 = vmul.f32 -1.442695, %v3928_v58  ;;  %v4306_v38 = vmul.f32 -1.442695, %v3930_v4 }
 0xed1   :  { %4601 = vpow2.f32 %v4305_v36 }
 0xed2   :  { %4603 = vtanh.f32 %v3929_v33 }
 0xed3   :  { %4605 = vpow2.f32 %v4306_v38 }
 0xedc   :  { %v4600_v35 = vpop.eup %4599 }
 0xedd   :  { %v3934_v8 = vadd.f32 1.0, %v4600_v35 }
 0xede   :  { %v4602_v14 = vpop.eup %4601 }
 0xedf   :  { %4607 = vrcp.f32 %v3934_v8  ;;  %v3940_v31 = vadd.f32 1.0, %v4602_v14  ;;  %v4604_v52 = vpop.eup %4603  ;;  %v4310_v8 = vld [vmem:[%s6881_s8] ss:$0 sm:$0xff] }
 0xee0   :  { %v4606_v27 = vpop.eup %4605 }
 0xee1   :  { %4609 = vrcp.f32 %v3940_v31  ;;  %v3947_v51 = vadd.f32 1.0, %v4606_v27 }
 0xee3   :  { %4611 = vrcp.f32 %v3947_v51 }
 0xeec   :  { %v4608_v26 = vpop.eup %4607 }
 0xeed   :  { %v3951_v16 = vmul.f32 %v4608_v26, %v4604_v52 }
 0xeee   :  { %v4610_v2 = vpop.eup %4609 }
 0xeef   :  { %v3950_v41 = vmul.f32 %v4610_v2, %v6762_v40  ;;  %v4141_v40 = vld [vmem:[#allocation10 + $0x60] sm:$0xff] }
 0xef0   :  { %v4612_v45 = vpop.eup %4611 }
 0xef1   :  { %v6839_v42 = vadd.f32 %v3951_v16, %v3950_v41 }
 0xef3   :  { %4613 = vtanh.f32 %v6839_v42 }
 0xf00   :  { %v4614_v24 = vpop.eup %4613 }
 0xf01   :  { %v3954_v39 = vmul.f32 %v4614_v24, %v4612_v45 }
 0xf03   :  { %4024 = vmatmul.mubr.f32.vlgmr.msra.gmra.mxu0 %v3954_v39  ;;  %4095 = vmatmul.mubr.f32.vlgmr.msra.gmra.mxu1 %v3954_v39 }
 0xf04   :  { %4330 = vmatpush3.msra.mxu0 %v4144_v28  ;;  %4361 = vmatprep.mubr.msk.f32.mxu0 %vm4816_vm1, %v7476_v54 }
 0xf05   :  { %4331 = vmatprep.subr.mxu0 %v7476_v54 }
 0xf06   :  { %4332 = vmatpush3.msra.mxu0 %v4143_v37 }
 0xf07   :  { %4333 = vmatprep.subr.mxu0 %v7476_v54 }
 0xf08   :  { %4334 = vmatpush3.msra.mxu0 %v4142_v32 }
 0xf09   :  { %4335 = vmatprep.subr.mxu0 %v7476_v54 }
 0xf0a   :  { %4336 = vmatpush3.msra.mxu0 %v4141_v40 }
 0xf0b   :  { %4337 = vmatprep.subr.mxu0 %v7476_v54 }
 0xf0c   :  { %4338 = vmatpush3.msra.mxu0 %v4140_v59 }
 0xf0d   :  { %4339 = vmatprep.subr.mxu0 %v7476_v54 }
 0xf0e   :  { %4340 = vmatpush3.msra.mxu0 %v4139_v30 }
 0xf0f   :  { %4341 = vmatprep.subr.mxu0 %v7476_v54 }
 0xf10   :  { %4342 = vmatpush3.msra.mxu0 %v4138_v22 }
 0xf11   :  { %4343 = vmatprep.subr.mxu0 %v7476_v54 }
 0xf12   :  { %4344 = vmatpush3.msra.mxu0 %v4137_v29 }
 0xf13   :  { %4345 = vmatprep.subr.mxu0 %v7476_v54 }
 0xf14   :  { %4346 = vmatpush3.msra.mxu0 %v4136_v19 }
 0xf15   :  { %4347 = vmatprep.subr.mxu0 %v7476_v54 }
 0xf16   :  { %4348 = vmatpush3.msra.mxu0 %v4135_v13 }
 0xf17   :  { %4349 = vmatprep.subr.mxu0 %v7476_v54 }
 0xf18   :  { %4350 = vmatpush3.msra.mxu0 %v4134_v23 }
 0xf19   :  { %4351 = vmatprep.subr.mxu0 %v7476_v54 }
 0xf1a   :  { %4352 = vmatpush3.msra.mxu0 %v4133_v11 }
 0xf1b   :  { %4353 = vmatprep.subr.mxu0 %v7476_v54 }
 0xf1c   :  { %4354 = vmatpush3.msra.mxu0 %v4132_v12 }
 0xf1d   :  { %4355 = vmatprep.subr.mxu0 %v7476_v54 }
 0xf1e   :  { %4356 = vmatpush3.msra.mxu0 %v4131_v15 }
 0xf1f   :  { %4357 = vmatprep.subr.mxu0 %v7476_v54 }
 0xf20   :  { %4358 = vmatpush3.msra.mxu0 %v4130_v21 }
 0xf21   :  { %4359 = vmatprep.subr.mxu0 %v7476_v54  ;;  %v2639_v54 = vadd.f32 %v7485_v18, %v7351_v25 }
 0xf22   :  { %4360 = vmatpush3.msra.mxu0 %v4129_v17 }
 0xfc3   :  { %v4025_v46 = vpop.f32.mrf.mxu0  ;;  %v4096_v57 = vpop.f32.mrf.mxu1 }
 0xfc4   :  { %v4101_v49 = vadd.f32 %v4025_v46, %v2524_v44  ;;  %v4103_v61 = vadd.f32 %v4096_v57, %v2637_v60 }
 0xfc5   :  { %v4027_v50 = vpop.f32.mrf.mxu0  ;;  %v4098_v3 = vpop.f32.mrf.mxu1 }
 0xfc6   :  { %v4307_v53 = vmul.f32 -1.442695, %v4101_v49  ;;  %v4102_v34 = vadd.f32 %v4027_v50, %v2526_v48  ;;  %v4104_v5 = vadd.f32 %v4098_v3, %v2639_v54 }
 0xfc8   :  { %4615 = vpow2.f32 %v4307_v53  ;;  %v4308_v9 = vmul.f32 -1.442695, %v4102_v34  ;;  %v4309_v56 = vmul.f32 -1.442695, %v4104_v5 }
 0xfca   :  { %4617 = vpow2.f32 %v4308_v9 }
 0xfcb   :  { %4619 = vtanh.f32 %v4103_v61 }
 0xfcc   :  { %4621 = vpow2.f32 %v4309_v56 }
 0xfd5   :  { %v4616_v58 = vpop.eup %4615 }
 0xfd6   :  { %v4108_v6 = vadd.f32 1.0, %v4616_v58 }
 0xfd7   :  { %v4618_v62 = vpop.eup %4617 }
 0xfd8   :  { %4623 = vrcp.f32 %v4108_v6  ;;  %v4114_v36 = vadd.f32 1.0, %v4618_v62  ;;  %v4620_v0 = vpop.eup %4619 }
 0xfd9   :  { %v4622_v1 = vpop.eup %4621 }
 0xfda   :  { %4625 = vrcp.f32 %v4114_v36  ;;  %v4121_v25 = vadd.f32 1.0, %v4622_v1 }
 0xfdc   :  { %4627 = vrcp.f32 %v4121_v25 }
 0xfe5   :  { %v4624_v63 = vpop.eup %4623 }
 0xfe6   :  { %v4125_v4 = vmul.f32 %v4624_v63, %v4620_v0 }
 0xfe7   :  { %v4626_v10 = vpop.eup %4625 }
 0xfe8   :  { %v4124_v7 = vmul.f32 %v4626_v10, %v6839_v42 }
 0xfe9   :  { %v4628_v20 = vpop.eup %4627 }
 0xfea   :  { %v4126_v33 = vadd.f32 %v4125_v4, %v4124_v7 }
 0xfec   :  { %4629 = vtanh.f32 %v4126_v33 }
 0xff9   :  { %v4630_v38 = vpop.eup %4629 }
 0xffa   :  { %v4128_v35 = vmul.f32 %v4630_v38, %v4628_v20 }
 0xffc   :  { %4362 = vmatmul.mubr.f32.vlgmr.msra.gmra.mxu0 %v4128_v35 }
0x10bc   :  { %v4218_v14 = vpop.f32.mrf.mxu0 }
0x10bd   :  { %v4219_v31 = vadd.f32 %v4310_v8, %v4218_v14 }
0x10be   :  { %v4363_v52 = vpop.f32.mrf.mxu0 }
0x10bf   :  { %v4311_v27 = vmul.f32 -1.442695, %v4219_v31 }
0x10c1   :  { %4631 = vpow2.f32 %v4311_v27 }
0x10ce   :  { %v4632_v26 = vpop.eup %4631 }
0x10cf   :  { %v4225_v16 = vadd.f32 1.0, %v4632_v26 }
0x10d1   :  { %4633 = vrcp.f32 %v4225_v16 }
0x10de   :  { %v4634_v2 = vpop.eup %4633 }
0x10df   :  { %4228 = vst [vmem:[#allocation12] sm:$0xff] %v4634_v2 }
0x10e0   :  { %4790 = shalt.err (!%p4787_p10)
}
0x10e1   :  { %4238 = dma.vmem_to_hbm [thread:$0]  %s4236_s18, 128, %s6882_s9, [#allocation6]  }
0x10e2   :  { %4805 = dma.done.wait [#allocation6], 128  }
0x10e3   :  { %4806 = vsyncadd [#allocation6], 4294967168 }
0x10e4   :  { %4242 = vsyncpa [#allocation5], 1 }
0x10e5   :  { %4243 = vsyncpa [#allocation8], 1 }
0x10e6   :  { %4244 = vsyncpa [#allocation11], 1 }
0x10e7   :  { %4245 = vsyncpa [#allocation6], 1 }

</bundles_post_ra>
